<compile_context>
chip_gen: v6e
topology: v6e:2x2x1
jax: 0.10.0
libtpu: 0.0.40
codegen_flags: <defaults>
</compile_context>

<pallas_src>
import math

import jax
import jax.numpy as jnp
from jax.experimental import pallas as pl
from jax.experimental.pallas import tpu as pltpu

# ---- small synthetic BERT config -------------------------------------------
HIDDEN = 32
N_HEADS = 4
HEAD_DIM = HIDDEN // N_HEADS
FFN = 64
N_LAYERS = 2
VOCAB = 100
SEQ = 8
BATCH = 2
LN_EPS = 1e-12

# Flip to jnp.bfloat16 when scaling toward real bert-base (H=768) on v6e/v7x;
# accumulation stays f32 via preferred_element_type, and LayerNorm / softmax /
# GELU / residuals stay f32 (v5e has no bf16 VPU/EUP path).
MATMUL_DTYPE = jnp.float32

# Row layout of the packed per-layer "misc" slab [N_LAYERS, 10, FFN]
# (width-H rows occupy columns [:HIDDEN], row 9 is the full-FFN bias):
_R_BQ, _R_BK, _R_BV, _R_BO, _R_B2 = 0, 1, 2, 3, 4
_R_LN1G, _R_LN1B, _R_LN2G, _R_LN2B = 5, 6, 7, 8
_R_B1 = 9


def _mm(a, b):
    """MXU matmul with f32 accumulation (operands optionally cast to bf16)."""
    return jnp.dot(a.astype(MATMUL_DTYPE), b.astype(MATMUL_DTYPE),
                   preferred_element_type=jnp.float32)


def _layer_norm(x, g, b):
    mu = jnp.mean(x, axis=-1, keepdims=True)
    var = jnp.mean((x - mu) ** 2, axis=-1, keepdims=True)
    return (x - mu) * jax.lax.rsqrt(var + LN_EPS) * g + b


# ---- fused Pallas kernel: 2 encoder layers + mean pooling + cosine ----------
def shroom_fused_kernel(
    x_ref,       # [2B, S, H]  embedded tokens (both twins stacked on batch)
    mask_ref,    # [2B, S]     attention mask (float)
    wqkv_ref,    # [L, 3, H, H]
    wo_ref,      # [L, H, H]
    w1_ref,      # [L, H, FFN]
    w2_ref,      # [L, FFN, H]
    misc_ref,    # [L, 10, FFN] packed biases + LayerNorm params
    sim_ref,     # [B, 1]      cosine similarity output
):
    TB, S, H = x_ref.shape          # TB = 2*B (both twins stacked on batch)
    B = TB // 2
    N = TB * S                      # total token rows
    scale = 1.0 / math.sqrt(HEAD_DIM)

    # Flatten tokens for the dense matmuls: [2B*S, H] (lane dim unchanged).
    x = x_ref[...].reshape(N, H)
    mask = mask_ref[...]                                           # [TB, S]

    # Additive attention bias, broadcast ONCE (hoisted out of the layer/head
    # loops -- JAX does not CSE broadcast_in_dim).
    attn_bias = jnp.broadcast_to(((1.0 - mask) * -10000.0)[:, None, :],
                                 (TB, S, S))                       # [TB, S, S]

    for l in range(N_LAYERS):                       # static layer loop (L=2)
        misc = misc_ref[l]                          # [10, FFN]
        bq = misc[_R_BQ:_R_BQ + 1, :H]
        bk = misc[_R_BK:_R_BK + 1, :H]
        bv = misc[_R_BV:_R_BV + 1, :H]
        bo = misc[_R_BO:_R_BO + 1, :H]
        b2 = misc[_R_B2:_R_B2 + 1, :H]
        ln1_g = misc[_R_LN1G:_R_LN1G + 1, :H]
        ln1_b = misc[_R_LN1B:_R_LN1B + 1, :H]
        ln2_g = misc[_R_LN2G:_R_LN2G + 1, :H]
        ln2_b = misc[_R_LN2B:_R_LN2B + 1, :H]
        b1 = misc[_R_B1:_R_B1 + 1, :]               # [1, FFN]

        # ---- self-attention: three [H,H] matmuls (no 32/64-offset slices) ---
        q = (_mm(x, wqkv_ref[l, 0]) + bq).reshape(TB, S, H)
        k = (_mm(x, wqkv_ref[l, 1]) + bk).reshape(TB, S, H)
        v = (_mm(x, wqkv_ref[l, 2]) + bv).reshape(TB, S, H)

        heads = []
        for h in range(N_HEADS):                    # static head loop (4)
            lo = h * HEAD_DIM
            qh = q[:, :, lo:lo + HEAD_DIM]          # [TB, S, d]
            kh = k[:, :, lo:lo + HEAD_DIM]
            vh = v[:, :, lo:lo + HEAD_DIM]
            sc = jnp.einsum("bqd,bkd->bqk", qh, kh,
                            preferred_element_type=jnp.float32) * scale
            p = jax.nn.softmax(sc + attn_bias, axis=-1)
            heads.append(jnp.einsum("bqk,bkd->bqd", p, vh,
                                    preferred_element_type=jnp.float32))
        # One lane-concat + ONE [N,H]x[H,H] output projection (was 4 K=8 pushes).
        ctx = jnp.concatenate(heads, axis=-1).reshape(N, H)
        attn = _mm(ctx, wo_ref[l]) + bo

        x = _layer_norm(x + attn, ln1_g, ln1_b)

        # ---- feed-forward ----------------------------------------------------
        h1 = _mm(x, w1_ref[l]) + b1
        # TODO(synk): HF BERT uses exact erf-GELU; tanh-approx GELU used (EUP).
        h1 = jax.nn.gelu(h1, approximate=True)
        h2 = _mm(h1, w2_ref[l]) + b2
        x = _layer_norm(x + h2, ln2_g, ln2_b)

    # ---- mean pooling (sentence-transformers) + cosine similarity ----------
    x3 = x.reshape(TB, S, H)
    sums = jnp.sum(x3 * mask[:, :, None], axis=1)                   # [TB, H]
    counts = jnp.maximum(jnp.sum(mask, axis=1, keepdims=True), 1e-9)  # [TB, 1]
    # Cosine similarity is invariant to per-vector positive scale, so the EUP
    # approximate reciprocal of the token count does not perturb the score.
    pooled = sums * pl.reciprocal(counts, approx=True)              # [TB, H]

    p1 = pooled[0:B, :]                                             # twin1
    p2 = pooled[B:TB, :]                                            # twin2
    dot = jnp.sum(p1 * p2, axis=-1, keepdims=True)                  # [B, 1]
    n1 = jnp.sqrt(jnp.sum(p1 * p1, axis=-1, keepdims=True))
    n2 = jnp.sqrt(jnp.sum(p2 * p2, axis=-1, keepdims=True))
    sim_ref[...] = dot / jnp.maximum(n1 * n2, 1e-6)


# ---- embeddings (glue, plain JAX: gather + layernorm) -----------------------
def embed(params, ids):
    we, pe, te, g, b = params["embed"]
    x = we[ids] + pe[None, :, :] + te[0][None, None, :]
    mu = jnp.mean(x, axis=-1, keepdims=True)
    var = jnp.mean((x - mu) ** 2, axis=-1, keepdims=True)
    return (x - mu) * jax.lax.rsqrt(var + LN_EPS) * g + b


# ---- full forward pass ------------------------------------------------------
def shroomformer_forward(params, ids1, mask1, ids2, mask2):
    B, S = ids1.shape
    # twin1 and twin2 share the encoder (same module instances in PyTorch):
    # run both sentences through it in one batch.
    ids = jnp.concatenate([ids1, ids2], axis=0)                       # [2B, S]
    mask = jnp.concatenate([mask1, mask2], axis=0).astype(jnp.float32)

    x = embed(params, ids)                                            # [2B, S, H]

    in_specs = [pl.BlockSpec(memory_space=pltpu.MemorySpace.VMEM)
                for _ in range(7)]
    sim = pl.pallas_call(
        shroom_fused_kernel,
        out_shape=jax.ShapeDtypeStruct((B, 1), jnp.float32),
        in_specs=in_specs,
        out_specs=pl.BlockSpec(memory_space=pltpu.MemorySpace.VMEM),
    )(x, mask,
      params["wqkv"], params["wo"], params["w1"], params["w2"], params["misc"])
    return sim[:, 0]                                                  # [B]


# ---- deterministic parameter init ------------------------------------------
def init_params(key):
    keys = iter(jax.random.split(key, 3 + 4 * N_LAYERS))

    def nrm(shape, scale=0.02):
        return scale * jax.random.normal(next(keys), shape, dtype=jnp.float32)

    embed_params = (
        nrm((VOCAB, HIDDEN)),                   # word embeddings
        nrm((SEQ, HIDDEN)),                     # position embeddings
        nrm((2, HIDDEN)),                       # token-type embeddings
        jnp.ones((HIDDEN,), jnp.float32),       # emb LN gamma
        jnp.zeros((HIDDEN,), jnp.float32),      # emb LN beta
    )

    # Q/K/V weights stored unfused: [N_LAYERS, 3, H, H].
    wqkv = jnp.stack([nrm((3, HIDDEN, HIDDEN)) for _ in range(N_LAYERS)])
    wo = jnp.stack([nrm((HIDDEN, HIDDEN)) for _ in range(N_LAYERS)])
    w1 = jnp.stack([nrm((HIDDEN, FFN)) for _ in range(N_LAYERS)])
    w2 = jnp.stack([nrm((FFN, HIDDEN)) for _ in range(N_LAYERS)])

    # Packed per-layer 1-row tensors: biases (zero) + LayerNorm gamma/beta.
    misc = jnp.zeros((N_LAYERS, 10, FFN), jnp.float32)
    misc = misc.at[:, _R_LN1G, :HIDDEN].set(1.0)   # ln1 gamma
    misc = misc.at[:, _R_LN2G, :HIDDEN].set(1.0)   # ln2 gamma

    return {
        "embed": embed_params,
        "wqkv": wqkv,
        "wo": wo,
        "w1": w1,
        "w2": w2,
        "misc": misc,
    }


# ---- demo -------------------------------------------------------------------
if __name__ == "__main__":
    key = jax.random.PRNGKey(0)
    k_ids1, k_ids2, k_params = jax.random.split(key, 3)

    ids1 = jax.random.randint(k_ids1, (BATCH, SEQ), 0, VOCAB, dtype=jnp.int32)
    ids2 = jax.random.randint(k_ids2, (BATCH, SEQ), 0, VOCAB, dtype=jnp.int32)
    mask1 = jnp.ones((BATCH, SEQ), jnp.float32)
    # second sentence of the second example has 2 padding tokens
    mask2 = (jnp.arange(SEQ)[None, :]
             < jnp.array([[SEQ], [SEQ - 2]])).astype(jnp.float32)

    params = init_params(k_params)

    forward = jax.jit(shroomformer_forward)
    sim = forward(params, ids1, mask1, ids2, mask2)
    sim = jax.block_until_ready(sim)
    assert sim.shape == (BATCH,)
    print("KERNEL_OK")
</pallas_src>

<mosaic_0001>
module attributes {stable_mosaic.version = 11 : i64} {
  func.func @shroom_fused_kernel(%arg0: memref<4x8x32xf32, #tpu.memory_space<vmem>>, %arg1: memref<4x8xf32, #tpu.memory_space<vmem>>, %arg2: memref<2x3x32x32xf32, #tpu.memory_space<vmem>>, %arg3: memref<2x32x32xf32, #tpu.memory_space<vmem>>, %arg4: memref<2x32x64xf32, #tpu.memory_space<vmem>>, %arg5: memref<2x64x32xf32, #tpu.memory_space<vmem>>, %arg6: memref<2x10x64xf32, #tpu.memory_space<vmem>>, %arg7: memref<2x1xf32, #tpu.memory_space<vmem>>) attributes {dimension_semantics = [], scalar_prefetch = 0 : i64, scratch_operands = 0 : i64, tpu.core_type = #tpu.core_type<tc>} {
    %c0 = arith.constant 0 : index
    %c0_0 = arith.constant 0 : index
    %c0_1 = arith.constant 0 : index
    %0 = vector.load %arg0[%c0, %c0_0, %c0_1] : memref<4x8x32xf32, #tpu.memory_space<vmem>>, vector<4x8x32xf32>
    %1 = vector.shape_cast %0 : vector<4x8x32xf32> to vector<32x32xf32>
    %c0_2 = arith.constant 0 : index
    %c0_3 = arith.constant 0 : index
    %2 = vector.load %arg1[%c0_2, %c0_3] : memref<4x8xf32, #tpu.memory_space<vmem>>, vector<4x8xf32>
    %cst = arith.constant 1.000000e+00 : f32
    %3 = vector.broadcast %cst : f32 to vector<4x8xf32>
    %4 = arith.subf %3, %2 : vector<4x8xf32>
    %cst_4 = arith.constant -1.000000e+04 : f32
    %5 = vector.broadcast %cst_4 : f32 to vector<4x8xf32>
    %6 = arith.mulf %4, %5 : vector<4x8xf32>
    %7 = vector.shape_cast %6 : vector<4x8xf32> to vector<4x1x8xf32>
    %8 = vector.shape_cast %7 : vector<4x1x8xf32> to vector<4x1x8xf32>
    %9 = vector.broadcast %8 : vector<4x1x8xf32> to vector<4x8x8xf32>
    %c0_5 = arith.constant 0 : index
    %c0_6 = arith.constant 0 : index
    %c0_7 = arith.constant 0 : index
    %10 = vector.load %arg6[%c0_5, %c0_6, %c0_7] : memref<2x10x64xf32, #tpu.memory_space<vmem>>, vector<1x10x64xf32>
    %11 = vector.shape_cast %10 : vector<1x10x64xf32> to vector<10x64xf32>
    %12 = vector.extract_strided_slice %11 {offsets = [0, 0], sizes = [1, 32], strides = [1, 1]} : vector<10x64xf32> to vector<1x32xf32>
    %13 = vector.extract_strided_slice %11 {offsets = [1, 0], sizes = [1, 32], strides = [1, 1]} : vector<10x64xf32> to vector<1x32xf32>
    %14 = vector.extract_strided_slice %11 {offsets = [2, 0], sizes = [1, 32], strides = [1, 1]} : vector<10x64xf32> to vector<1x32xf32>
    %15 = vector.extract_strided_slice %11 {offsets = [3, 0], sizes = [1, 32], strides = [1, 1]} : vector<10x64xf32> to vector<1x32xf32>
    %16 = vector.extract_strided_slice %11 {offsets = [4, 0], sizes = [1, 32], strides = [1, 1]} : vector<10x64xf32> to vector<1x32xf32>
    %17 = vector.extract_strided_slice %11 {offsets = [5, 0], sizes = [1, 32], strides = [1, 1]} : vector<10x64xf32> to vector<1x32xf32>
    %18 = vector.extract_strided_slice %11 {offsets = [6, 0], sizes = [1, 32], strides = [1, 1]} : vector<10x64xf32> to vector<1x32xf32>
    %19 = vector.extract_strided_slice %11 {offsets = [7, 0], sizes = [1, 32], strides = [1, 1]} : vector<10x64xf32> to vector<1x32xf32>
    %20 = vector.extract_strided_slice %11 {offsets = [8, 0], sizes = [1, 32], strides = [1, 1]} : vector<10x64xf32> to vector<1x32xf32>
    %21 = vector.extract_strided_slice %11 {offsets = [9, 0], sizes = [1, 64], strides = [1, 1]} : vector<10x64xf32> to vector<1x64xf32>
    %c0_8 = arith.constant 0 : index
    %c0_9 = arith.constant 0 : index
    %c0_10 = arith.constant 0 : index
    %c0_11 = arith.constant 0 : index
    %22 = vector.load %arg2[%c0_8, %c0_9, %c0_10, %c0_11] : memref<2x3x32x32xf32, #tpu.memory_space<vmem>>, vector<1x1x32x32xf32>
    %23 = vector.shape_cast %22 : vector<1x1x32x32xf32> to vector<32x32xf32>
    %cst_12 = arith.constant dense<0.000000e+00> : vector<32x32xf32>
    %24 = tpu.matmul %1, %23, %cst_12 {dimension_numbers = #tpu.dot_dimension_numbers<[1], [0], [0], [1], [0, 0, 1, 1], [], []>} : vector<32x32xf32>, vector<32x32xf32>, vector<32x32xf32> -> vector<32x32xf32>
    %25 = vector.broadcast %12 : vector<1x32xf32> to vector<32x32xf32>
    %26 = arith.addf %24, %25 : vector<32x32xf32>
    %27 = vector.shape_cast %26 : vector<32x32xf32> to vector<4x8x32xf32>
    %c0_13 = arith.constant 0 : index
    %c1 = arith.constant 1 : index
    %c0_14 = arith.constant 0 : index
    %c0_15 = arith.constant 0 : index
    %28 = vector.load %arg2[%c0_13, %c1, %c0_14, %c0_15] : memref<2x3x32x32xf32, #tpu.memory_space<vmem>>, vector<1x1x32x32xf32>
    %29 = vector.shape_cast %28 : vector<1x1x32x32xf32> to vector<32x32xf32>
    %cst_16 = arith.constant dense<0.000000e+00> : vector<32x32xf32>
    %30 = tpu.matmul %1, %29, %cst_16 {dimension_numbers = #tpu.dot_dimension_numbers<[1], [0], [0], [1], [0, 0, 1, 1], [], []>} : vector<32x32xf32>, vector<32x32xf32>, vector<32x32xf32> -> vector<32x32xf32>
    %31 = vector.broadcast %13 : vector<1x32xf32> to vector<32x32xf32>
    %32 = arith.addf %30, %31 : vector<32x32xf32>
    %33 = vector.shape_cast %32 : vector<32x32xf32> to vector<4x8x32xf32>
    %c0_17 = arith.constant 0 : index
    %c2 = arith.constant 2 : index
    %c0_18 = arith.constant 0 : index
    %c0_19 = arith.constant 0 : index
    %34 = vector.load %arg2[%c0_17, %c2, %c0_18, %c0_19] : memref<2x3x32x32xf32, #tpu.memory_space<vmem>>, vector<1x1x32x32xf32>
    %35 = vector.shape_cast %34 : vector<1x1x32x32xf32> to vector<32x32xf32>
    %cst_20 = arith.constant dense<0.000000e+00> : vector<32x32xf32>
    %36 = tpu.matmul %1, %35, %cst_20 {dimension_numbers = #tpu.dot_dimension_numbers<[1], [0], [0], [1], [0, 0, 1, 1], [], []>} : vector<32x32xf32>, vector<32x32xf32>, vector<32x32xf32> -> vector<32x32xf32>
    %37 = vector.broadcast %14 : vector<1x32xf32> to vector<32x32xf32>
    %38 = arith.addf %36, %37 : vector<32x32xf32>
    %39 = vector.shape_cast %38 : vector<32x32xf32> to vector<4x8x32xf32>
    %40 = vector.extract_strided_slice %27 {offsets = [0, 0, 0], sizes = [4, 8, 8], strides = [1, 1, 1]} : vector<4x8x32xf32> to vector<4x8x8xf32>
    %41 = vector.extract_strided_slice %33 {offsets = [0, 0, 0], sizes = [4, 8, 8], strides = [1, 1, 1]} : vector<4x8x32xf32> to vector<4x8x8xf32>
    %42 = vector.extract_strided_slice %39 {offsets = [0, 0, 0], sizes = [4, 8, 8], strides = [1, 1, 1]} : vector<4x8x32xf32> to vector<4x8x8xf32>
    "tpu.trace_start"() <{level = 10 : i32, message = "bqd,bkd->bqk"}> : () -> ()
    %cst_21 = arith.constant dense<0.000000e+00> : vector<4x8x8xf32>
    %43 = tpu.matmul %40, %41, %cst_21 {dimension_numbers = #tpu.dot_dimension_numbers<[2], [2], [1], [1], [0, 0, 0, 1, 1, 1], [0], [0]>} : vector<4x8x8xf32>, vector<4x8x8xf32>, vector<4x8x8xf32> -> vector<4x8x8xf32>
    "tpu.trace_stop"() : () -> ()
    %cst_22 = arith.constant 0.353553385 : f32
    %44 = vector.broadcast %cst_22 : f32 to vector<4x8x8xf32>
    %45 = arith.mulf %43, %44 : vector<4x8x8xf32>
    %46 = arith.addf %45, %9 : vector<4x8x8xf32>
    %cst_23 = arith.constant dense<0xFF800000> : vector<4x8xf32>
    %47 = vector.multi_reduction <maximumf>, %46, %cst_23 [2] : vector<4x8x8xf32> to vector<4x8xf32>
    %cst_24 = arith.constant 0xFF800000 : f32
    %48 = vector.broadcast %cst_24 : f32 to vector<4x8xf32>
    %49 = arith.maximumf %48, %47 : vector<4x8xf32>
    %50 = vector.shape_cast %49 : vector<4x8xf32> to vector<4x8x1xf32>
    %51 = vector.broadcast %50 : vector<4x8x1xf32> to vector<4x8x8xf32>
    %52 = arith.subf %46, %51 : vector<4x8x8xf32>
    %53 = math.exp %52 : vector<4x8x8xf32>
    %cst_25 = arith.constant dense<0.000000e+00> : vector<4x8xf32>
    %54 = vector.multi_reduction <add>, %53, %cst_25 [2] : vector<4x8x8xf32> to vector<4x8xf32>
    %55 = vector.shape_cast %54 : vector<4x8xf32> to vector<4x8x1xf32>
    %56 = vector.broadcast %55 : vector<4x8x1xf32> to vector<4x8x8xf32>
    %57 = arith.divf %53, %56 : vector<4x8x8xf32>
    "tpu.trace_start"() <{level = 10 : i32, message = "bqk,bkd->bqd"}> : () -> ()
    %cst_26 = arith.constant dense<0.000000e+00> : vector<4x8x8xf32>
    %58 = tpu.matmul %57, %42, %cst_26 {dimension_numbers = #tpu.dot_dimension_numbers<[2], [1], [1], [2], [0, 0, 0, 1, 1, 2], [0], [0]>} : vector<4x8x8xf32>, vector<4x8x8xf32>, vector<4x8x8xf32> -> vector<4x8x8xf32>
    "tpu.trace_stop"() : () -> ()
    %59 = vector.extract_strided_slice %27 {offsets = [0, 0, 8], sizes = [4, 8, 8], strides = [1, 1, 1]} : vector<4x8x32xf32> to vector<4x8x8xf32>
    %60 = vector.extract_strided_slice %33 {offsets = [0, 0, 8], sizes = [4, 8, 8], strides = [1, 1, 1]} : vector<4x8x32xf32> to vector<4x8x8xf32>
    %61 = vector.extract_strided_slice %39 {offsets = [0, 0, 8], sizes = [4, 8, 8], strides = [1, 1, 1]} : vector<4x8x32xf32> to vector<4x8x8xf32>
    "tpu.trace_start"() <{level = 10 : i32, message = "bqd,bkd->bqk"}> : () -> ()
    %cst_27 = arith.constant dense<0.000000e+00> : vector<4x8x8xf32>
    %62 = tpu.matmul %59, %60, %cst_27 {dimension_numbers = #tpu.dot_dimension_numbers<[2], [2], [1], [1], [0, 0, 0, 1, 1, 1], [0], [0]>} : vector<4x8x8xf32>, vector<4x8x8xf32>, vector<4x8x8xf32> -> vector<4x8x8xf32>
    "tpu.trace_stop"() : () -> ()
    %cst_28 = arith.constant 0.353553385 : f32
    %63 = vector.broadcast %cst_28 : f32 to vector<4x8x8xf32>
    %64 = arith.mulf %62, %63 : vector<4x8x8xf32>
    %65 = arith.addf %64, %9 : vector<4x8x8xf32>
    %cst_29 = arith.constant dense<0xFF800000> : vector<4x8xf32>
    %66 = vector.multi_reduction <maximumf>, %65, %cst_29 [2] : vector<4x8x8xf32> to vector<4x8xf32>
    %cst_30 = arith.constant 0xFF800000 : f32
    %67 = vector.broadcast %cst_30 : f32 to vector<4x8xf32>
    %68 = arith.maximumf %67, %66 : vector<4x8xf32>
    %69 = vector.shape_cast %68 : vector<4x8xf32> to vector<4x8x1xf32>
    %70 = vector.broadcast %69 : vector<4x8x1xf32> to vector<4x8x8xf32>
    %71 = arith.subf %65, %70 : vector<4x8x8xf32>
    %72 = math.exp %71 : vector<4x8x8xf32>
    %cst_31 = arith.constant dense<0.000000e+00> : vector<4x8xf32>
    %73 = vector.multi_reduction <add>, %72, %cst_31 [2] : vector<4x8x8xf32> to vector<4x8xf32>
    %74 = vector.shape_cast %73 : vector<4x8xf32> to vector<4x8x1xf32>
    %75 = vector.broadcast %74 : vector<4x8x1xf32> to vector<4x8x8xf32>
    %76 = arith.divf %72, %75 : vector<4x8x8xf32>
    "tpu.trace_start"() <{level = 10 : i32, message = "bqk,bkd->bqd"}> : () -> ()
    %cst_32 = arith.constant dense<0.000000e+00> : vector<4x8x8xf32>
    %77 = tpu.matmul %76, %61, %cst_32 {dimension_numbers = #tpu.dot_dimension_numbers<[2], [1], [1], [2], [0, 0, 0, 1, 1, 2], [0], [0]>} : vector<4x8x8xf32>, vector<4x8x8xf32>, vector<4x8x8xf32> -> vector<4x8x8xf32>
    "tpu.trace_stop"() : () -> ()
    %78 = vector.extract_strided_slice %27 {offsets = [0, 0, 16], sizes = [4, 8, 8], strides = [1, 1, 1]} : vector<4x8x32xf32> to vector<4x8x8xf32>
    %79 = vector.extract_strided_slice %33 {offsets = [0, 0, 16], sizes = [4, 8, 8], strides = [1, 1, 1]} : vector<4x8x32xf32> to vector<4x8x8xf32>
    %80 = vector.extract_strided_slice %39 {offsets = [0, 0, 16], sizes = [4, 8, 8], strides = [1, 1, 1]} : vector<4x8x32xf32> to vector<4x8x8xf32>
    "tpu.trace_start"() <{level = 10 : i32, message = "bqd,bkd->bqk"}> : () -> ()
    %cst_33 = arith.constant dense<0.000000e+00> : vector<4x8x8xf32>
    %81 = tpu.matmul %78, %79, %cst_33 {dimension_numbers = #tpu.dot_dimension_numbers<[2], [2], [1], [1], [0, 0, 0, 1, 1, 1], [0], [0]>} : vector<4x8x8xf32>, vector<4x8x8xf32>, vector<4x8x8xf32> -> vector<4x8x8xf32>
    "tpu.trace_stop"() : () -> ()
    %cst_34 = arith.constant 0.353553385 : f32
    %82 = vector.broadcast %cst_34 : f32 to vector<4x8x8xf32>
    %83 = arith.mulf %81, %82 : vector<4x8x8xf32>
    %84 = arith.addf %83, %9 : vector<4x8x8xf32>
    %cst_35 = arith.constant dense<0xFF800000> : vector<4x8xf32>
    %85 = vector.multi_reduction <maximumf>, %84, %cst_35 [2] : vector<4x8x8xf32> to vector<4x8xf32>
    %cst_36 = arith.constant 0xFF800000 : f32
    %86 = vector.broadcast %cst_36 : f32 to vector<4x8xf32>
    %87 = arith.maximumf %86, %85 : vector<4x8xf32>
    %88 = vector.shape_cast %87 : vector<4x8xf32> to vector<4x8x1xf32>
    %89 = vector.broadcast %88 : vector<4x8x1xf32> to vector<4x8x8xf32>
    %90 = arith.subf %84, %89 : vector<4x8x8xf32>
    %91 = math.exp %90 : vector<4x8x8xf32>
    %cst_37 = arith.constant dense<0.000000e+00> : vector<4x8xf32>
    %92 = vector.multi_reduction <add>, %91, %cst_37 [2] : vector<4x8x8xf32> to vector<4x8xf32>
    %93 = vector.shape_cast %92 : vector<4x8xf32> to vector<4x8x1xf32>
    %94 = vector.broadcast %93 : vector<4x8x1xf32> to vector<4x8x8xf32>
    %95 = arith.divf %91, %94 : vector<4x8x8xf32>
    "tpu.trace_start"() <{level = 10 : i32, message = "bqk,bkd->bqd"}> : () -> ()
    %cst_38 = arith.constant dense<0.000000e+00> : vector<4x8x8xf32>
    %96 = tpu.matmul %95, %80, %cst_38 {dimension_numbers = #tpu.dot_dimension_numbers<[2], [1], [1], [2], [0, 0, 0, 1, 1, 2], [0], [0]>} : vector<4x8x8xf32>, vector<4x8x8xf32>, vector<4x8x8xf32> -> vector<4x8x8xf32>
    "tpu.trace_stop"() : () -> ()
    %97 = vector.extract_strided_slice %27 {offsets = [0, 0, 24], sizes = [4, 8, 8], strides = [1, 1, 1]} : vector<4x8x32xf32> to vector<4x8x8xf32>
    %98 = vector.extract_strided_slice %33 {offsets = [0, 0, 24], sizes = [4, 8, 8], strides = [1, 1, 1]} : vector<4x8x32xf32> to vector<4x8x8xf32>
    %99 = vector.extract_strided_slice %39 {offsets = [0, 0, 24], sizes = [4, 8, 8], strides = [1, 1, 1]} : vector<4x8x32xf32> to vector<4x8x8xf32>
    "tpu.trace_start"() <{level = 10 : i32, message = "bqd,bkd->bqk"}> : () -> ()
    %cst_39 = arith.constant dense<0.000000e+00> : vector<4x8x8xf32>
    %100 = tpu.matmul %97, %98, %cst_39 {dimension_numbers = #tpu.dot_dimension_numbers<[2], [2], [1], [1], [0, 0, 0, 1, 1, 1], [0], [0]>} : vector<4x8x8xf32>, vector<4x8x8xf32>, vector<4x8x8xf32> -> vector<4x8x8xf32>
    "tpu.trace_stop"() : () -> ()
    %cst_40 = arith.constant 0.353553385 : f32
    %101 = vector.broadcast %cst_40 : f32 to vector<4x8x8xf32>
    %102 = arith.mulf %100, %101 : vector<4x8x8xf32>
    %103 = arith.addf %102, %9 : vector<4x8x8xf32>
    %cst_41 = arith.constant dense<0xFF800000> : vector<4x8xf32>
    %104 = vector.multi_reduction <maximumf>, %103, %cst_41 [2] : vector<4x8x8xf32> to vector<4x8xf32>
    %cst_42 = arith.constant 0xFF800000 : f32
    %105 = vector.broadcast %cst_42 : f32 to vector<4x8xf32>
    %106 = arith.maximumf %105, %104 : vector<4x8xf32>
    %107 = vector.shape_cast %106 : vector<4x8xf32> to vector<4x8x1xf32>
    %108 = vector.broadcast %107 : vector<4x8x1xf32> to vector<4x8x8xf32>
    %109 = arith.subf %103, %108 : vector<4x8x8xf32>
    %110 = math.exp %109 : vector<4x8x8xf32>
    %cst_43 = arith.constant dense<0.000000e+00> : vector<4x8xf32>
    %111 = vector.multi_reduction <add>, %110, %cst_43 [2] : vector<4x8x8xf32> to vector<4x8xf32>
    %112 = vector.shape_cast %111 : vector<4x8xf32> to vector<4x8x1xf32>
    %113 = vector.broadcast %112 : vector<4x8x1xf32> to vector<4x8x8xf32>
    %114 = arith.divf %110, %113 : vector<4x8x8xf32>
    "tpu.trace_start"() <{level = 10 : i32, message = "bqk,bkd->bqd"}> : () -> ()
    %cst_44 = arith.constant dense<0.000000e+00> : vector<4x8x8xf32>
    %115 = tpu.matmul %114, %99, %cst_44 {dimension_numbers = #tpu.dot_dimension_numbers<[2], [1], [1], [2], [0, 0, 0, 1, 1, 2], [0], [0]>} : vector<4x8x8xf32>, vector<4x8x8xf32>, vector<4x8x8xf32> -> vector<4x8x8xf32>
    "tpu.trace_stop"() : () -> ()
    %116 = tpu.concatenate %58, %77, %96, %115 in 2 : vector<4x8x8xf32>, vector<4x8x8xf32>, vector<4x8x8xf32>, vector<4x8x8xf32> -> vector<4x8x32xf32>
    %117 = vector.shape_cast %116 : vector<4x8x32xf32> to vector<32x32xf32>
    %c0_45 = arith.constant 0 : index
    %c0_46 = arith.constant 0 : index
    %c0_47 = arith.constant 0 : index
    %118 = vector.load %arg3[%c0_45, %c0_46, %c0_47] : memref<2x32x32xf32, #tpu.memory_space<vmem>>, vector<1x32x32xf32>
    %119 = vector.shape_cast %118 : vector<1x32x32xf32> to vector<32x32xf32>
    %cst_48 = arith.constant dense<0.000000e+00> : vector<32x32xf32>
    %120 = tpu.matmul %117, %119, %cst_48 {dimension_numbers = #tpu.dot_dimension_numbers<[1], [0], [0], [1], [0, 0, 1, 1], [], []>} : vector<32x32xf32>, vector<32x32xf32>, vector<32x32xf32> -> vector<32x32xf32>
    %121 = vector.broadcast %15 : vector<1x32xf32> to vector<32x32xf32>
    %122 = arith.addf %120, %121 : vector<32x32xf32>
    %123 = arith.addf %1, %122 : vector<32x32xf32>
    %cst_49 = arith.constant dense<0.000000e+00> : vector<32xf32>
    %124 = vector.multi_reduction <add>, %123, %cst_49 [1] : vector<32x32xf32> to vector<32xf32>
    %125 = vector.shape_cast %124 : vector<32xf32> to vector<32x1xf32>
    %cst_50 = arith.constant 3.200000e+01 : f32
    %126 = vector.broadcast %cst_50 : f32 to vector<32x1xf32>
    %127 = arith.divf %125, %126 : vector<32x1xf32>
    %128 = vector.broadcast %127 : vector<32x1xf32> to vector<32x32xf32>
    %129 = arith.subf %123, %128 : vector<32x32xf32>
    %130 = arith.mulf %129, %129 : vector<32x32xf32>
    %cst_51 = arith.constant dense<0.000000e+00> : vector<32xf32>
    %131 = vector.multi_reduction <add>, %130, %cst_51 [1] : vector<32x32xf32> to vector<32xf32>
    %132 = vector.shape_cast %131 : vector<32xf32> to vector<32x1xf32>
    %cst_52 = arith.constant 3.200000e+01 : f32
    %133 = vector.broadcast %cst_52 : f32 to vector<32x1xf32>
    %134 = arith.divf %132, %133 : vector<32x1xf32>
    %135 = vector.broadcast %127 : vector<32x1xf32> to vector<32x32xf32>
    %136 = arith.subf %123, %135 : vector<32x32xf32>
    %cst_53 = arith.constant 9.99999996E-13 : f32
    %137 = vector.broadcast %cst_53 : f32 to vector<32x1xf32>
    %138 = arith.addf %134, %137 : vector<32x1xf32>
    %139 = math.rsqrt %138 : vector<32x1xf32>
    %140 = vector.broadcast %139 : vector<32x1xf32> to vector<32x32xf32>
    %141 = arith.mulf %136, %140 : vector<32x32xf32>
    %142 = vector.broadcast %17 : vector<1x32xf32> to vector<32x32xf32>
    %143 = arith.mulf %141, %142 : vector<32x32xf32>
    %144 = vector.broadcast %18 : vector<1x32xf32> to vector<32x32xf32>
    %145 = arith.addf %143, %144 : vector<32x32xf32>
    %c0_54 = arith.constant 0 : index
    %c0_55 = arith.constant 0 : index
    %c0_56 = arith.constant 0 : index
    %146 = vector.load %arg4[%c0_54, %c0_55, %c0_56] : memref<2x32x64xf32, #tpu.memory_space<vmem>>, vector<1x32x64xf32>
    %147 = vector.shape_cast %146 : vector<1x32x64xf32> to vector<32x64xf32>
    %cst_57 = arith.constant dense<0.000000e+00> : vector<32x64xf32>
    %148 = tpu.matmul %145, %147, %cst_57 {dimension_numbers = #tpu.dot_dimension_numbers<[1], [0], [0], [1], [0, 0, 1, 1], [], []>} : vector<32x32xf32>, vector<32x64xf32>, vector<32x64xf32> -> vector<32x64xf32>
    %149 = vector.broadcast %21 : vector<1x64xf32> to vector<32x64xf32>
    %150 = arith.addf %148, %149 : vector<32x64xf32>
    %151 = arith.mulf %150, %150 : vector<32x64xf32>
    %152 = arith.mulf %150, %151 : vector<32x64xf32>
    %cst_58 = arith.constant 4.471500e-02 : f32
    %153 = vector.broadcast %cst_58 : f32 to vector<32x64xf32>
    %154 = arith.mulf %153, %152 : vector<32x64xf32>
    %155 = arith.addf %150, %154 : vector<32x64xf32>
    %cst_59 = arith.constant 0.797884583 : f32
    %156 = vector.broadcast %cst_59 : f32 to vector<32x64xf32>
    %157 = arith.mulf %156, %155 : vector<32x64xf32>
    %158 = math.tanh %157 : vector<32x64xf32>
    %cst_60 = arith.constant 1.000000e+00 : f32
    %159 = vector.broadcast %cst_60 : f32 to vector<32x64xf32>
    %160 = arith.addf %159, %158 : vector<32x64xf32>
    %cst_61 = arith.constant 5.000000e-01 : f32
    %161 = vector.broadcast %cst_61 : f32 to vector<32x64xf32>
    %162 = arith.mulf %161, %160 : vector<32x64xf32>
    %163 = arith.mulf %150, %162 : vector<32x64xf32>
    %c0_62 = arith.constant 0 : index
    %c0_63 = arith.constant 0 : index
    %c0_64 = arith.constant 0 : index
    %164 = vector.load %arg5[%c0_62, %c0_63, %c0_64] : memref<2x64x32xf32, #tpu.memory_space<vmem>>, vector<1x64x32xf32>
    %165 = vector.shape_cast %164 : vector<1x64x32xf32> to vector<64x32xf32>
    %cst_65 = arith.constant dense<0.000000e+00> : vector<32x32xf32>
    %166 = tpu.matmul %163, %165, %cst_65 {dimension_numbers = #tpu.dot_dimension_numbers<[1], [0], [0], [1], [0, 0, 1, 1], [], []>} : vector<32x64xf32>, vector<64x32xf32>, vector<32x32xf32> -> vector<32x32xf32>
    %167 = vector.broadcast %16 : vector<1x32xf32> to vector<32x32xf32>
    %168 = arith.addf %166, %167 : vector<32x32xf32>
    %169 = arith.addf %145, %168 : vector<32x32xf32>
    %cst_66 = arith.constant dense<0.000000e+00> : vector<32xf32>
    %170 = vector.multi_reduction <add>, %169, %cst_66 [1] : vector<32x32xf32> to vector<32xf32>
    %171 = vector.shape_cast %170 : vector<32xf32> to vector<32x1xf32>
    %cst_67 = arith.constant 3.200000e+01 : f32
    %172 = vector.broadcast %cst_67 : f32 to vector<32x1xf32>
    %173 = arith.divf %171, %172 : vector<32x1xf32>
    %174 = vector.broadcast %173 : vector<32x1xf32> to vector<32x32xf32>
    %175 = arith.subf %169, %174 : vector<32x32xf32>
    %176 = arith.mulf %175, %175 : vector<32x32xf32>
    %cst_68 = arith.constant dense<0.000000e+00> : vector<32xf32>
    %177 = vector.multi_reduction <add>, %176, %cst_68 [1] : vector<32x32xf32> to vector<32xf32>
    %178 = vector.shape_cast %177 : vector<32xf32> to vector<32x1xf32>
    %cst_69 = arith.constant 3.200000e+01 : f32
    %179 = vector.broadcast %cst_69 : f32 to vector<32x1xf32>
    %180 = arith.divf %178, %179 : vector<32x1xf32>
    %181 = vector.broadcast %173 : vector<32x1xf32> to vector<32x32xf32>
    %182 = arith.subf %169, %181 : vector<32x32xf32>
    %cst_70 = arith.constant 9.99999996E-13 : f32
    %183 = vector.broadcast %cst_70 : f32 to vector<32x1xf32>
    %184 = arith.addf %180, %183 : vector<32x1xf32>
    %185 = math.rsqrt %184 : vector<32x1xf32>
    %186 = vector.broadcast %185 : vector<32x1xf32> to vector<32x32xf32>
    %187 = arith.mulf %182, %186 : vector<32x32xf32>
    %188 = vector.broadcast %19 : vector<1x32xf32> to vector<32x32xf32>
    %189 = arith.mulf %187, %188 : vector<32x32xf32>
    %190 = vector.broadcast %20 : vector<1x32xf32> to vector<32x32xf32>
    %191 = arith.addf %189, %190 : vector<32x32xf32>
    %c1_71 = arith.constant 1 : index
    %c0_72 = arith.constant 0 : index
    %c0_73 = arith.constant 0 : index
    %192 = vector.load %arg6[%c1_71, %c0_72, %c0_73] : memref<2x10x64xf32, #tpu.memory_space<vmem>>, vector<1x10x64xf32>
    %193 = vector.shape_cast %192 : vector<1x10x64xf32> to vector<10x64xf32>
    %194 = vector.extract_strided_slice %193 {offsets = [0, 0], sizes = [1, 32], strides = [1, 1]} : vector<10x64xf32> to vector<1x32xf32>
    %195 = vector.extract_strided_slice %193 {offsets = [1, 0], sizes = [1, 32], strides = [1, 1]} : vector<10x64xf32> to vector<1x32xf32>
    %196 = vector.extract_strided_slice %193 {offsets = [2, 0], sizes = [1, 32], strides = [1, 1]} : vector<10x64xf32> to vector<1x32xf32>
    %197 = vector.extract_strided_slice %193 {offsets = [3, 0], sizes = [1, 32], strides = [1, 1]} : vector<10x64xf32> to vector<1x32xf32>
    %198 = vector.extract_strided_slice %193 {offsets = [4, 0], sizes = [1, 32], strides = [1, 1]} : vector<10x64xf32> to vector<1x32xf32>
    %199 = vector.extract_strided_slice %193 {offsets = [5, 0], sizes = [1, 32], strides = [1, 1]} : vector<10x64xf32> to vector<1x32xf32>
    %200 = vector.extract_strided_slice %193 {offsets = [6, 0], sizes = [1, 32], strides = [1, 1]} : vector<10x64xf32> to vector<1x32xf32>
    %201 = vector.extract_strided_slice %193 {offsets = [7, 0], sizes = [1, 32], strides = [1, 1]} : vector<10x64xf32> to vector<1x32xf32>
    %202 = vector.extract_strided_slice %193 {offsets = [8, 0], sizes = [1, 32], strides = [1, 1]} : vector<10x64xf32> to vector<1x32xf32>
    %203 = vector.extract_strided_slice %193 {offsets = [9, 0], sizes = [1, 64], strides = [1, 1]} : vector<10x64xf32> to vector<1x64xf32>
    %c1_74 = arith.constant 1 : index
    %c0_75 = arith.constant 0 : index
    %c0_76 = arith.constant 0 : index
    %c0_77 = arith.constant 0 : index
    %204 = vector.load %arg2[%c1_74, %c0_75, %c0_76, %c0_77] : memref<2x3x32x32xf32, #tpu.memory_space<vmem>>, vector<1x1x32x32xf32>
    %205 = vector.shape_cast %204 : vector<1x1x32x32xf32> to vector<32x32xf32>
    %cst_78 = arith.constant dense<0.000000e+00> : vector<32x32xf32>
    %206 = tpu.matmul %191, %205, %cst_78 {dimension_numbers = #tpu.dot_dimension_numbers<[1], [0], [0], [1], [0, 0, 1, 1], [], []>} : vector<32x32xf32>, vector<32x32xf32>, vector<32x32xf32> -> vector<32x32xf32>
    %207 = vector.broadcast %194 : vector<1x32xf32> to vector<32x32xf32>
    %208 = arith.addf %206, %207 : vector<32x32xf32>
    %209 = vector.shape_cast %208 : vector<32x32xf32> to vector<4x8x32xf32>
    %c1_79 = arith.constant 1 : index
    %c1_80 = arith.constant 1 : index
    %c0_81 = arith.constant 0 : index
    %c0_82 = arith.constant 0 : index
    %210 = vector.load %arg2[%c1_79, %c1_80, %c0_81, %c0_82] : memref<2x3x32x32xf32, #tpu.memory_space<vmem>>, vector<1x1x32x32xf32>
    %211 = vector.shape_cast %210 : vector<1x1x32x32xf32> to vector<32x32xf32>
    %cst_83 = arith.constant dense<0.000000e+00> : vector<32x32xf32>
    %212 = tpu.matmul %191, %211, %cst_83 {dimension_numbers = #tpu.dot_dimension_numbers<[1], [0], [0], [1], [0, 0, 1, 1], [], []>} : vector<32x32xf32>, vector<32x32xf32>, vector<32x32xf32> -> vector<32x32xf32>
    %213 = vector.broadcast %195 : vector<1x32xf32> to vector<32x32xf32>
    %214 = arith.addf %212, %213 : vector<32x32xf32>
    %215 = vector.shape_cast %214 : vector<32x32xf32> to vector<4x8x32xf32>
    %c1_84 = arith.constant 1 : index
    %c2_85 = arith.constant 2 : index
    %c0_86 = arith.constant 0 : index
    %c0_87 = arith.constant 0 : index
    %216 = vector.load %arg2[%c1_84, %c2_85, %c0_86, %c0_87] : memref<2x3x32x32xf32, #tpu.memory_space<vmem>>, vector<1x1x32x32xf32>
    %217 = vector.shape_cast %216 : vector<1x1x32x32xf32> to vector<32x32xf32>
    %cst_88 = arith.constant dense<0.000000e+00> : vector<32x32xf32>
    %218 = tpu.matmul %191, %217, %cst_88 {dimension_numbers = #tpu.dot_dimension_numbers<[1], [0], [0], [1], [0, 0, 1, 1], [], []>} : vector<32x32xf32>, vector<32x32xf32>, vector<32x32xf32> -> vector<32x32xf32>
    %219 = vector.broadcast %196 : vector<1x32xf32> to vector<32x32xf32>
    %220 = arith.addf %218, %219 : vector<32x32xf32>
    %221 = vector.shape_cast %220 : vector<32x32xf32> to vector<4x8x32xf32>
    %222 = vector.extract_strided_slice %209 {offsets = [0, 0, 0], sizes = [4, 8, 8], strides = [1, 1, 1]} : vector<4x8x32xf32> to vector<4x8x8xf32>
    %223 = vector.extract_strided_slice %215 {offsets = [0, 0, 0], sizes = [4, 8, 8], strides = [1, 1, 1]} : vector<4x8x32xf32> to vector<4x8x8xf32>
    %224 = vector.extract_strided_slice %221 {offsets = [0, 0, 0], sizes = [4, 8, 8], strides = [1, 1, 1]} : vector<4x8x32xf32> to vector<4x8x8xf32>
    "tpu.trace_start"() <{level = 10 : i32, message = "bqd,bkd->bqk"}> : () -> ()
    %cst_89 = arith.constant dense<0.000000e+00> : vector<4x8x8xf32>
    %225 = tpu.matmul %222, %223, %cst_89 {dimension_numbers = #tpu.dot_dimension_numbers<[2], [2], [1], [1], [0, 0, 0, 1, 1, 1], [0], [0]>} : vector<4x8x8xf32>, vector<4x8x8xf32>, vector<4x8x8xf32> -> vector<4x8x8xf32>
    "tpu.trace_stop"() : () -> ()
    %cst_90 = arith.constant 0.353553385 : f32
    %226 = vector.broadcast %cst_90 : f32 to vector<4x8x8xf32>
    %227 = arith.mulf %225, %226 : vector<4x8x8xf32>
    %228 = arith.addf %227, %9 : vector<4x8x8xf32>
    %cst_91 = arith.constant dense<0xFF800000> : vector<4x8xf32>
    %229 = vector.multi_reduction <maximumf>, %228, %cst_91 [2] : vector<4x8x8xf32> to vector<4x8xf32>
    %cst_92 = arith.constant 0xFF800000 : f32
    %230 = vector.broadcast %cst_92 : f32 to vector<4x8xf32>
    %231 = arith.maximumf %230, %229 : vector<4x8xf32>
    %232 = vector.shape_cast %231 : vector<4x8xf32> to vector<4x8x1xf32>
    %233 = vector.broadcast %232 : vector<4x8x1xf32> to vector<4x8x8xf32>
    %234 = arith.subf %228, %233 : vector<4x8x8xf32>
    %235 = math.exp %234 : vector<4x8x8xf32>
    %cst_93 = arith.constant dense<0.000000e+00> : vector<4x8xf32>
    %236 = vector.multi_reduction <add>, %235, %cst_93 [2] : vector<4x8x8xf32> to vector<4x8xf32>
    %237 = vector.shape_cast %236 : vector<4x8xf32> to vector<4x8x1xf32>
    %238 = vector.broadcast %237 : vector<4x8x1xf32> to vector<4x8x8xf32>
    %239 = arith.divf %235, %238 : vector<4x8x8xf32>
    "tpu.trace_start"() <{level = 10 : i32, message = "bqk,bkd->bqd"}> : () -> ()
    %cst_94 = arith.constant dense<0.000000e+00> : vector<4x8x8xf32>
    %240 = tpu.matmul %239, %224, %cst_94 {dimension_numbers = #tpu.dot_dimension_numbers<[2], [1], [1], [2], [0, 0, 0, 1, 1, 2], [0], [0]>} : vector<4x8x8xf32>, vector<4x8x8xf32>, vector<4x8x8xf32> -> vector<4x8x8xf32>
    "tpu.trace_stop"() : () -> ()
    %241 = vector.extract_strided_slice %209 {offsets = [0, 0, 8], sizes = [4, 8, 8], strides = [1, 1, 1]} : vector<4x8x32xf32> to vector<4x8x8xf32>
    %242 = vector.extract_strided_slice %215 {offsets = [0, 0, 8], sizes = [4, 8, 8], strides = [1, 1, 1]} : vector<4x8x32xf32> to vector<4x8x8xf32>
    %243 = vector.extract_strided_slice %221 {offsets = [0, 0, 8], sizes = [4, 8, 8], strides = [1, 1, 1]} : vector<4x8x32xf32> to vector<4x8x8xf32>
    "tpu.trace_start"() <{level = 10 : i32, message = "bqd,bkd->bqk"}> : () -> ()
    %cst_95 = arith.constant dense<0.000000e+00> : vector<4x8x8xf32>
    %244 = tpu.matmul %241, %242, %cst_95 {dimension_numbers = #tpu.dot_dimension_numbers<[2], [2], [1], [1], [0, 0, 0, 1, 1, 1], [0], [0]>} : vector<4x8x8xf32>, vector<4x8x8xf32>, vector<4x8x8xf32> -> vector<4x8x8xf32>
    "tpu.trace_stop"() : () -> ()
    %cst_96 = arith.constant 0.353553385 : f32
    %245 = vector.broadcast %cst_96 : f32 to vector<4x8x8xf32>
    %246 = arith.mulf %244, %245 : vector<4x8x8xf32>
    %247 = arith.addf %246, %9 : vector<4x8x8xf32>
    %cst_97 = arith.constant dense<0xFF800000> : vector<4x8xf32>
    %248 = vector.multi_reduction <maximumf>, %247, %cst_97 [2] : vector<4x8x8xf32> to vector<4x8xf32>
    %cst_98 = arith.constant 0xFF800000 : f32
    %249 = vector.broadcast %cst_98 : f32 to vector<4x8xf32>
    %250 = arith.maximumf %249, %248 : vector<4x8xf32>
    %251 = vector.shape_cast %250 : vector<4x8xf32> to vector<4x8x1xf32>
    %252 = vector.broadcast %251 : vector<4x8x1xf32> to vector<4x8x8xf32>
    %253 = arith.subf %247, %252 : vector<4x8x8xf32>
    %254 = math.exp %253 : vector<4x8x8xf32>
    %cst_99 = arith.constant dense<0.000000e+00> : vector<4x8xf32>
    %255 = vector.multi_reduction <add>, %254, %cst_99 [2] : vector<4x8x8xf32> to vector<4x8xf32>
    %256 = vector.shape_cast %255 : vector<4x8xf32> to vector<4x8x1xf32>
    %257 = vector.broadcast %256 : vector<4x8x1xf32> to vector<4x8x8xf32>
    %258 = arith.divf %254, %257 : vector<4x8x8xf32>
    "tpu.trace_start"() <{level = 10 : i32, message = "bqk,bkd->bqd"}> : () -> ()
    %cst_100 = arith.constant dense<0.000000e+00> : vector<4x8x8xf32>
    %259 = tpu.matmul %258, %243, %cst_100 {dimension_numbers = #tpu.dot_dimension_numbers<[2], [1], [1], [2], [0, 0, 0, 1, 1, 2], [0], [0]>} : vector<4x8x8xf32>, vector<4x8x8xf32>, vector<4x8x8xf32> -> vector<4x8x8xf32>
    "tpu.trace_stop"() : () -> ()
    %260 = vector.extract_strided_slice %209 {offsets = [0, 0, 16], sizes = [4, 8, 8], strides = [1, 1, 1]} : vector<4x8x32xf32> to vector<4x8x8xf32>
    %261 = vector.extract_strided_slice %215 {offsets = [0, 0, 16], sizes = [4, 8, 8], strides = [1, 1, 1]} : vector<4x8x32xf32> to vector<4x8x8xf32>
    %262 = vector.extract_strided_slice %221 {offsets = [0, 0, 16], sizes = [4, 8, 8], strides = [1, 1, 1]} : vector<4x8x32xf32> to vector<4x8x8xf32>
    "tpu.trace_start"() <{level = 10 : i32, message = "bqd,bkd->bqk"}> : () -> ()
    %cst_101 = arith.constant dense<0.000000e+00> : vector<4x8x8xf32>
    %263 = tpu.matmul %260, %261, %cst_101 {dimension_numbers = #tpu.dot_dimension_numbers<[2], [2], [1], [1], [0, 0, 0, 1, 1, 1], [0], [0]>} : vector<4x8x8xf32>, vector<4x8x8xf32>, vector<4x8x8xf32> -> vector<4x8x8xf32>
    "tpu.trace_stop"() : () -> ()
    %cst_102 = arith.constant 0.353553385 : f32
    %264 = vector.broadcast %cst_102 : f32 to vector<4x8x8xf32>
    %265 = arith.mulf %263, %264 : vector<4x8x8xf32>
    %266 = arith.addf %265, %9 : vector<4x8x8xf32>
    %cst_103 = arith.constant dense<0xFF800000> : vector<4x8xf32>
    %267 = vector.multi_reduction <maximumf>, %266, %cst_103 [2] : vector<4x8x8xf32> to vector<4x8xf32>
    %cst_104 = arith.constant 0xFF800000 : f32
    %268 = vector.broadcast %cst_104 : f32 to vector<4x8xf32>
    %269 = arith.maximumf %268, %267 : vector<4x8xf32>
    %270 = vector.shape_cast %269 : vector<4x8xf32> to vector<4x8x1xf32>
    %271 = vector.broadcast %270 : vector<4x8x1xf32> to vector<4x8x8xf32>
    %272 = arith.subf %266, %271 : vector<4x8x8xf32>
    %273 = math.exp %272 : vector<4x8x8xf32>
    %cst_105 = arith.constant dense<0.000000e+00> : vector<4x8xf32>
    %274 = vector.multi_reduction <add>, %273, %cst_105 [2] : vector<4x8x8xf32> to vector<4x8xf32>
    %275 = vector.shape_cast %274 : vector<4x8xf32> to vector<4x8x1xf32>
    %276 = vector.broadcast %275 : vector<4x8x1xf32> to vector<4x8x8xf32>
    %277 = arith.divf %273, %276 : vector<4x8x8xf32>
    "tpu.trace_start"() <{level = 10 : i32, message = "bqk,bkd->bqd"}> : () -> ()
    %cst_106 = arith.constant dense<0.000000e+00> : vector<4x8x8xf32>
    %278 = tpu.matmul %277, %262, %cst_106 {dimension_numbers = #tpu.dot_dimension_numbers<[2], [1], [1], [2], [0, 0, 0, 1, 1, 2], [0], [0]>} : vector<4x8x8xf32>, vector<4x8x8xf32>, vector<4x8x8xf32> -> vector<4x8x8xf32>
    "tpu.trace_stop"() : () -> ()
    %279 = vector.extract_strided_slice %209 {offsets = [0, 0, 24], sizes = [4, 8, 8], strides = [1, 1, 1]} : vector<4x8x32xf32> to vector<4x8x8xf32>
    %280 = vector.extract_strided_slice %215 {offsets = [0, 0, 24], sizes = [4, 8, 8], strides = [1, 1, 1]} : vector<4x8x32xf32> to vector<4x8x8xf32>
    %281 = vector.extract_strided_slice %221 {offsets = [0, 0, 24], sizes = [4, 8, 8], strides = [1, 1, 1]} : vector<4x8x32xf32> to vector<4x8x8xf32>
    "tpu.trace_start"() <{level = 10 : i32, message = "bqd,bkd->bqk"}> : () -> ()
    %cst_107 = arith.constant dense<0.000000e+00> : vector<4x8x8xf32>
    %282 = tpu.matmul %279, %280, %cst_107 {dimension_numbers = #tpu.dot_dimension_numbers<[2], [2], [1], [1], [0, 0, 0, 1, 1, 1], [0], [0]>} : vector<4x8x8xf32>, vector<4x8x8xf32>, vector<4x8x8xf32> -> vector<4x8x8xf32>
    "tpu.trace_stop"() : () -> ()
    %cst_108 = arith.constant 0.353553385 : f32
    %283 = vector.broadcast %cst_108 : f32 to vector<4x8x8xf32>
    %284 = arith.mulf %282, %283 : vector<4x8x8xf32>
    %285 = arith.addf %284, %9 : vector<4x8x8xf32>
    %cst_109 = arith.constant dense<0xFF800000> : vector<4x8xf32>
    %286 = vector.multi_reduction <maximumf>, %285, %cst_109 [2] : vector<4x8x8xf32> to vector<4x8xf32>
    %cst_110 = arith.constant 0xFF800000 : f32
    %287 = vector.broadcast %cst_110 : f32 to vector<4x8xf32>
    %288 = arith.maximumf %287, %286 : vector<4x8xf32>
    %289 = vector.shape_cast %288 : vector<4x8xf32> to vector<4x8x1xf32>
    %290 = vector.broadcast %289 : vector<4x8x1xf32> to vector<4x8x8xf32>
    %291 = arith.subf %285, %290 : vector<4x8x8xf32>
    %292 = math.exp %291 : vector<4x8x8xf32>
    %cst_111 = arith.constant dense<0.000000e+00> : vector<4x8xf32>
    %293 = vector.multi_reduction <add>, %292, %cst_111 [2] : vector<4x8x8xf32> to vector<4x8xf32>
    %294 = vector.shape_cast %293 : vector<4x8xf32> to vector<4x8x1xf32>
    %295 = vector.broadcast %294 : vector<4x8x1xf32> to vector<4x8x8xf32>
    %296 = arith.divf %292, %295 : vector<4x8x8xf32>
    "tpu.trace_start"() <{level = 10 : i32, message = "bqk,bkd->bqd"}> : () -> ()
    %cst_112 = arith.constant dense<0.000000e+00> : vector<4x8x8xf32>
    %297 = tpu.matmul %296, %281, %cst_112 {dimension_numbers = #tpu.dot_dimension_numbers<[2], [1], [1], [2], [0, 0, 0, 1, 1, 2], [0], [0]>} : vector<4x8x8xf32>, vector<4x8x8xf32>, vector<4x8x8xf32> -> vector<4x8x8xf32>
    "tpu.trace_stop"() : () -> ()
    %298 = tpu.concatenate %240, %259, %278, %297 in 2 : vector<4x8x8xf32>, vector<4x8x8xf32>, vector<4x8x8xf32>, vector<4x8x8xf32> -> vector<4x8x32xf32>
    %299 = vector.shape_cast %298 : vector<4x8x32xf32> to vector<32x32xf32>
    %c1_113 = arith.constant 1 : index
    %c0_114 = arith.constant 0 : index
    %c0_115 = arith.constant 0 : index
    %300 = vector.load %arg3[%c1_113, %c0_114, %c0_115] : memref<2x32x32xf32, #tpu.memory_space<vmem>>, vector<1x32x32xf32>
    %301 = vector.shape_cast %300 : vector<1x32x32xf32> to vector<32x32xf32>
    %cst_116 = arith.constant dense<0.000000e+00> : vector<32x32xf32>
    %302 = tpu.matmul %299, %301, %cst_116 {dimension_numbers = #tpu.dot_dimension_numbers<[1], [0], [0], [1], [0, 0, 1, 1], [], []>} : vector<32x32xf32>, vector<32x32xf32>, vector<32x32xf32> -> vector<32x32xf32>
    %303 = vector.broadcast %197 : vector<1x32xf32> to vector<32x32xf32>
    %304 = arith.addf %302, %303 : vector<32x32xf32>
    %305 = arith.addf %191, %304 : vector<32x32xf32>
    %cst_117 = arith.constant dense<0.000000e+00> : vector<32xf32>
    %306 = vector.multi_reduction <add>, %305, %cst_117 [1] : vector<32x32xf32> to vector<32xf32>
    %307 = vector.shape_cast %306 : vector<32xf32> to vector<32x1xf32>
    %cst_118 = arith.constant 3.200000e+01 : f32
    %308 = vector.broadcast %cst_118 : f32 to vector<32x1xf32>
    %309 = arith.divf %307, %308 : vector<32x1xf32>
    %310 = vector.broadcast %309 : vector<32x1xf32> to vector<32x32xf32>
    %311 = arith.subf %305, %310 : vector<32x32xf32>
    %312 = arith.mulf %311, %311 : vector<32x32xf32>
    %cst_119 = arith.constant dense<0.000000e+00> : vector<32xf32>
    %313 = vector.multi_reduction <add>, %312, %cst_119 [1] : vector<32x32xf32> to vector<32xf32>
    %314 = vector.shape_cast %313 : vector<32xf32> to vector<32x1xf32>
    %cst_120 = arith.constant 3.200000e+01 : f32
    %315 = vector.broadcast %cst_120 : f32 to vector<32x1xf32>
    %316 = arith.divf %314, %315 : vector<32x1xf32>
    %317 = vector.broadcast %309 : vector<32x1xf32> to vector<32x32xf32>
    %318 = arith.subf %305, %317 : vector<32x32xf32>
    %cst_121 = arith.constant 9.99999996E-13 : f32
    %319 = vector.broadcast %cst_121 : f32 to vector<32x1xf32>
    %320 = arith.addf %316, %319 : vector<32x1xf32>
    %321 = math.rsqrt %320 : vector<32x1xf32>
    %322 = vector.broadcast %321 : vector<32x1xf32> to vector<32x32xf32>
    %323 = arith.mulf %318, %322 : vector<32x32xf32>
    %324 = vector.broadcast %199 : vector<1x32xf32> to vector<32x32xf32>
    %325 = arith.mulf %323, %324 : vector<32x32xf32>
    %326 = vector.broadcast %200 : vector<1x32xf32> to vector<32x32xf32>
    %327 = arith.addf %325, %326 : vector<32x32xf32>
    %c1_122 = arith.constant 1 : index
    %c0_123 = arith.constant 0 : index
    %c0_124 = arith.constant 0 : index
    %328 = vector.load %arg4[%c1_122, %c0_123, %c0_124] : memref<2x32x64xf32, #tpu.memory_space<vmem>>, vector<1x32x64xf32>
    %329 = vector.shape_cast %328 : vector<1x32x64xf32> to vector<32x64xf32>
    %cst_125 = arith.constant dense<0.000000e+00> : vector<32x64xf32>
    %330 = tpu.matmul %327, %329, %cst_125 {dimension_numbers = #tpu.dot_dimension_numbers<[1], [0], [0], [1], [0, 0, 1, 1], [], []>} : vector<32x32xf32>, vector<32x64xf32>, vector<32x64xf32> -> vector<32x64xf32>
    %331 = vector.broadcast %203 : vector<1x64xf32> to vector<32x64xf32>
    %332 = arith.addf %330, %331 : vector<32x64xf32>
    %333 = arith.mulf %332, %332 : vector<32x64xf32>
    %334 = arith.mulf %332, %333 : vector<32x64xf32>
    %cst_126 = arith.constant 4.471500e-02 : f32
    %335 = vector.broadcast %cst_126 : f32 to vector<32x64xf32>
    %336 = arith.mulf %335, %334 : vector<32x64xf32>
    %337 = arith.addf %332, %336 : vector<32x64xf32>
    %cst_127 = arith.constant 0.797884583 : f32
    %338 = vector.broadcast %cst_127 : f32 to vector<32x64xf32>
    %339 = arith.mulf %338, %337 : vector<32x64xf32>
    %340 = math.tanh %339 : vector<32x64xf32>
    %cst_128 = arith.constant 1.000000e+00 : f32
    %341 = vector.broadcast %cst_128 : f32 to vector<32x64xf32>
    %342 = arith.addf %341, %340 : vector<32x64xf32>
    %cst_129 = arith.constant 5.000000e-01 : f32
    %343 = vector.broadcast %cst_129 : f32 to vector<32x64xf32>
    %344 = arith.mulf %343, %342 : vector<32x64xf32>
    %345 = arith.mulf %332, %344 : vector<32x64xf32>
    %c1_130 = arith.constant 1 : index
    %c0_131 = arith.constant 0 : index
    %c0_132 = arith.constant 0 : index
    %346 = vector.load %arg5[%c1_130, %c0_131, %c0_132] : memref<2x64x32xf32, #tpu.memory_space<vmem>>, vector<1x64x32xf32>
    %347 = vector.shape_cast %346 : vector<1x64x32xf32> to vector<64x32xf32>
    %cst_133 = arith.constant dense<0.000000e+00> : vector<32x32xf32>
    %348 = tpu.matmul %345, %347, %cst_133 {dimension_numbers = #tpu.dot_dimension_numbers<[1], [0], [0], [1], [0, 0, 1, 1], [], []>} : vector<32x64xf32>, vector<64x32xf32>, vector<32x32xf32> -> vector<32x32xf32>
    %349 = vector.broadcast %198 : vector<1x32xf32> to vector<32x32xf32>
    %350 = arith.addf %348, %349 : vector<32x32xf32>
    %351 = arith.addf %327, %350 : vector<32x32xf32>
    %cst_134 = arith.constant dense<0.000000e+00> : vector<32xf32>
    %352 = vector.multi_reduction <add>, %351, %cst_134 [1] : vector<32x32xf32> to vector<32xf32>
    %353 = vector.shape_cast %352 : vector<32xf32> to vector<32x1xf32>
    %cst_135 = arith.constant 3.200000e+01 : f32
    %354 = vector.broadcast %cst_135 : f32 to vector<32x1xf32>
    %355 = arith.divf %353, %354 : vector<32x1xf32>
    %356 = vector.broadcast %355 : vector<32x1xf32> to vector<32x32xf32>
    %357 = arith.subf %351, %356 : vector<32x32xf32>
    %358 = arith.mulf %357, %357 : vector<32x32xf32>
    %cst_136 = arith.constant dense<0.000000e+00> : vector<32xf32>
    %359 = vector.multi_reduction <add>, %358, %cst_136 [1] : vector<32x32xf32> to vector<32xf32>
    %360 = vector.shape_cast %359 : vector<32xf32> to vector<32x1xf32>
    %cst_137 = arith.constant 3.200000e+01 : f32
    %361 = vector.broadcast %cst_137 : f32 to vector<32x1xf32>
    %362 = arith.divf %360, %361 : vector<32x1xf32>
    %363 = vector.broadcast %355 : vector<32x1xf32> to vector<32x32xf32>
    %364 = arith.subf %351, %363 : vector<32x32xf32>
    %cst_138 = arith.constant 9.99999996E-13 : f32
    %365 = vector.broadcast %cst_138 : f32 to vector<32x1xf32>
    %366 = arith.addf %362, %365 : vector<32x1xf32>
    %367 = math.rsqrt %366 : vector<32x1xf32>
    %368 = vector.broadcast %367 : vector<32x1xf32> to vector<32x32xf32>
    %369 = arith.mulf %364, %368 : vector<32x32xf32>
    %370 = vector.broadcast %201 : vector<1x32xf32> to vector<32x32xf32>
    %371 = arith.mulf %369, %370 : vector<32x32xf32>
    %372 = vector.broadcast %202 : vector<1x32xf32> to vector<32x32xf32>
    %373 = arith.addf %371, %372 : vector<32x32xf32>
    %374 = vector.shape_cast %373 : vector<32x32xf32> to vector<4x8x32xf32>
    %375 = vector.shape_cast %2 : vector<4x8xf32> to vector<4x8x1xf32>
    %376 = vector.broadcast %375 : vector<4x8x1xf32> to vector<4x8x32xf32>
    %377 = arith.mulf %374, %376 : vector<4x8x32xf32>
    %cst_139 = arith.constant dense<0.000000e+00> : vector<4x32xf32>
    %378 = vector.multi_reduction <add>, %377, %cst_139 [1] : vector<4x8x32xf32> to vector<4x32xf32>
    %cst_140 = arith.constant dense<0.000000e+00> : vector<4xf32>
    %379 = vector.multi_reduction <add>, %2, %cst_140 [1] : vector<4x8xf32> to vector<4xf32>
    %380 = vector.shape_cast %379 : vector<4xf32> to vector<4x1xf32>
    %cst_141 = arith.constant 9.99999971E-10 : f32
    %381 = vector.broadcast %cst_141 : f32 to vector<4x1xf32>
    %382 = arith.maximumf %380, %381 : vector<4x1xf32>
    %383 = tpu.reciprocal %382 {approx = true} : vector<4x1xf32> -> vector<4x1xf32>
    %384 = vector.broadcast %383 : vector<4x1xf32> to vector<4x32xf32>
    %385 = arith.mulf %378, %384 : vector<4x32xf32>
    %386 = vector.extract_strided_slice %385 {offsets = [0, 0], sizes = [2, 32], strides = [1, 1]} : vector<4x32xf32> to vector<2x32xf32>
    %387 = vector.extract_strided_slice %385 {offsets = [2, 0], sizes = [2, 32], strides = [1, 1]} : vector<4x32xf32> to vector<2x32xf32>
    %388 = arith.mulf %386, %387 : vector<2x32xf32>
    %cst_142 = arith.constant dense<0.000000e+00> : vector<2xf32>
    %389 = vector.multi_reduction <add>, %388, %cst_142 [1] : vector<2x32xf32> to vector<2xf32>
    %390 = vector.shape_cast %389 : vector<2xf32> to vector<2x1xf32>
    %391 = arith.mulf %386, %386 : vector<2x32xf32>
    %cst_143 = arith.constant dense<0.000000e+00> : vector<2xf32>
    %392 = vector.multi_reduction <add>, %391, %cst_143 [1] : vector<2x32xf32> to vector<2xf32>
    %393 = vector.shape_cast %392 : vector<2xf32> to vector<2x1xf32>
    %394 = math.sqrt %393 : vector<2x1xf32>
    %395 = arith.mulf %387, %387 : vector<2x32xf32>
    %cst_144 = arith.constant dense<0.000000e+00> : vector<2xf32>
    %396 = vector.multi_reduction <add>, %395, %cst_144 [1] : vector<2x32xf32> to vector<2xf32>
    %397 = vector.shape_cast %396 : vector<2xf32> to vector<2x1xf32>
    %398 = math.sqrt %397 : vector<2x1xf32>
    %399 = arith.mulf %394, %398 : vector<2x1xf32>
    %cst_145 = arith.constant 9.99999997E-7 : f32
    %400 = vector.broadcast %cst_145 : f32 to vector<2x1xf32>
    %401 = arith.maximumf %399, %400 : vector<2x1xf32>
    %402 = arith.divf %390, %401 : vector<2x1xf32>
    %c0_146 = arith.constant 0 : index
    %c0_147 = arith.constant 0 : index
    %403 = vector.load %arg7[%c0_146, %c0_147] : memref<2x1xf32, #tpu.memory_space<vmem>>, vector<2x1xf32>
    tpu.vector_store %arg7[%c0_146, %c0_147], %402 {strides = array<i32>} : memref<2x1xf32, #tpu.memory_space<vmem>>, vector<2x1xf32>,
    return
  }
}

</mosaic_0001>

<bundles_post_ra>
// kernel: shroomformer_forward.1
= control target key start
LH: loop header
LB: loop body
LE: loop exit
PB: predicated region body
PF: predicated region fallthrough
CT: control target
= control target key end

     0   :  { %vm88_vm0 = vcmask 261120   ;;  %v8361_v16 = vmov 0.0   ;;  %vm8362_vm1 = vmmov 0   ;;  %v37_v17 = vlaneseq  ;;  %s8364_s14 = smov 120   ;;  %s8365_s15 = smov 112   ;;  %s9587_s2 = inlined_call_operand.vmem [shape: f32[2,3,32,32], index: 2, kind: input, shape index: {}]   ;;  %s9588_s0 = inlined_call_operand.vmem [shape: f32[4,8,32], index: 0, kind: input, shape index: {}]   ;;  %s9589_s6 = inlined_call_operand.vmem [shape: f32[2,10,64], index: 6, kind: input, shape index: {}]   ;;  %s9590_s1 = inlined_call_operand.vmem [shape: f32[4,8], index: 1, kind: input, shape index: {}]   ;;  %s9591_s3 = inlined_call_operand.vmem [shape: f32[2,32,32], index: 3, kind: input, shape index: {}]   ;;  %s9592_s4 = inlined_call_operand.vmem [shape: f32[2,32,64], index: 4, kind: input, shape index: {}]   ;;  %s9593_s5 = inlined_call_operand.vmem [shape: f32[2,64,32], index: 5, kind: input, shape index: {}]   ;;  %s9594_s7 = inlined_call_operand.vmem [shape: f32[2,1], index: 7, kind: output, shape index: {}]  }
   0x1   :  { %v83_v0 = vld [vmem:[%s9587_s2 + $0x18] sm:$0xff]  ;;  %v82_v1 = vld [vmem:[%s9587_s2 + $0x10] sm:$0xff]  ;;  %v26_v2 = vld [vmem:[%s9588_s0] sm:$0xff]  ;;  %vm374_vm2 = vcmask 64512   ;;  %v8363_v48 = vmov 1966171168  }
   0x2   :  { %7657 = vmatprep.subr.mxu1 %v83_v0  ;;  %v81_v3 = vld [vmem:[%s9587_s2 + $0x8] sm:$0xff]  ;;  %7665 = vmatprep.mubr.msk.f32.mxu1 %vm88_vm0, %v26_v2  ;;  %v80_v4 = vld [vmem:[%s9587_s2] sm:$0xff]  ;;  %v7250_v6 = vld [vmem:[%s9587_s2 + $0x38] sm:$0xff]  ;;  %v8476_v20 = vshrl.u32 %v37_v17, 7  ;;  %v35_v49 = vunpack.c.l.s4 %v8363_v48  ;;  %s8366_s16 = smov 104   ;;  %s8367_s17 = smov 8  }
   0x3   :  { %7658 = vmatpush3.msra.mxu1 %v83_v0  ;;  %7693 = vmatprep.mubr.msk.f32.mxu0 %vm88_vm0, %v26_v2  ;;  %v27_v5 = vld [vmem:[%s9588_s0 + $0x8] sm:$0xff]  ;;  %v28_v7 = vld [vmem:[%s9588_s0 + $0x10] sm:$0xff]  ;;  %v29_v9 = vld [vmem:[%s9588_s0 + $0x18] sm:$0xff]  ;;  %s8368_s18 = smov 16   ;;  %s8369_s19 = smov 24   ;;  %vm3083_vm3 = vcmask 130048  }
   0x4   :  { %7659 = vmatprep.subr.mxu1 %v82_v1  ;;  %v7249_v8 = vld [vmem:[%s9587_s2 + $0x30] sm:$0xff]  ;;  %v7248_v10 = vld [vmem:[%s9587_s2 + $0x28] sm:$0xff]  ;;  %v7247_v11 = vld [vmem:[%s9587_s2 + $0x20] sm:$0xff]  ;;  %v8479_v22 = vsub.s32 1, %v8476_v20  ;;  %v8482_v24 = vsub.s32 0, %v8476_v20  ;;  %v8534_v40 = vsub.s32 2, %v8476_v20  ;;  %v36_v52 = vunpack.c.0.s8 %v35_v49 }
   0x5   :  { %7660 = vmatpush3.msra.mxu1 %v82_v1  ;;  %v7258_v12 = vld [vmem:[%s9587_s2 + $0x58] sm:$0xff]  ;;  %v7257_v13 = vld [vmem:[%s9587_s2 + $0x50] sm:$0xff]  ;;  %v7256_v14 = vld [vmem:[%s9587_s2 + $0x48] sm:$0xff]  ;;  %vm3088_vm4 = vcmask 195584   ;;  %vm3424_vm5 = vcmask 523264   ;;  %vm7169_vm6 = vcmask 60416  }
   0x6   :  { %7661 = vmatprep.subr.mxu1 %v81_v3  ;;  %7685 = vmatprep.subr.mxu0 %v7258_v12  ;;  %v7255_v15 = vld [vmem:[%s9587_s2 + $0x40] sm:$0xff]  ;;  %v39_v54 = vsub.s32 %v36_v52, %v8476_v20  ;;  %vm7192_vm7 = vcmask 1041409   ;;  %vm7195_vm8 = vcmask 254976   ;;  %vm7237_vm13 = vcmask 1024  }
   0x7   :  { %7662 = vmatpush3.msra.mxu1 %v81_v3  ;;  %7686 = vmatpush3.msra.mxu0 %v7258_v12  ;;  %v78_v25 = vld [vmem:[%s9589_s6] sm:$0xff] }
   0x8   :  { %7663 = vmatprep.subr.mxu1 %v80_v4  ;;  %7687 = vmatprep.subr.mxu0 %v7257_v13  ;;  %v194_v27 = vrot.slane %v78_v25, %v8479_v22  ;;  %v87_v30 = vrot.slane %v78_v25, %v8482_v24  ;;  %v8537_v41 = vrot.slane %v78_v25, %v8534_v40  ;;  %v30_v50 = vld [vmem:[%s9590_s1] sm:$0xf] }
   0x9   :  { %7664 = vmatpush3.msra.mxu1 %v80_v4  ;;  %7688 = vmatpush3.msra.mxu0 %v7257_v13  ;;  %v31_v51 = vsub.f32 1.0, %v30_v50 }
   0xa   :  { %7666 = vmatmul.mubr.msk.f32.vlgmr.msra.gmra.mxu1 %vm88_vm0, %v27_v5  ;;  %7671 = vmatprep.subr.mxu1 %v7250_v6 }
   0xb   :  { %7672 = vmatpush3.msra.mxu1 %v7250_v6  ;;  %7668 = vmatprep.mubr.msk.f32.mxu1 %vm88_vm0, %v28_v7  ;;  %v32_v53 = vmul.f32 -10000.0, %v31_v51 }
   0xc   :  { %7673 = vmatprep.subr.mxu1 %v7249_v8  ;;  %7689 = vmatprep.subr.mxu0 %v7256_v14 }
   0xd   :  { %7674 = vmatpush3.msra.mxu1 %v7249_v8  ;;  %7690 = vmatpush3.msra.mxu0 %v7256_v14  ;;  %v40_v55 = vrot.slane %v32_v53, %v39_v54 }
   0xe   :  { %7669 = vmatmul.mubr.msk.f32.gmra.mxu1 %vm88_vm0, %v29_v9  ;;  %7675 = vmatprep.subr.mxu1 %v7248_v10 }
   0xf   :  { %7676 = vmatpush3.msra.mxu1 %v7248_v10  ;;  %7679 = vmatprep.mubr.msk.f32.mxu1 %vm88_vm0, %v26_v2  ;;  %v48_v56 = vrot.slane %v40_v55, %v39_v54  ;;  %v41_v57 = vcombine.high %v40_v55, %v40_v55 }
  0x10   :  { %7677 = vmatprep.subr.mxu1 %v7247_v11  ;;  %7691 = vmatprep.subr.mxu0 %v7255_v15 }
  0x11   :  { %7678 = vmatpush3.msra.mxu1 %v7247_v11  ;;  %7692 = vmatpush3.msra.mxu0 %v7255_v15  ;;  %v8557_v58 = vrot.slane %v48_v56, %v8482_v24  ;;  %v56_v59 = vcombine.high %v48_v56, %v48_v56  ;;  %v55_v60 = vrot.slane %v41_v57, %v39_v54 }
  0x12   :  { %7680 = vmatmul.mubr.msk.f32.vlgmr.msra.gmra.mxu1 %vm88_vm0, %v27_v5  ;;  %7694 = vmatmul.mubr.msk.f32.vlgmr.msra.gmra.mxu0 %vm88_vm0, %v27_v5 }
  0x13   :  { %7682 = vmatprep.mubr.msk.f32.mxu1 %vm88_vm0, %v28_v7  ;;  %7699 = vmatprep.subr.mxu1 %v8361_v16  ;;  %v8563_v2 = vrot.slane %v56_v59, %v8482_v24  ;;  %v8566_v3 = vrot.slane %v55_v60, %v8482_v24  ;;  %v57_v4 = vcombine.high %v55_v60, %v55_v60 }
  0x14   :  { %7696 = vmatprep.mubr.msk.f32.mxu0 %vm88_vm0, %v28_v7  ;;  %7709 = vmatprep.subr.mxu0 %v8361_v16 }
  0x15   :  { %v8572_v14 = vrot.slane %v57_v4, %v8482_v24 }
  0x16   :  { %7683 = vmatmul.mubr.msk.f32.gmra.mxu1 %vm88_vm0, %v29_v9  ;;  %7697 = vmatmul.mubr.msk.f32.gmra.mxu0 %vm88_vm0, %v29_v9 }
  0x17   :  { %7701 = vmatprep.mubr.msk.f32.mxu1 %vm8362_vm1, %v8361_v16  ;;  %7711 = vmatprep.mubr.msk.f32.mxu0 %vm8362_vm1, %v8361_v16 }
  0xca   :  { %v7667_v18 = vpop.f32.mrf.mxu1 }
  0xcb   :  { %v8508_v37 = vadd.f32 %v7667_v18, %v87_v30 }
  0xcc   :  { %v167_v19 = vpop.f32.mrf.mxu1 }
  0xcd   :  { %v8493_v32 = vadd.f32 %v167_v19, %v87_v30 }
  0xce   :  { %v7670_v21 = vpop.f32.mrf.mxu1 }
  0xcf   :  { %v8524_v39 = vadd.f32 %v7670_v21, %v87_v30 }
  0xd0   :  { %v177_v23 = vpop.f32.mrf.mxu1 }
  0xd1   :  { %v8510_v38 = vadd.f32 %v177_v23, %v87_v30 }
  0xd2   :  { %v7681_v26 = vpop.f32.mrf.mxu1  ;;  %v7695_v42 = vpop.f32.mrf.mxu0 }
  0xd3   :  { %v8496_v34 = vadd.f32 %v7681_v26, %v194_v27  ;;  %v8540_v43 = vadd.f32 %v7695_v42, %v8537_v41 }
  0xd4   :  { %v261_v28 = vpop.f32.mrf.mxu1  ;;  %v355_v44 = vpop.f32.mrf.mxu0 }
  0xd5   :  { %v8488_v29 = vadd.f32 %v261_v28, %v194_v27  ;;  %v8543_v45 = vadd.f32 %v355_v44, %v8537_v41 }
  0xd6   :  { %v7684_v31 = vpop.f32.mrf.mxu1  ;;  %v7698_v46 = vpop.f32.mrf.mxu0 }
  0xd7   :  { %7700 = vmatpush3.xpose.msk.msra.mxu1 %vm374_vm2, %v8488_v29  ;;  %v8502_v36 = vadd.f32 %v7684_v31, %v194_v27  ;;  %v8548_v47 = vadd.f32 %v7698_v46, %v8537_v41 }
  0xd8   :  { %v271_v33 = vpop.f32.mrf.mxu1  ;;  %7704 = vmatprep.subr.mxu1 %v8361_v16  ;;  %v8559_v62 = vpop.f32.mrf.mxu0 }
  0xd9   :  { %v8498_v35 = vadd.f32 %v271_v33, %v194_v27  ;;  %v8600_v4 = vadd.f32 %v8559_v62, %v8537_v41 }
  0xda   :  { %7702 = vmatmul.mubr.msk.f32.vlgmr.msra.gmra.mxu1 %vm374_vm2, %v8493_v32 }
  0xdb   :  { %7705 = vmatpush3.xpose.msk.msra.mxu1 %vm374_vm2, %v8496_v34  ;;  %7710 = vmatpush3.xpose.msk.msra.mxu0 %vm374_vm2, %v8498_v35 }
  0xdc   :  { %7706 = vmatprep.mubr.msk.f32.mxu1 %vm8362_vm1, %v8361_v16  ;;  %7714 = vmatprep.subr.mxu1 %v8361_v16 }
  0xdd   :  { %7719 = vmatprep.subr.mxu0 %v8361_v16 }
  0xde   :  { %7707 = vmatmul.mubr.msk.f32.vlgmr.msra.gmra.mxu1 %vm374_vm2, %v8508_v37  ;;  %7712 = vmatmul.mubr.msk.f32.vlgmr.msra.gmra.mxu0 %vm374_vm2, %v8510_v38 }
  0xdf   :  { %7715 = vmatpush3.xpose.msk.msra.mxu1 %vm374_vm2, %v8502_v36  ;;  %7716 = vmatprep.mubr.msk.f32.mxu1 %vm8362_vm1, %v8361_v16 }
  0xe0   :  { %7724 = vmatprep.subr.mxu1 %v8361_v16  ;;  %7721 = vmatprep.mubr.msk.f32.mxu0 %vm8362_vm1, %v8361_v16 }
  0xe1   :  { %7720 = vmatpush3.msra.mxu0 %v8543_v45 }
  0xe2   :  { %7717 = vmatmul.mubr.msk.f32.vlgmr.msra.gmra.mxu1 %vm374_vm2, %v8524_v39  ;;  %7729 = vmatprep.subr.mxu0 %v8361_v16 }
  0xe3   :  { %7726 = vmatprep.mubr.msk.f32.mxu1 %vm8362_vm1, %v8361_v16  ;;  %7725 = vmatpush3.msra.mxu1 %v8540_v43 }
  0xe4   :  { %7734 = vmatprep.subr.mxu1 %v8361_v16 }
 0x19a   :  { %v447_v61 = vpop.f32.mrf.mxu1 }
 0x19b   :  { %v679_v63 = vmul.f32 0.35355338, %v447_v61 }
 0x19c   :  { %v7703_v0 = vpop.f32.mrf.mxu1 }
 0x19d   :  { %v683_v1 = vadd.f32 %v679_v63, %v8557_v58 }
 0x19e   :  { %v523_v5 = vpop.f32.mrf.mxu1  ;;  %v599_v6 = vpop.f32.mrf.mxu0 }
 0x19f   :  { %v680_v7 = vmul.f32 0.35355338, %v523_v5  ;;  %v681_v8 = vmul.f32 0.35355338, %v599_v6  ;;  %v687_v9 = vsel %vm374_vm2, %v683_v1, -inf }
 0x1a0   :  { %v7713_v10 = vpop.f32.mrf.mxu0  ;;  %688 = vmax.xlane.f32.xlu0 %v687_v9  ;;  %v7708_v11 = vpop.f32.mrf.mxu1 }
 0x1a1   :  { %v685_v12 = vadd.f32 %v681_v8, %v8563_v2  ;;  %v684_v13 = vadd.f32 %v680_v7, %v8566_v3 }
 0x1a2   :  { %v675_v15 = vpop.f32.mrf.mxu1 }
 0x1a3   :  { %v682_v17 = vmul.f32 0.35355338, %v675_v15  ;;  %v693_v18 = vsel %vm374_vm2, %v685_v12, -inf  ;;  %v690_v19 = vsel %vm374_vm2, %v684_v13, -inf }
 0x1a4   :  { %694 = vmax.xlane.f32.xlu1 %v693_v18  ;;  %691 = vmax.xlane.f32.xlu0 %v690_v19  ;;  %v7718_v21 = vpop.f32.mrf.mxu1 }
 0x1a5   :  { %v686_v23 = vadd.f32 %v682_v17, %v8572_v14 }
 0x1a7   :  { %v696_v25 = vsel %vm374_vm2, %v686_v23, -inf }
 0x1a8   :  { %697 = vmax.xlane.f32.xlu1 %v696_v25 }
 0x229   :  { %v689_v26 = vpop.xlane.xlu0 %688 }
 0x22a   :  { %v699_v27 = vsub.f32 %v683_v1, %v689_v26 }
 0x22c   :  { %v703_v28 = vmul.f32 1.442695, %v699_v27 }
 0x22d   :  { %v695_v30 = vpop.xlane.xlu1 %694  ;;  %v692_v31 = vpop.xlane.xlu0 %691 }
 0x22e   :  { %8170 = vpow2.f32 %v703_v28  ;;  %v701_v33 = vsub.f32 %v685_v12, %v695_v30  ;;  %v700_v42 = vsub.f32 %v684_v13, %v692_v31 }
 0x230   :  { %v707_v44 = vmul.f32 1.442695, %v701_v33  ;;  %v705_v46 = vmul.f32 1.442695, %v700_v42 }
 0x231   :  { %v698_v54 = vpop.xlane.xlu1 %697 }
 0x232   :  { %8172 = vpow2.f32 %v707_v44  ;;  %v702_v55 = vsub.f32 %v686_v23, %v698_v54 }
 0x233   :  { %8174 = vpow2.f32 %v705_v46 }
 0x234   :  { %v709_v56 = vmul.f32 1.442695, %v702_v55 }
 0x236   :  { %8176 = vpow2.f32 %v709_v56 }
 0x23b   :  { %v8171_v48 = vpop.eup %8170 }
 0x23c   :  { %v711_v49 = vsel %vm374_vm2, %v8171_v48, 0.0 }
 0x23d   :  { %712 = vadd.xlane.f32.xlu0 %v711_v49 }
 0x23f   :  { %v8173_v50 = vpop.eup %8172 }
 0x240   :  { %v8175_v51 = vpop.eup %8174  ;;  %v717_v52 = vsel %vm374_vm2, %v8173_v50, 0.0 }
 0x241   :  { %718 = vadd.xlane.f32.xlu0 %v717_v52  ;;  %v714_v53 = vsel %vm374_vm2, %v8175_v51, 0.0 }
 0x242   :  { %715 = vadd.xlane.f32.xlu1 %v714_v53 }
 0x243   :  { %v8177_v57 = vpop.eup %8176 }
 0x244   :  { %v720_v59 = vsel %vm374_vm2, %v8177_v57, 0.0 }
 0x253   :  { %1103 = vrot.lane.b32.xlu1 %v8496_v34, %s8364_s14 }
 0x257   :  { %1023 = vrot.lane.b32.xlu1 %v8493_v32, %s8364_s14  ;;  %1025 = vrot.lane.b32.xlu0 %v8488_v29, %s8364_s14 }
 0x25b   :  { %1101 = vrot.lane.b32.xlu1 %v8508_v37, %s8364_s14  ;;  %1181 = vrot.lane.b32.xlu0 %v8498_v35, %s8364_s14 }
 0x25f   :  { %1259 = vrot.lane.b32.xlu1 %v8502_v36, %s8364_s14  ;;  %1179 = vrot.lane.b32.xlu0 %v8510_v38, %s8364_s14 }
 0x283   :  { %721 = vadd.xlane.f32.xlu1 %v720_v59 }
 0x294   :  { %1257 = vrot.lane.b32.xlu1 %v8524_v39, %s8364_s14 }
 0x2c6   :  { %v713_v60 = vpop.xlane.xlu0 %712 }
 0x2c7   :  { %8178 = vrcp.f32 %v713_v60 }
 0x2ca   :  { %v719_v61 = vpop.xlane.xlu0 %718 }
 0x2cb   :  { %8180 = vrcp.f32 %v719_v61  ;;  %v716_v63 = vpop.xlane.xlu1 %715 }
 0x2cc   :  { %8182 = vrcp.f32 %v716_v63 }
 0x2ce   :  { %v1026_v5 = vpop.permute.xlu0 %1025 }
 0x2cf   :  { %v1104_v7 = vpop.permute.xlu1 %1103 }
 0x2d2   :  { %v1182_v11 = vpop.permute.xlu0 %1181 }
 0x2d3   :  { %v1024_v41 = vpop.permute.xlu1 %1023 }
 0x2d4   :  { %v8179_v0 = vpop.eup %8178 }
 0x2d5   :  { %v724_v1 = vmul.f32 %v8179_v0, %v8171_v48 }
 0x2d6   :  { %v1180_v62 = vpop.permute.xlu0 %1179 }
 0x2d7   :  { %7722 = vmatmul.mubr.msk.f32.vlgmr.msra.gmra.mxu0 %vm374_vm2, %v724_v1  ;;  %v1102_v12 = vpop.permute.xlu1 %1101 }
 0x2d8   :  { %v8181_v6 = vpop.eup %8180  ;;  %7730 = vmatpush3.msra.mxu0 %v8600_v4  ;;  %7731 = vmatprep.mubr.msk.f32.mxu0 %vm8362_vm1, %v8361_v16 }
 0x2d9   :  { %v8183_v8 = vpop.eup %8182  ;;  %7739 = vmatprep.subr.mxu0 %v8361_v16  ;;  %v728_v9 = vmul.f32 %v8181_v6, %v8173_v50 }
 0x2da   :  { %v726_v10 = vmul.f32 %v8183_v8, %v8175_v51 }
 0x2db   :  { %7732 = vmatmul.mubr.msk.f32.vlgmr.msra.gmra.mxu0 %vm374_vm2, %v728_v9  ;;  %v1260_v13 = vpop.permute.xlu1 %1259 }
 0x2dc   :  { %7727 = vmatmul.mubr.msk.f32.vlgmr.msra.gmra.mxu1 %vm374_vm2, %v726_v10  ;;  %7740 = vmatpush3.xpose.msk.msra.mxu0 %vm374_vm2, %v1026_v5 }
 0x2dd   :  { %7735 = vmatpush3.msra.mxu1 %v8548_v47  ;;  %7741 = vmatprep.mubr.msk.f32.mxu0 %vm8362_vm1, %v8361_v16 }
 0x2de   :  { %7749 = vmatprep.subr.mxu0 %v8361_v16  ;;  %7736 = vmatprep.mubr.msk.f32.mxu1 %vm8362_vm1, %v8361_v16 }
 0x2df   :  { %7742 = vmatmul.mubr.msk.f32.vlgmr.msra.gmra.mxu0 %vm374_vm2, %v1024_v41  ;;  %7744 = vmatprep.subr.mxu1 %v8361_v16 }
 0x2e0   :  { %7750 = vmatpush3.xpose.msk.msra.mxu0 %vm374_vm2, %v1182_v11  ;;  %7751 = vmatprep.mubr.msk.f32.mxu0 %vm8362_vm1, %v8361_v16 }
 0x2e1   :  { %7759 = vmatprep.subr.mxu0 %v8361_v16 }
 0x2e3   :  { %7752 = vmatmul.mubr.msk.f32.vlgmr.msra.gmra.mxu0 %vm374_vm2, %v1180_v62 }
 0x2e4   :  { %7761 = vmatprep.mubr.msk.f32.mxu0 %vm8362_vm1, %v8361_v16 }
 0x30c   :  { %v722_v15 = vpop.xlane.xlu1 %721 }
 0x30d   :  { %8184 = vrcp.f32 %v722_v15 }
 0x310   :  { %v1258_v19 = vpop.permute.xlu1 %1257 }
 0x31a   :  { %v8185_v17 = vpop.eup %8184 }
 0x31b   :  { %v730_v18 = vmul.f32 %v8185_v17, %v8177_v57 }
 0x31d   :  { %7737 = vmatmul.mubr.msk.f32.vlgmr.msra.gmra.mxu1 %vm374_vm2, %v730_v18 }
 0x31e   :  { %7745 = vmatpush3.xpose.msk.msra.mxu1 %vm374_vm2, %v1104_v7  ;;  %7746 = vmatprep.mubr.msk.f32.mxu1 %vm8362_vm1, %v8361_v16 }
 0x31f   :  { %7754 = vmatprep.subr.mxu1 %v8361_v16 }
 0x321   :  { %7747 = vmatmul.mubr.msk.f32.vlgmr.msra.gmra.mxu1 %vm374_vm2, %v1102_v12 }
 0x322   :  { %7755 = vmatpush3.xpose.msk.msra.mxu1 %vm374_vm2, %v1260_v13  ;;  %7756 = vmatprep.mubr.msk.f32.mxu1 %vm8362_vm1, %v8361_v16 }
 0x323   :  { %7764 = vmatprep.subr.mxu1 %v8361_v16 }
 0x325   :  { %7757 = vmatmul.mubr.msk.f32.vlgmr.msra.gmra.mxu1 %vm374_vm2, %v1258_v19 }
 0x326   :  { %7766 = vmatprep.mubr.msk.f32.mxu1 %vm8362_vm1, %v8361_v16 }
 0x397   :  { %v8638_v21 = vpop.f32.mrf.mxu0 }
 0x399   :  { %v7723_v23 = vpop.f32.mrf.mxu0 }
 0x39b   :  { %v8640_v25 = vpop.f32.mrf.mxu0 }
 0x39c   :  { %v8642_v26 = vpop.f32.mrf.mxu1 }
 0x39d   :  { %v7733_v27 = vpop.f32.mrf.mxu0 }
 0x39e   :  { %v7728_v28 = vpop.f32.mrf.mxu1 }
 0x39f   :  { %v1097_v30 = vpop.f32.mrf.mxu0 }
 0x3a0   :  { %v1335_v31 = vmul.f32 0.35355338, %v1097_v30 }
 0x3a1   :  { %v7743_v33 = vpop.f32.mrf.mxu0 }
 0x3a2   :  { %v1339_v42 = vadd.f32 %v1335_v31, %v8557_v58 }
 0x3a3   :  { %v1253_v44 = vpop.f32.mrf.mxu0 }
 0x3a4   :  { %v1337_v46 = vmul.f32 0.35355338, %v1253_v44  ;;  %v1343_v48 = vsel %vm374_vm2, %v1339_v42, -inf }
 0x3a5   :  { %1344 = vmax.xlane.f32.xlu0 %v1343_v48  ;;  %v7753_v49 = vpop.f32.mrf.mxu0 }
 0x3a6   :  { %v1341_v50 = vadd.f32 %v1337_v46, %v8563_v2 }
 0x3a8   :  { %v1349_v51 = vsel %vm374_vm2, %v1341_v50, -inf }
 0x3a9   :  { %1350 = vmax.xlane.f32.xlu0 %v1349_v51 }
 0x3dd   :  { %v8648_v52 = vpop.f32.mrf.mxu1 }
 0x3df   :  { %v7738_v53 = vpop.f32.mrf.mxu1 }
 0x3e1   :  { %v1175_v54 = vpop.f32.mrf.mxu1 }
 0x3e2   :  { %v1336_v55 = vmul.f32 0.35355338, %v1175_v54 }
 0x3e3   :  { %v7748_v56 = vpop.f32.mrf.mxu1 }
 0x3e4   :  { %v1340_v57 = vadd.f32 %v1336_v55, %v8566_v3 }
 0x3e5   :  { %v1331_v59 = vpop.f32.mrf.mxu1 }
 0x3e6   :  { %v1338_v60 = vmul.f32 0.35355338, %v1331_v59  ;;  %v1346_v61 = vsel %vm374_vm2, %v1340_v57, -inf }
 0x3e7   :  { %1347 = vmax.xlane.f32.xlu1 %v1346_v61  ;;  %v7758_v63 = vpop.f32.mrf.mxu1 }
 0x3e8   :  { %v1342_v0 = vadd.f32 %v1338_v60, %v8572_v14 }
 0x3ea   :  { %v1352_v1 = vsel %vm374_vm2, %v1342_v0, -inf }
 0x3eb   :  { %1353 = vmax.xlane.f32.xlu0 %v1352_v1 }
 0x3f8   :  { %1465 = vrot.lane.b32.xlu1 %v8540_v43, %s8364_s14 }
 0x3fc   :  { %1542 = vrot.lane.b32.xlu1 %v8600_v4, %s8364_s14 }
 0x400   :  { %1619 = vrot.lane.b32.xlu1 %v8548_v47, %s8364_s14 }
 0x401   :  { %1388 = vrot.lane.b32.xlu0 %v8543_v45, %s8364_s14 }
 0x404   :  { %1775 = vrot.lane.b32.xlu1 %v8496_v34, %s8365_s15 }
 0x405   :  { %1697 = vrot.lane.b32.xlu0 %v8488_v29, %s8365_s15 }
 0x42e   :  { %v1345_v5 = vpop.xlane.xlu0 %1344 }
 0x42f   :  { %v1355_v6 = vsub.f32 %v1339_v42, %v1345_v5 }
 0x431   :  { %v1359_v7 = vmul.f32 1.442695, %v1355_v6 }
 0x432   :  { %v1351_v8 = vpop.xlane.xlu0 %1350 }
 0x433   :  { %8186 = vpow2.f32 %v1359_v7  ;;  %v1357_v9 = vsub.f32 %v1341_v50, %v1351_v8 }
 0x435   :  { %v1363_v10 = vmul.f32 1.442695, %v1357_v9 }
 0x437   :  { %8188 = vpow2.f32 %v1363_v10 }
 0x440   :  { %v8187_v11 = vpop.eup %8186 }
 0x441   :  { %v1367_v41 = vsel %vm374_vm2, %v8187_v11, 0.0 }
 0x442   :  { %1368 = vadd.xlane.f32.xlu0 %v1367_v41 }
 0x444   :  { %v8189_v62 = vpop.eup %8188 }
 0x445   :  { %v1373_v12 = vsel %vm374_vm2, %v8189_v62, 0.0 }
 0x446   :  { %1374 = vadd.xlane.f32.xlu0 %v1373_v12 }
 0x45c   :  { %1695 = vrot.lane.b32.xlu0 %v8493_v32, %s8365_s15 }
 0x460   :  { %1853 = vrot.lane.b32.xlu0 %v8498_v35, %s8365_s15 }
 0x464   :  { %1851 = vrot.lane.b32.xlu0 %v8510_v38, %s8365_s15 }
 0x470   :  { %v1348_v13 = vpop.xlane.xlu1 %1347 }
 0x471   :  { %v1356_v15 = vsub.f32 %v1340_v57, %v1348_v13 }
 0x473   :  { %v1361_v17 = vmul.f32 1.442695, %v1356_v15 }
 0x474   :  { %v1466_v18 = vpop.permute.xlu1 %1465  ;;  %v1354_v19 = vpop.xlane.xlu0 %1353 }
 0x475   :  { %8190 = vpow2.f32 %v1361_v17  ;;  %7765 = vmatpush3.msra.mxu1 %v1466_v18  ;;  %v1358_v30 = vsub.f32 %v1342_v0, %v1354_v19 }
 0x476   :  { %7774 = vmatprep.subr.mxu1 %v8361_v16 }
 0x477   :  { %v1365_v31 = vmul.f32 1.442695, %v1358_v30 }
 0x478   :  { %v1389_v23 = vpop.permute.xlu0 %1388  ;;  %v1543_v53 = vpop.permute.xlu1 %1542 }
 0x479   :  { %7760 = vmatpush3.msra.mxu0 %v1389_v23  ;;  %8192 = vpow2.f32 %v1365_v31 }
 0x47a   :  { %7769 = vmatprep.subr.mxu0 %v8361_v16 }
 0x47c   :  { %v1698_v44 = vpop.permute.xlu0 %1697  ;;  %v1620_v59 = vpop.permute.xlu1 %1619 }
 0x480   :  { %v1776_v60 = vpop.permute.xlu1 %1775 }
 0x482   :  { %v8191_v27 = vpop.eup %8190 }
 0x483   :  { %v1370_v28 = vsel %vm374_vm2, %v8191_v27, 0.0 }
 0x484   :  { %1371 = vadd.xlane.f32.xlu1 %v1370_v28 }
 0x486   :  { %v8193_v33 = vpop.eup %8192 }
 0x487   :  { %v1376_v42 = vsel %vm374_vm2, %v8193_v33, 0.0 }
 0x495   :  { %1773 = vrot.lane.b32.xlu1 %v8508_v37, %s8365_s15 }
 0x499   :  { %1931 = vrot.lane.b32.xlu1 %v8502_v36, %s8365_s15 }
 0x4bd   :  { %1377 = vadd.xlane.f32.xlu1 %v1376_v42 }
 0x4cb   :  { %v1369_v46 = vpop.xlane.xlu0 %1368 }
 0x4cc   :  { %8194 = vrcp.f32 %v1369_v46 }
 0x4ce   :  { %1929 = vrot.lane.b32.xlu1 %v8524_v39, %s8365_s15 }
 0x4cf   :  { %v1375_v48 = vpop.xlane.xlu0 %1374 }
 0x4d0   :  { %8196 = vrcp.f32 %v1375_v48 }
 0x4d3   :  { %v1696_v51 = vpop.permute.xlu0 %1695 }
 0x4d7   :  { %v1854_v56 = vpop.permute.xlu0 %1853 }
 0x4d9   :  { %v8195_v49 = vpop.eup %8194 }
 0x4da   :  { %v1380_v50 = vmul.f32 %v8195_v49, %v8187_v11 }
 0x4db   :  { %v1852_v57 = vpop.permute.xlu0 %1851 }
 0x4dc   :  { %7762 = vmatmul.mubr.msk.f32.vlgmr.msra.gmra.mxu0 %vm374_vm2, %v1380_v50 }
 0x4dd   :  { %v8197_v54 = vpop.eup %8196  ;;  %7770 = vmatpush3.msra.mxu0 %v1543_v53  ;;  %7771 = vmatprep.mubr.msk.f32.mxu0 %vm8362_vm1, %v8361_v16 }
 0x4de   :  { %7779 = vmatprep.subr.mxu0 %v8361_v16  ;;  %v1384_v55 = vmul.f32 %v8197_v54, %v8189_v62 }
 0x4e0   :  { %7772 = vmatmul.mubr.msk.f32.vlgmr.msra.gmra.mxu0 %vm374_vm2, %v1384_v55 }
 0x4e1   :  { %7780 = vmatpush3.xpose.msk.msra.mxu0 %vm374_vm2, %v1698_v44  ;;  %7781 = vmatprep.mubr.msk.f32.mxu0 %vm8362_vm1, %v8361_v16 }
 0x4e2   :  { %7789 = vmatprep.subr.mxu0 %v8361_v16 }
 0x4e4   :  { %7782 = vmatmul.mubr.msk.f32.vlgmr.msra.gmra.mxu0 %vm374_vm2, %v1696_v51 }
 0x4e5   :  { %7790 = vmatpush3.xpose.msk.msra.mxu0 %vm374_vm2, %v1854_v56  ;;  %7791 = vmatprep.mubr.msk.f32.mxu0 %vm8362_vm1, %v8361_v16 }
 0x4e6   :  { %7799 = vmatprep.subr.mxu0 %v8361_v16 }
 0x4e8   :  { %7792 = vmatmul.mubr.msk.f32.vlgmr.msra.gmra.mxu0 %vm374_vm2, %v1852_v57 }
 0x4e9   :  { %7801 = vmatprep.mubr.msk.f32.mxu0 %vm8362_vm1, %v8361_v16 }
 0x50d   :  { %v1372_v61 = vpop.xlane.xlu1 %1371 }
 0x50e   :  { %8198 = vrcp.f32 %v1372_v61 }
 0x511   :  { %v1774_v1 = vpop.permute.xlu1 %1773 }
 0x515   :  { %v1932_v5 = vpop.permute.xlu1 %1931 }
 0x51b   :  { %v8199_v63 = vpop.eup %8198 }
 0x51c   :  { %v1382_v0 = vmul.f32 %v8199_v63, %v8191_v27 }
 0x51e   :  { %7767 = vmatmul.mubr.msk.f32.vlgmr.msra.gmra.mxu1 %vm374_vm2, %v1382_v0 }
 0x51f   :  { %7775 = vmatpush3.msra.mxu1 %v1620_v59  ;;  %7776 = vmatprep.mubr.msk.f32.mxu1 %vm8362_vm1, %v8361_v16 }
 0x520   :  { %7784 = vmatprep.subr.mxu1 %v8361_v16 }
 0x546   :  { %v1378_v6 = vpop.xlane.xlu1 %1377 }
 0x547   :  { %8200 = vrcp.f32 %v1378_v6 }
 0x54a   :  { %v1930_v9 = vpop.permute.xlu1 %1929 }
 0x554   :  { %v8201_v7 = vpop.eup %8200 }
 0x555   :  { %v1386_v8 = vmul.f32 %v8201_v7, %v8193_v33 }
 0x557   :  { %7777 = vmatmul.mubr.msk.f32.vlgmr.msra.gmra.mxu1 %vm374_vm2, %v1386_v8 }
 0x558   :  { %7785 = vmatpush3.xpose.msk.msra.mxu1 %vm374_vm2, %v1776_v60  ;;  %7786 = vmatprep.mubr.msk.f32.mxu1 %vm8362_vm1, %v8361_v16 }
 0x559   :  { %7794 = vmatprep.subr.mxu1 %v8361_v16 }
 0x55b   :  { %7787 = vmatmul.mubr.msk.f32.vlgmr.msra.gmra.mxu1 %vm374_vm2, %v1774_v1 }
 0x55c   :  { %7795 = vmatpush3.xpose.msk.msra.mxu1 %vm374_vm2, %v1932_v5  ;;  %7796 = vmatprep.mubr.msk.f32.mxu1 %vm8362_vm1, %v8361_v16 }
 0x55d   :  { %7804 = vmatprep.subr.mxu1 %v8361_v16 }
 0x55f   :  { %7797 = vmatmul.mubr.msk.f32.vlgmr.msra.gmra.mxu1 %vm374_vm2, %v1930_v9 }
 0x560   :  { %7806 = vmatprep.mubr.msk.f32.mxu1 %vm8362_vm1, %v8361_v16 }
 0x59c   :  { %v8718_v10 = vpop.f32.mrf.mxu0 }
 0x59e   :  { %v7763_v11 = vpop.f32.mrf.mxu0 }
 0x5a0   :  { %v8720_v41 = vpop.f32.mrf.mxu0 }
 0x5a2   :  { %v7773_v62 = vpop.f32.mrf.mxu0 }
 0x5a4   :  { %v1769_v12 = vpop.f32.mrf.mxu0 }
 0x5a5   :  { %v2007_v13 = vmul.f32 0.35355338, %v1769_v12 }
 0x5a6   :  { %v7783_v15 = vpop.f32.mrf.mxu0 }
 0x5a7   :  { %v2011_v17 = vadd.f32 %v2007_v13, %v8557_v58 }
 0x5a8   :  { %v1925_v18 = vpop.f32.mrf.mxu0 }
 0x5a9   :  { %v2009_v19 = vmul.f32 0.35355338, %v1925_v18  ;;  %v2015_v23 = vsel %vm374_vm2, %v2011_v17, -inf }
 0x5aa   :  { %2016 = vmax.xlane.f32.xlu0 %v2015_v23  ;;  %v7793_v27 = vpop.f32.mrf.mxu0 }
 0x5ab   :  { %v2013_v28 = vadd.f32 %v2009_v19, %v8563_v2 }
 0x5ad   :  { %v2021_v30 = vsel %vm374_vm2, %v2013_v28, -inf }
 0x5ae   :  { %2022 = vmax.xlane.f32.xlu0 %v2021_v30 }
 0x5de   :  { %v8726_v31 = vpop.f32.mrf.mxu1 }
 0x5e0   :  { %v7768_v33 = vpop.f32.mrf.mxu1 }
 0x617   :  { %v8728_v42 = vpop.f32.mrf.mxu1 }
 0x619   :  { %v7778_v44 = vpop.f32.mrf.mxu1 }
 0x61b   :  { %v1847_v46 = vpop.f32.mrf.mxu1 }
 0x61c   :  { %v2008_v48 = vmul.f32 0.35355338, %v1847_v46 }
 0x61d   :  { %v7788_v49 = vpop.f32.mrf.mxu1 }
 0x61e   :  { %v2012_v50 = vadd.f32 %v2008_v48, %v8566_v3 }
 0x61f   :  { %v2003_v51 = vpop.f32.mrf.mxu1 }
 0x620   :  { %v2010_v53 = vmul.f32 0.35355338, %v2003_v51  ;;  %v2018_v54 = vsel %vm374_vm2, %v2012_v50, -inf }
 0x621   :  { %2019 = vmax.xlane.f32.xlu1 %v2018_v54  ;;  %v7798_v55 = vpop.f32.mrf.mxu1 }
 0x622   :  { %v2014_v56 = vadd.f32 %v2010_v53, %v8572_v14 }
 0x624   :  { %v2024_v57 = vsel %vm374_vm2, %v2014_v56, -inf }
 0x625   :  { %2025 = vmax.xlane.f32.xlu0 %v2024_v57 }
 0x632   :  { %2135 = vrot.lane.b32.xlu1 %v8540_v43, %s8365_s15 }
 0x633   :  { %v2017_v59 = vpop.xlane.xlu0 %2016 }
 0x634   :  { %v2027_v60 = vsub.f32 %v2011_v17, %v2017_v59 }
 0x636   :  { %2211 = vrot.lane.b32.xlu1 %v8600_v4, %s8365_s15  ;;  %v2031_v63 = vmul.f32 1.442695, %v2027_v60 }
 0x637   :  { %v2023_v61 = vpop.xlane.xlu0 %2022 }
 0x638   :  { %v2029_v0 = vsub.f32 %v2013_v28, %v2023_v61  ;;  %8202 = vpow2.f32 %v2031_v63 }
 0x63a   :  { %2287 = vrot.lane.b32.xlu1 %v8548_v47, %s8365_s15  ;;  %v2035_v1 = vmul.f32 1.442695, %v2029_v0 }
 0x63b   :  { %2059 = vrot.lane.b32.xlu0 %v8543_v45, %s8365_s15 }
 0x63c   :  { %8204 = vpow2.f32 %v2035_v1 }
 0x63e   :  { %2443 = vrot.lane.b32.xlu1 %v8496_v34, %s8366_s16 }
 0x63f   :  { %2365 = vrot.lane.b32.xlu0 %v8488_v29, %s8366_s16 }
 0x645   :  { %v8203_v5 = vpop.eup %8202 }
 0x646   :  { %v2039_v6 = vsel %vm374_vm2, %v8203_v5, 0.0 }
 0x649   :  { %v8205_v7 = vpop.eup %8204 }
 0x64a   :  { %v2045_v8 = vsel %vm374_vm2, %v8205_v7, 0.0 }
 0x65e   :  { %2040 = vadd.xlane.f32.xlu0 %v2039_v6 }
 0x662   :  { %2046 = vadd.xlane.f32.xlu0 %v2045_v8 }
 0x678   :  { %2363 = vrot.lane.b32.xlu0 %v8493_v32, %s8366_s16 }
 0x67c   :  { %2521 = vrot.lane.b32.xlu0 %v8498_v35, %s8366_s16 }
 0x680   :  { %2519 = vrot.lane.b32.xlu0 %v8510_v38, %s8366_s16 }
 0x6aa   :  { %v2020_v29 = vpop.xlane.xlu1 %2019 }
 0x6ab   :  { %v2028_v34 = vsub.f32 %v2012_v50, %v2020_v29 }
 0x6ad   :  { %v2033_v9 = vmul.f32 1.442695, %v2028_v34 }
 0x6ae   :  { %v2136_v11 = vpop.permute.xlu1 %2135  ;;  %v2026_v62 = vpop.xlane.xlu0 %2025 }
 0x6af   :  { %8206 = vpow2.f32 %v2033_v9  ;;  %7805 = vmatpush3.msra.mxu1 %v2136_v11  ;;  %v2030_v35 = vsub.f32 %v2014_v56, %v2026_v62 }
 0x6b0   :  { %7814 = vmatprep.subr.mxu1 %v8361_v16 }
 0x6b1   :  { %v2037_v38 = vmul.f32 1.442695, %v2030_v35 }
 0x6b2   :  { %v2060_v12 = vpop.permute.xlu0 %2059  ;;  %v2212_v33 = vpop.permute.xlu1 %2211 }
 0x6b3   :  { %7800 = vmatpush3.msra.mxu0 %v2060_v12  ;;  %8208 = vpow2.f32 %v2037_v38 }
 0x6b4   :  { %7809 = vmatprep.subr.mxu0 %v8361_v16 }
 0x6b6   :  { %v2366_v15 = vpop.permute.xlu0 %2365  ;;  %v2288_v48 = vpop.permute.xlu1 %2287 }
 0x6ba   :  { %v2444_v49 = vpop.permute.xlu1 %2443 }
 0x6bc   :  { %v8207_v32 = vpop.eup %8206 }
 0x6bd   :  { %v2042_v13 = vsel %vm374_vm2, %v8207_v32, 0.0 }
 0x6be   :  { %2043 = vadd.xlane.f32.xlu1 %v2042_v13 }
 0x6c0   :  { %v8209_v19 = vpop.eup %8208 }
 0x6c1   :  { %v2048_v27 = vsel %vm374_vm2, %v8209_v19, 0.0 }
 0x6cf   :  { %2441 = vrot.lane.b32.xlu1 %v8508_v37, %s8366_s16 }
 0x6d3   :  { %2599 = vrot.lane.b32.xlu1 %v8502_v36, %s8366_s16 }
 0x6e7   :  { %v2041_v17 = vpop.xlane.xlu0 %2040 }
 0x6e8   :  { %8210 = vrcp.f32 %v2041_v17 }
 0x6eb   :  { %v2047_v18 = vpop.xlane.xlu0 %2046 }
 0x6ec   :  { %8212 = vrcp.f32 %v2047_v18 }
 0x6ef   :  { %v2364_v30 = vpop.permute.xlu0 %2363 }
 0x6f3   :  { %v2522_v44 = vpop.permute.xlu0 %2521 }
 0x6f5   :  { %v8211_v23 = vpop.eup %8210 }
 0x6f6   :  { %v2052_v28 = vmul.f32 %v8211_v23, %v8203_v5 }
 0x6f7   :  { %2049 = vadd.xlane.f32.xlu1 %v2048_v27  ;;  %v2520_v46 = vpop.permute.xlu0 %2519 }
 0x6f8   :  { %7802 = vmatmul.mubr.msk.f32.vlgmr.msra.gmra.mxu0 %vm374_vm2, %v2052_v28 }
 0x6f9   :  { %v8213_v37 = vpop.eup %8212  ;;  %7810 = vmatpush3.msra.mxu0 %v2212_v33  ;;  %7811 = vmatprep.mubr.msk.f32.mxu0 %vm8362_vm1, %v8361_v16 }
 0x6fa   :  { %7819 = vmatprep.subr.mxu0 %v8361_v16  ;;  %v2056_v36 = vmul.f32 %v8213_v37, %v8205_v7 }
 0x6fc   :  { %7812 = vmatmul.mubr.msk.f32.vlgmr.msra.gmra.mxu0 %vm374_vm2, %v2056_v36 }
 0x6fd   :  { %7820 = vmatpush3.xpose.msk.msra.mxu0 %vm374_vm2, %v2366_v15  ;;  %7821 = vmatprep.mubr.msk.f32.mxu0 %vm8362_vm1, %v8361_v16 }
 0x6fe   :  { %7829 = vmatprep.subr.mxu0 %v8361_v16 }
 0x700   :  { %7822 = vmatmul.mubr.msk.f32.vlgmr.msra.gmra.mxu0 %vm374_vm2, %v2364_v30 }
 0x701   :  { %7830 = vmatpush3.xpose.msk.msra.mxu0 %vm374_vm2, %v2522_v44  ;;  %7831 = vmatprep.mubr.msk.f32.mxu0 %vm8362_vm1, %v8361_v16 }
 0x702   :  { %7839 = vmatprep.subr.mxu0 %v8361_v16 }
 0x704   :  { %7832 = vmatmul.mubr.msk.f32.vlgmr.msra.gmra.mxu0 %vm374_vm2, %v2520_v46 }
 0x705   :  { %7841 = vmatprep.mubr.msk.f32.mxu0 %vm8362_vm1, %v8361_v16 }
 0x708   :  { %2597 = vrot.lane.b32.xlu1 %v8524_v39, %s8366_s16 }
 0x747   :  { %v2044_v50 = vpop.xlane.xlu1 %2043 }
 0x748   :  { %8214 = vrcp.f32 %v2044_v50 }
 0x74b   :  { %v2442_v54 = vpop.permute.xlu1 %2441 }
 0x74f   :  { %v2600_v55 = vpop.permute.xlu1 %2599 }
 0x755   :  { %v8215_v51 = vpop.eup %8214 }
 0x756   :  { %v2054_v53 = vmul.f32 %v8215_v51, %v8207_v32 }
 0x758   :  { %7807 = vmatmul.mubr.msk.f32.vlgmr.msra.gmra.mxu1 %vm374_vm2, %v2054_v53 }
 0x759   :  { %7815 = vmatpush3.msra.mxu1 %v2288_v48  ;;  %7816 = vmatprep.mubr.msk.f32.mxu1 %vm8362_vm1, %v8361_v16 }
 0x75a   :  { %7824 = vmatprep.subr.mxu1 %v8361_v16 }
 0x780   :  { %v2050_v56 = vpop.xlane.xlu1 %2049 }
 0x781   :  { %8216 = vrcp.f32 %v2050_v56 }
 0x784   :  { %v2598_v59 = vpop.permute.xlu1 %2597 }
 0x78e   :  { %v8217_v57 = vpop.eup %8216 }
 0x78f   :  { %v2058_v39 = vmul.f32 %v8217_v57, %v8209_v19 }
 0x791   :  { %7817 = vmatmul.mubr.msk.f32.vlgmr.msra.gmra.mxu1 %vm374_vm2, %v2058_v39 }
 0x792   :  { %7825 = vmatpush3.xpose.msk.msra.mxu1 %vm374_vm2, %v2444_v49  ;;  %7826 = vmatprep.mubr.msk.f32.mxu1 %vm8362_vm1, %v8361_v16 }
 0x793   :  { %7834 = vmatprep.subr.mxu1 %v8361_v16 }
 0x795   :  { %7827 = vmatmul.mubr.msk.f32.vlgmr.msra.gmra.mxu1 %vm374_vm2, %v2442_v54 }
 0x796   :  { %7835 = vmatpush3.xpose.msk.msra.mxu1 %vm374_vm2, %v2600_v55  ;;  %7836 = vmatprep.mubr.msk.f32.mxu1 %vm8362_vm1, %v8361_v16 }
 0x797   :  { %7844 = vmatprep.subr.mxu1 %v8361_v16 }
 0x799   :  { %7837 = vmatmul.mubr.msk.f32.vlgmr.msra.gmra.mxu1 %vm374_vm2, %v2598_v59 }
 0x79a   :  { %7846 = vmatprep.mubr.msk.f32.mxu1 %vm8362_vm1, %v8361_v16 }
 0x7b8   :  { %v2131_v60 = vpop.f32.mrf.mxu0 }
 0x7ba   :  { %v7803_v61 = vpop.f32.mrf.mxu0 }
 0x7bc   :  { %v2283_v63 = vpop.f32.mrf.mxu0 }
 0x7be   :  { %v7813_v0 = vpop.f32.mrf.mxu0 }
 0x7c0   :  { %v2437_v1 = vpop.f32.mrf.mxu0 }
 0x7c1   :  { %v2675_v5 = vmul.f32 0.35355338, %v2437_v1 }
 0x7c2   :  { %v7823_v6 = vpop.f32.mrf.mxu0 }
 0x7c3   :  { %v2679_v7 = vadd.f32 %v2675_v5, %v8557_v58 }
 0x7c4   :  { %v2593_v8 = vpop.f32.mrf.mxu0 }
 0x7c5   :  { %v2677_v29 = vmul.f32 0.35355338, %v2593_v8  ;;  %v2683_v34 = vsel %vm374_vm2, %v2679_v7, -inf }
 0x7c6   :  { %2684 = vmax.xlane.f32.xlu0 %v2683_v34  ;;  %v7833_v9 = vpop.f32.mrf.mxu0 }
 0x7c7   :  { %v2681_v11 = vadd.f32 %v2677_v29, %v8563_v2 }
 0x7c9   :  { %v2689_v62 = vsel %vm374_vm2, %v2681_v11, -inf }
 0x7ca   :  { %2690 = vmax.xlane.f32.xlu0 %v2689_v62 }
 0x818   :  { %v8802_v12 = vpop.f32.mrf.mxu1 }
 0x81a   :  { %v7808_v32 = vpop.f32.mrf.mxu1 }
 0x84f   :  { %v2685_v13 = vpop.xlane.xlu0 %2684 }
 0x850   :  { %v2695_v35 = vsub.f32 %v2679_v7, %v2685_v13 }
 0x851   :  { %v2359_v38 = vpop.f32.mrf.mxu1 }
 0x852   :  { %v2699_v15 = vmul.f32 1.442695, %v2695_v35 }
 0x853   :  { %v2691_v17 = vpop.xlane.xlu0 %2690  ;;  %v7818_v18 = vpop.f32.mrf.mxu1 }
 0x854   :  { %8218 = vpow2.f32 %v2699_v15  ;;  %v2697_v19 = vsub.f32 %v2681_v11, %v2691_v17 }
 0x855   :  { %v2515_v23 = vpop.f32.mrf.mxu1 }
 0x856   :  { %v2703_v27 = vmul.f32 1.442695, %v2697_v19  ;;  %v2676_v28 = vmul.f32 0.35355338, %v2515_v23  ;;  %v3096_v23 = vld [vmem:[%s9591_s3 + $0x18] sm:$0xff] }
 0x857   :  { %v7828_v30 = vpop.f32.mrf.mxu1 }
 0x858   :  { %8220 = vpow2.f32 %v2703_v27  ;;  %v2680_v33 = vadd.f32 %v2676_v28, %v8566_v3  ;;  %v3095_v27 = vld [vmem:[%s9591_s3 + $0x10] sm:$0xff]  ;;  %v3093_v28 = vld [vmem:[%s9591_s3] sm:$0xff] }
 0x859   :  { %v2671_v37 = vpop.f32.mrf.mxu1 }
 0x85a   :  { %v2678_v36 = vmul.f32 0.35355338, %v2671_v37  ;;  %v2686_v44 = vsel %vm374_vm2, %v2680_v33, -inf }
 0x85b   :  { %2687 = vmax.xlane.f32.xlu1 %v2686_v44  ;;  %v7838_v46 = vpop.f32.mrf.mxu1 }
 0x85c   :  { %v2682_v48 = vadd.f32 %v2678_v36, %v8572_v14 }
 0x85e   :  { %v2692_v49 = vsel %vm374_vm2, %v2682_v48, -inf }
 0x85f   :  { %2693 = vmax.xlane.f32.xlu0 %v2692_v49 }
 0x861   :  { %v8219_v50 = vpop.eup %8218 }
 0x862   :  { %v2707_v51 = vsel %vm374_vm2, %v8219_v50, 0.0 }
 0x863   :  { %2708 = vadd.xlane.f32.xlu0 %v2707_v51 }
 0x865   :  { %v8221_v53 = vpop.eup %8220 }
 0x866   :  { %v2713_v54 = vsel %vm374_vm2, %v8221_v53, 0.0 }
 0x867   :  { %2714 = vadd.xlane.f32.xlu0 %v2713_v54 }
 0x87d   :  { %2727 = vrot.lane.b32.xlu0 %v8543_v45, %s8366_s16 }
 0x881   :  { %3035 = vrot.lane.b32.xlu0 %v8718_v10, %s8367_s17 }
 0x885   :  { %3051 = vrot.lane.b32.xlu0 %v2131_v60, %s8368_s18 }
 0x889   :  { %3039 = vrot.lane.b32.xlu0 %v8720_v41, %s8367_s17 }
 0x88d   :  { %3055 = vrot.lane.b32.xlu0 %v2283_v63, %s8368_s18 }
 0x8e4   :  { %v2688_v55 = vpop.xlane.xlu1 %2687 }
 0x8e5   :  { %v2696_v56 = vsub.f32 %v2680_v33, %v2688_v55 }
 0x8e7   :  { %v2701_v57 = vmul.f32 1.442695, %v2696_v56 }
 0x8e8   :  { %v2694_v39 = vpop.xlane.xlu0 %2693 }
 0x8e9   :  { %8222 = vpow2.f32 %v2701_v57  ;;  %v2698_v63 = vsub.f32 %v2682_v48, %v2694_v39 }
 0x8eb   :  { %v2705_v1 = vmul.f32 1.442695, %v2698_v63 }
 0x8ec   :  { %v2709_v59 = vpop.xlane.xlu0 %2708 }
 0x8ed   :  { %8224 = vrcp.f32 %v2709_v59 }
 0x8ee   :  { %8226 = vpow2.f32 %v2705_v1 }
 0x8f0   :  { %v2715_v45 = vpop.xlane.xlu0 %2714 }
 0x8f1   :  { %8228 = vrcp.f32 %v2715_v45 }
 0x8f4   :  { %v2728_v61 = vpop.permute.xlu0 %2727 }
 0x8f5   :  { %7840 = vmatpush3.msra.mxu0 %v2728_v61 }
 0x8f6   :  { %v8223_v0 = vpop.eup %8222  ;;  %7849 = vmatprep.subr.mxu0 %v8361_v16 }
 0x8f7   :  { %v2710_v10 = vsel %vm374_vm2, %v8223_v0, 0.0 }
 0x8f8   :  { %2711 = vadd.xlane.f32.xlu1 %v2710_v10  ;;  %v3036_v32 = vpop.permute.xlu0 %3035  ;;  %v8880_v10 = vsub.s32 3, %v8476_v20 }
 0x8f9   :  { %v3079_v15 = vsel %vm374_vm2, %v8638_v21, %v3036_v32  ;;  %v3094_v21 = vld [vmem:[%s9591_s3 + $0x8] sm:$0xff] }
 0x8fa   :  { %v8225_v60 = vpop.eup %8224 }
 0x8fb   :  { %v2720_v41 = vmul.f32 %v8225_v60, %v8219_v50  ;;  %v8227_v5 = vpop.eup %8226  ;;  %v8885_v60 = vld [vmem:[%s9589_s6] sm:$0xff] }
 0x8fc   :  { %v2716_v6 = vsel %vm374_vm2, %v8227_v5, 0.0  ;;  %v3052_v13 = vpop.permute.xlu0 %3051 }
 0x8fd   :  { %7842 = vmatmul.mubr.msk.f32.vlgmr.msra.gmra.mxu0 %vm374_vm2, %v2720_v41  ;;  %v3084_v17 = vsel %vm3083_vm3, %v3079_v15, %v3052_v13  ;;  %v3100_v41 = vrot.slane %v8885_v60, %v8880_v10 }
 0x8fe   :  { %7851 = vmatprep.mubr.msk.f32.mxu0 %vm8362_vm1, %v8361_v16  ;;  %v8229_v7 = vpop.eup %8228 }
 0x8ff   :  { %v2724_v8 = vmul.f32 %v8229_v7, %v8221_v53  ;;  %v8356_v7 = vld [vmem:[%s9588_s0] sm:$0xff] }
 0x900   :  { %v3040_v35 = vpop.permute.xlu0 %3039 }
 0x901   :  { %v3081_v55 = vsel %vm374_vm2, %v8640_v25, %v3040_v35 }
 0x909   :  { %2803 = vrot.lane.b32.xlu1 %v8540_v43, %s8366_s16 }
 0x90d   :  { %2879 = vrot.lane.b32.xlu1 %v8600_v4, %s8366_s16 }
 0x931   :  { %2717 = vadd.xlane.f32.xlu1 %v2716_v6  ;;  %v8355_v6 = vld [vmem:[%s9588_s0 + $0x8] sm:$0xff] }
 0x942   :  { %2955 = vrot.lane.b32.xlu1 %v8548_v47, %s8366_s16 }
 0x946   :  { %3037 = vrot.lane.b32.xlu1 %v8726_v31, %s8367_s17 }
 0x94a   :  { %3053 = vrot.lane.b32.xlu1 %v8802_v12, %s8368_s18 }
 0x94e   :  { %3041 = vrot.lane.b32.xlu1 %v8728_v42, %s8367_s17 }
 0x952   :  { %3057 = vrot.lane.b32.xlu1 %v2359_v38, %s8368_s18  ;;  %v3056_v38 = vpop.permute.xlu0 %3055 }
 0x953   :  { %v3086_v39 = vsel %vm3083_vm3, %v3081_v55, %v3056_v38 }
 0x981   :  { %v2712_v43 = vpop.xlane.xlu1 %2711 }
 0x982   :  { %8230 = vrcp.f32 %v2712_v43 }
 0x985   :  { %v2804_v4 = vpop.permute.xlu1 %2803 }
 0x986   :  { %7845 = vmatpush3.msra.mxu1 %v2804_v4 }
 0x987   :  { %7854 = vmatprep.subr.mxu1 %v8361_v16 }
 0x989   :  { %v2880_v47 = vpop.permute.xlu1 %2879 }
 0x98a   :  { %7850 = vmatpush3.msra.mxu0 %v2880_v47 }
 0x98b   :  { %7852 = vmatmul.mubr.msk.f32.vlgmr.msra.gmra.mxu0 %vm374_vm2, %v2724_v8  ;;  %7859 = vmatprep.subr.mxu0 %v3096_v23 }
 0x98c   :  { %7860 = vmatpush3.msra.mxu0 %v3096_v23 }
 0x98d   :  { %7861 = vmatprep.subr.mxu0 %v3095_v27 }
 0x98e   :  { %7862 = vmatpush3.msra.mxu0 %v3095_v27 }
 0x98f   :  { %v8231_v31 = vpop.eup %8230  ;;  %7863 = vmatprep.subr.mxu0 %v3094_v21 }
 0x990   :  { %v2722_v29 = vmul.f32 %v8231_v31, %v8223_v0  ;;  %7864 = vmatpush3.msra.mxu0 %v3094_v21 }
 0x991   :  { %7865 = vmatprep.subr.mxu0 %v3093_v28 }
 0x992   :  { %7847 = vmatmul.mubr.msk.f32.vlgmr.msra.gmra.mxu1 %vm374_vm2, %v2722_v29  ;;  %7866 = vmatpush3.msra.mxu0 %v3093_v28 }
 0x993   :  { %7856 = vmatprep.mubr.msk.f32.mxu1 %vm8362_vm1, %v8361_v16 }
 0x9ba   :  { %v2718_v42 = vpop.xlane.xlu1 %2717 }
 0x9bb   :  { %8232 = vrcp.f32 %v2718_v42 }
 0x9bd   :  { %v2799_v34 = vpop.f32.mrf.mxu0 }
 0x9be   :  { %v2956_v9 = vpop.permute.xlu1 %2955  ;;  %3067 = vrot.lane.b32.xlu0 %v2799_v34, %s8369_s19 }
 0x9bf   :  { %7855 = vmatpush3.msra.mxu1 %v2956_v9  ;;  %v7843_v11 = vpop.f32.mrf.mxu0  ;;  %v8357_v9 = vld [vmem:[%s9588_s0 + $0x10] sm:$0xff] }
 0x9c2   :  { %v3038_v48 = vpop.permute.xlu1 %3037 }
 0x9c3   :  { %v3080_v53 = vsel %vm374_vm2, %v8642_v26, %v3038_v48 }
 0x9c6   :  { %v3054_v49 = vpop.permute.xlu1 %3053 }
 0x9c7   :  { %v3085_v56 = vsel %vm3083_vm3, %v3080_v53, %v3054_v49 }
 0x9c8   :  { %v8233_v62 = vpop.eup %8232 }
 0x9c9   :  { %v2726_v12 = vmul.f32 %v8233_v62, %v8227_v5 }
 0x9ca   :  { %v3042_v50 = vpop.permute.xlu1 %3041 }
 0x9cb   :  { %7857 = vmatmul.mubr.msk.f32.vlgmr.msra.gmra.mxu1 %vm374_vm2, %v2726_v12  ;;  %v3082_v26 = vsel %vm374_vm2, %v8648_v52, %v3042_v50  ;;  %v8358_v12 = vld [vmem:[%s9588_s0 + $0x18] sm:$0xff] }
 0x9ce   :  { %v3058_v51 = vpop.permute.xlu1 %3057 }
 0x9cf   :  { %v3087_v61 = vsel %vm3083_vm3, %v3082_v26, %v3058_v51 }
 0xa30   :  { %v3068_v18 = vpop.permute.xlu0 %3067 }
 0xa31   :  { %v3089_v19 = vsel %vm3088_vm4, %v3084_v17, %v3068_v18 }
 0xa32   :  { %7867 = vmatprep.mubr.msk.f32.mxu0 %vm88_vm0, %v3089_v19 }
 0xa4b   :  { %v2951_v30 = vpop.f32.mrf.mxu0 }
 0xa4c   :  { %3071 = vrot.lane.b32.xlu0 %v2951_v30, %s8369_s19  ;;  %v3274_v30 = vld [vmem:[%s9592_s4 + $0x18] sm:$0xff] }
 0xa4d   :  { %v7853_v33 = vpop.f32.mrf.mxu0  ;;  %7873 = vmatprep.subr.mxu1 %v3274_v30 }
 0xa4e   :  { %v3273_v33 = vld [vmem:[%s9592_s4 + $0x10] sm:$0xff]  ;;  %7874 = vmatpush3.msra.mxu1 %v3274_v30  ;;  %v3412_v30 = vld [vmem:[%s9593_s5] sm:$0xff] }
 0xa4f   :  { %7875 = vmatprep.subr.mxu1 %v3273_v33 }
 0xa50   :  { %7876 = vmatpush3.msra.mxu1 %v3273_v33  ;;  %v8972_v33 = vld [vmem:[%s9589_s6 + $0x8] sm:$0x3] }
 0xa52   :  { %v2875_v37 = vpop.f32.mrf.mxu1 }
 0xa53   :  { %3069 = vrot.lane.b32.xlu1 %v2875_v37, %s8369_s19  ;;  %v3272_v37 = vld [vmem:[%s9592_s4 + $0x8] sm:$0xff] }
 0xa54   :  { %v7848_v36 = vpop.f32.mrf.mxu1  ;;  %7877 = vmatprep.subr.mxu1 %v3272_v37 }
 0xa55   :  { %v3271_v36 = vld [vmem:[%s9592_s4] sm:$0xff]  ;;  %7878 = vmatpush3.msra.mxu1 %v3272_v37  ;;  %v3278_v37 = vrot.slane %v8972_v33, %v8479_v22 }
 0xa56   :  { %7879 = vmatprep.subr.mxu1 %v3271_v36 }
 0xa57   :  { %7880 = vmatpush3.msra.mxu1 %v3271_v36 }
 0xa8b   :  { %v3027_v44 = vpop.f32.mrf.mxu1 }
 0xa8c   :  { %3073 = vrot.lane.b32.xlu1 %v3027_v44, %s8369_s19 }
 0xa8d   :  { %v7858_v46 = vpop.f32.mrf.mxu1 }
 0xabe   :  { %v3072_v54 = vpop.permute.xlu0 %3071 }
 0xabf   :  { %v3091_v45 = vsel %vm3088_vm4, %v3086_v39, %v3072_v54 }
 0xac5   :  { %v3070_v57 = vpop.permute.xlu1 %3069 }
 0xac6   :  { %v3090_v59 = vsel %vm3088_vm4, %v3085_v56, %v3070_v57 }
 0xac7   :  { %7868 = vmatmul.mubr.msk.f32.vlgmr.msra.gmra.mxu0 %vm88_vm0, %v3090_v59 }
 0xac8   :  { %7870 = vmatprep.mubr.msk.f32.mxu0 %vm88_vm0, %v3091_v45 }
 0xafe   :  { %v3074_v0 = vpop.permute.xlu1 %3073 }
 0xaff   :  { %v3092_v25 = vsel %vm3088_vm4, %v3087_v61, %v3074_v0  ;;  %v3257_v0 = vsub.s32 5, %v8476_v20 }
 0xb00   :  { %7871 = vmatmul.mubr.msk.f32.gmra.mxu0 %vm88_vm0, %v3092_v25 }
 0xb87   :  { %v7869_v63 = vpop.f32.mrf.mxu0 }
 0xb88   :  { %v3185_v52 = vadd.f32 %v7869_v63, %v3100_v41  ;;  %v3265_v63 = vsub.s32 6, %v8476_v20 }
 0xb89   :  { %v3179_v1 = vpop.f32.mrf.mxu0 }
 0xb8a   :  { %v3180_v5 = vadd.f32 %v3179_v1, %v3100_v41  ;;  %v3199_v43 = vadd.f32 %v8355_v6, %v3185_v52  ;;  %v3266_v6 = vrot.slane %v8885_v60, %v3265_v63 }
 0xb8c   :  { %v3205_v4 = vsel %vm88_vm0, %v3199_v43, 0.0  ;;  %v3198_v47 = vadd.f32 %v8356_v7, %v3180_v5 }
 0xb8d   :  { %3206 = vadd.xlane.f32.xlu1 %v3205_v4 }
 0xb8e   :  { %v3202_v8 = vsel %vm88_vm0, %v3198_v47, 0.0 }
 0xb8f   :  { %3203 = vadd.xlane.f32.xlu0 %v3202_v8 }
 0xbc0   :  { %v7872_v31 = vpop.f32.mrf.mxu0 }
 0xbc1   :  { %v3195_v42 = vadd.f32 %v7872_v31, %v3100_v41 }
 0xbc2   :  { %v3189_v29 = vpop.f32.mrf.mxu0 }
 0xbc3   :  { %v3190_v34 = vadd.f32 %v3189_v29, %v3100_v41  ;;  %v3201_v32 = vadd.f32 %v8358_v12, %v3195_v42  ;;  %v3258_v41 = vrot.slane %v8885_v60, %v3257_v0 }
 0xbc5   :  { %v3200_v11 = vadd.f32 %v8357_v9, %v3190_v34  ;;  %v3211_v13 = vsel %vm88_vm0, %v3201_v32, 0.0 }
 0xbc7   :  { %v3208_v62 = vsel %vm88_vm0, %v3200_v11, 0.0 }
 0xbc8   :  { %3209 = vadd.xlane.f32.xlu0 %v3208_v62 }
 0xbcc   :  { %3212 = vadd.xlane.f32.xlu0 %v3211_v13 }
 0xc16   :  { %v3207_v35 = vpop.xlane.xlu1 %3206 }
 0xc17   :  { %v3216_v38 = vmul.f32 0.03125, %v3207_v35 }
 0xc18   :  { %v3204_v15 = vpop.xlane.xlu0 %3203 }
 0xc19   :  { %v3220_v17 = vsub.f32 %v3199_v43, %v3216_v38  ;;  %v3215_v18 = vmul.f32 0.03125, %v3204_v15 }
 0xc1b   :  { %v3219_v19 = vsub.f32 %v3198_v47, %v3215_v18  ;;  %v3224_v23 = vmul.f32 %v3220_v17, %v3220_v17  ;;  %v3418_v18 = vld [vmem:[%s9593_s5 + $0x30] sm:$0xff] }
 0xc1d   :  { %v3230_v27 = vsel %vm88_vm0, %v3224_v23, 0.0  ;;  %v3223_v21 = vmul.f32 %v3219_v19, %v3219_v19  ;;  %v3416_v23 = vld [vmem:[%s9593_s5 + $0x20] sm:$0xff] }
 0xc1e   :  { %3231 = vadd.xlane.f32.xlu1 %v3230_v27  ;;  %v3415_v27 = vld [vmem:[%s9593_s5 + $0x18] sm:$0xff] }
 0xc1f   :  { %v3227_v28 = vsel %vm88_vm0, %v3223_v21, 0.0  ;;  %v3414_v21 = vld [vmem:[%s9593_s5 + $0x10] sm:$0xff] }
 0xc20   :  { %3228 = vadd.xlane.f32.xlu0 %v3227_v28  ;;  %v3413_v28 = vld [vmem:[%s9593_s5 + $0x8] sm:$0xff] }
 0xc51   :  { %v3210_v44 = vpop.xlane.xlu0 %3209 }
 0xc52   :  { %v3217_v46 = vmul.f32 0.03125, %v3210_v44 }
 0xc54   :  { %v3221_v48 = vsub.f32 %v3200_v11, %v3217_v46 }
 0xc55   :  { %v3213_v49 = vpop.xlane.xlu0 %3212 }
 0xc56   :  { %v3218_v50 = vmul.f32 0.03125, %v3213_v49  ;;  %v3225_v51 = vmul.f32 %v3221_v48, %v3221_v48 }
 0xc58   :  { %v3222_v53 = vsub.f32 %v3201_v32, %v3218_v50  ;;  %v3233_v54 = vsel %vm88_vm0, %v3225_v51, 0.0 }
 0xc59   :  { %3234 = vadd.xlane.f32.xlu0 %v3233_v54 }
 0xc5a   :  { %v3226_v55 = vmul.f32 %v3222_v53, %v3222_v53 }
 0xc5c   :  { %v3236_v56 = vsel %vm88_vm0, %v3226_v55, 0.0 }
 0xc5d   :  { %3237 = vadd.xlane.f32.xlu1 %v3236_v56 }
 0xca7   :  { %v3232_v57 = vpop.xlane.xlu1 %3231 }
 0xca8   :  { %v3240_v39 = vmul.f32 0.03125, %v3232_v57 }
 0xca9   :  { %v3229_v59 = vpop.xlane.xlu0 %3228 }
 0xcaa   :  { %v3244_v45 = vadd.f32 1e-12, %v3240_v39  ;;  %v3239_v26 = vmul.f32 0.03125, %v3229_v59 }
 0xcac   :  { %8234 = vrsqrt.f32 %v3244_v45  ;;  %v3243_v61 = vadd.f32 1e-12, %v3239_v26 }
 0xcae   :  { %8236 = vrsqrt.f32 %v3243_v61 }
 0xcb9   :  { %v8235_v25 = vpop.eup %8234 }
 0xcba   :  { %v3252_v52 = vmul.f32 %v8235_v25, %v3220_v17  ;;  %v3419_v17 = vld [vmem:[%s9593_s5 + $0x38] sm:$0xff] }
 0xcbb   :  { %v8237_v1 = vpop.eup %8236  ;;  %7887 = vmatprep.subr.mxu0 %v3419_v17 }
 0xcbc   :  { %v3251_v5 = vmul.f32 %v8237_v1, %v3219_v19  ;;  %v3260_v43 = vmul.f32 %v3258_v41, %v3252_v52  ;;  %7888 = vmatpush3.msra.mxu0 %v3419_v17  ;;  %v3417_v19 = vld [vmem:[%s9593_s5 + $0x28] sm:$0xff] }
 0xcbd   :  { %7889 = vmatprep.subr.mxu0 %v3418_v18 }
 0xcbe   :  { %v3259_v4 = vmul.f32 %v3258_v41, %v3251_v5  ;;  %v8931_v47 = vadd.f32 %v3266_v6, %v3260_v43  ;;  %7890 = vmatpush3.msra.mxu0 %v3418_v18 }
 0xcbf   :  { %7891 = vmatprep.subr.mxu0 %v3417_v19 }
 0xcc0   :  { %v8929_v7 = vadd.f32 %v3266_v6, %v3259_v4  ;;  %7892 = vmatpush3.msra.mxu0 %v3417_v19 }
 0xcc1   :  { %7893 = vmatprep.subr.mxu0 %v3416_v23 }
 0xcc2   :  { %7881 = vmatprep.mubr.msk.f32.mxu1 %vm88_vm0, %v8929_v7  ;;  %7894 = vmatpush3.msra.mxu0 %v3416_v23 }
 0xcc3   :  { %7882 = vmatmul.mubr.msk.f32.vlgmr.msra.gmra.mxu1 %vm88_vm0, %v8931_v47  ;;  %7895 = vmatprep.subr.mxu0 %v3415_v27 }
 0xcc4   :  { %7896 = vmatpush3.msra.mxu0 %v3415_v27 }
 0xcc5   :  { %7897 = vmatprep.subr.mxu0 %v3414_v21 }
 0xcc6   :  { %7898 = vmatpush3.msra.mxu0 %v3414_v21 }
 0xcc7   :  { %7899 = vmatprep.subr.mxu0 %v3413_v28 }
 0xcc8   :  { %7900 = vmatpush3.msra.mxu0 %v3413_v28 }
 0xcc9   :  { %7901 = vmatprep.subr.mxu0 %v3412_v30 }
 0xcca   :  { %7902 = vmatpush3.msra.mxu0 %v3412_v30  ;;  %v3422_v30 = vsub.s32 4, %v8476_v20 }
 0xce2   :  { %v3235_v8 = vpop.xlane.xlu0 %3234 }
 0xce3   :  { %v3241_v31 = vmul.f32 0.03125, %v3235_v8 }
 0xce5   :  { %v3245_v29 = vadd.f32 1e-12, %v3241_v31 }
 0xce6   :  { %v3238_v42 = vpop.xlane.xlu1 %3237 }
 0xce7   :  { %8238 = vrsqrt.f32 %v3245_v29  ;;  %v3242_v34 = vmul.f32 0.03125, %v3238_v42 }
 0xce9   :  { %v3246_v9 = vadd.f32 1e-12, %v3242_v34 }
 0xceb   :  { %8240 = vrsqrt.f32 %v3246_v9 }
 0xcf4   :  { %v8239_v11 = vpop.eup %8238 }
 0xcf5   :  { %v3253_v62 = vmul.f32 %v8239_v11, %v3221_v48 }
 0xcf7   :  { %v3261_v12 = vmul.f32 %v3258_v41, %v3253_v62 }
 0xcf8   :  { %v8241_v32 = vpop.eup %8240 }
 0xcf9   :  { %v8937_v13 = vadd.f32 %v3266_v6, %v3261_v12  ;;  %v3254_v35 = vmul.f32 %v8241_v32, %v3222_v53 }
 0xcfb   :  { %7884 = vmatprep.mubr.msk.f32.mxu1 %vm88_vm0, %v8937_v13  ;;  %v3262_v38 = vmul.f32 %v3258_v41, %v3254_v35 }
 0xcfd   :  { %v8941_v15 = vadd.f32 %v3266_v6, %v3262_v38 }
 0xcff   :  { %7885 = vmatmul.mubr.msk.f32.gmra.mxu1 %vm88_vm0, %v8941_v15 }
 0xd83   :  { %v7883_v36 = vpop.f32.mrf.mxu1 }
 0xd84   :  { %v3363_v44 = vadd.f32 %v7883_v36, %v3278_v37 }
 0xd85   :  { %v3357_v46 = vpop.f32.mrf.mxu1 }
 0xd86   :  { %v3377_v48 = vmul.f32 %v3363_v44, %v3363_v44  ;;  %v3358_v49 = vadd.f32 %v3357_v46, %v3278_v37 }
 0xd88   :  { %v3381_v50 = vmul.f32 %v3377_v48, %v3363_v44  ;;  %v3376_v51 = vmul.f32 %v3358_v49, %v3358_v49 }
 0xd8a   :  { %v3385_v53 = vmul.f32 0.044715, %v3381_v50  ;;  %v3380_v54 = vmul.f32 %v3376_v51, %v3358_v49 }
 0xd8c   :  { %v3389_v55 = vadd.f32 %v3385_v53, %v3363_v44  ;;  %v3384_v56 = vmul.f32 0.044715, %v3380_v54 }
 0xd8e   :  { %v3393_v57 = vmul.f32 0.7978846, %v3389_v55  ;;  %v3388_v39 = vadd.f32 %v3384_v56, %v3358_v49 }
 0xd90   :  { %8242 = vtanh.f32 %v3393_v57  ;;  %v3392_v59 = vmul.f32 0.7978846, %v3388_v39 }
 0xd92   :  { %8244 = vtanh.f32 %v3392_v59 }
 0xd9d   :  { %v8243_v45 = vpop.eup %8242 }
 0xd9e   :  { %v3401_v26 = vadd.f32 1.0, %v8243_v45 }
 0xd9f   :  { %v8245_v61 = vpop.eup %8244 }
 0xda0   :  { %v3400_v25 = vadd.f32 1.0, %v8245_v61  ;;  %v3405_v41 = vmul.f32 0.5, %v3401_v26 }
 0xda2   :  { %v3404_v52 = vmul.f32 0.5, %v3400_v25  ;;  %v3409_v5 = vmul.f32 %v3405_v41, %v3363_v44 }
 0xda4   :  { %v3408_v1 = vmul.f32 %v3404_v52, %v3358_v49 }
 0xda6   :  { %7903 = vmatprep.mubr.msk.f32.mxu0 %vm3424_vm5, %v3408_v1 }
 0xda7   :  { %7904 = vmatmul.mubr.msk.f32.vlgmr.msra.gmra.mxu0 %vm3424_vm5, %v3409_v5 }
 0xdbf   :  { %v7886_v6 = vpop.f32.mrf.mxu1 }
 0xdc0   :  { %v3373_v43 = vadd.f32 %v7886_v6, %v3278_v37 }
 0xdc1   :  { %v3367_v4 = vpop.f32.mrf.mxu1 }
 0xdc2   :  { %v3379_v8 = vmul.f32 %v3373_v43, %v3373_v43  ;;  %v3368_v31 = vadd.f32 %v3367_v4, %v3278_v37  ;;  %v3423_v37 = vrot.slane %v8885_v60, %v3422_v30  ;;  %v7327_v4 = vld [vmem:[%s9587_s2 + $0x70] sm:$0xff] }
 0xdc4   :  { %v3383_v29 = vmul.f32 %v3379_v8, %v3373_v43  ;;  %v3378_v42 = vmul.f32 %v3368_v31, %v3368_v31  ;;  %v7343_v8 = vld [vmem:[%s9587_s2 + $0xb0] sm:$0xff] }
 0xdc6   :  { %v3387_v34 = vmul.f32 0.044715, %v3383_v29  ;;  %v3382_v9 = vmul.f32 %v3378_v42, %v3368_v31  ;;  %v7342_v29 = vld [vmem:[%s9587_s2 + $0xa8] sm:$0xff]  ;;  %v7325_v42 = vld [vmem:[%s9587_s2 + $0x60] sm:$0xff] }
 0xdc8   :  { %v3391_v11 = vadd.f32 %v3387_v34, %v3373_v43  ;;  %v3386_v62 = vmul.f32 0.044715, %v3382_v9  ;;  %v7341_v34 = vld [vmem:[%s9587_s2 + $0xa0] sm:$0xff] }
 0xdca   :  { %v3395_v12 = vmul.f32 0.7978846, %v3391_v11  ;;  %v3390_v32 = vadd.f32 %v3386_v62, %v3368_v31 }
 0xdcc   :  { %8246 = vtanh.f32 %v3395_v12  ;;  %v3394_v35 = vmul.f32 0.7978846, %v3390_v32 }
 0xdce   :  { %8248 = vtanh.f32 %v3394_v35 }
 0xdd9   :  { %v8247_v38 = vpop.eup %8246 }
 0xdda   :  { %v3403_v17 = vadd.f32 1.0, %v8247_v38 }
 0xddb   :  { %v8249_v18 = vpop.eup %8248 }
 0xddc   :  { %v3402_v19 = vadd.f32 1.0, %v8249_v18  ;;  %v3407_v23 = vmul.f32 0.5, %v3403_v17 }
 0xdde   :  { %v3406_v27 = vmul.f32 0.5, %v3402_v19  ;;  %v3411_v28 = vmul.f32 %v3407_v23, %v3373_v43  ;;  %v7344_v43 = vld [vmem:[%s9587_s2 + $0xb8] sm:$0xff] }
 0xddf   :  { %7937 = vmatprep.subr.mxu0 %v7344_v43  ;;  %v7336_v23 = vld [vmem:[%s9587_s2 + $0x98] sm:$0xff] }
 0xde0   :  { %v3410_v21 = vmul.f32 %v3406_v27, %v3368_v31  ;;  %7938 = vmatpush3.msra.mxu0 %v7344_v43  ;;  %v7326_v31 = vld [vmem:[%s9587_s2 + $0x68] sm:$0xff] }
 0xde1   :  { %7939 = vmatprep.subr.mxu0 %v7343_v8 }
 0xde2   :  { %7906 = vmatprep.mubr.msk.f32.mxu0 %vm3424_vm5, %v3410_v21  ;;  %7940 = vmatpush3.msra.mxu0 %v7343_v8 }
 0xde3   :  { %7907 = vmatmul.mubr.msk.f32.gmra.mxu0 %vm3424_vm5, %v3411_v28  ;;  %7941 = vmatprep.subr.mxu0 %v7342_v29 }
 0xde4   :  { %7942 = vmatpush3.msra.mxu0 %v7342_v29 }
 0xde5   :  { %7943 = vmatprep.subr.mxu0 %v7341_v34 }
 0xde6   :  { %7944 = vmatpush3.msra.mxu0 %v7341_v34 }
 0xde7   :  { %7961 = vmatprep.subr.mxu0 %v8361_v16 }
 0xe67   :  { %v7905_v36 = vpop.f32.mrf.mxu0 }
 0xe68   :  { %v3509_v44 = vadd.f32 %v7905_v36, %v3423_v37 }
 0xe69   :  { %v3503_v46 = vpop.f32.mrf.mxu0 }
 0xe6a   :  { %v3504_v48 = vadd.f32 %v3503_v46, %v3423_v37  ;;  %v3523_v49 = vadd.f32 %v3509_v44, %v8931_v47  ;;  %v3580_v46 = vsub.s32 7, %v8476_v20 }
 0xe6c   :  { %v3529_v50 = vsel %vm88_vm0, %v3523_v49, 0.0  ;;  %v3522_v51 = vadd.f32 %v3504_v48, %v8929_v7 }
 0xe6d   :  { %3530 = vadd.xlane.f32.xlu1 %v3529_v50 }
 0xe6e   :  { %v3526_v53 = vsel %vm88_vm0, %v3522_v51, 0.0 }
 0xe6f   :  { %3527 = vadd.xlane.f32.xlu0 %v3526_v53 }
 0xea3   :  { %v7908_v54 = vpop.f32.mrf.mxu0 }
 0xea4   :  { %v3519_v55 = vadd.f32 %v7908_v54, %v3423_v37  ;;  %v3589_v54 = vrot.slane %v8972_v33, %v8482_v24  ;;  %v7334_v33 = vld [vmem:[%s9587_s2 + $0x88] sm:$0xff] }
 0xea5   :  { %v3513_v56 = vpop.f32.mrf.mxu0 }
 0xea6   :  { %v3514_v57 = vadd.f32 %v3513_v56, %v3423_v37  ;;  %v3525_v39 = vadd.f32 %v3519_v55, %v8941_v15 }
 0xea8   :  { %v3535_v59 = vsel %vm88_vm0, %v3525_v39, 0.0  ;;  %v3524_v45 = vadd.f32 %v3514_v57, %v8937_v13  ;;  %v7328_v13 = vld [vmem:[%s9587_s2 + $0x78] sm:$0xff] }
 0xea9   :  { %3536 = vadd.xlane.f32.xlu1 %v3535_v59  ;;  %7909 = vmatprep.subr.mxu1 %v7328_v13  ;;  %v7333_v59 = vld [vmem:[%s9587_s2 + $0x80] sm:$0xff] }
 0xeaa   :  { %v3532_v47 = vsel %vm88_vm0, %v3524_v45, 0.0  ;;  %7910 = vmatpush3.msra.mxu1 %v7328_v13 }
 0xeab   :  { %3533 = vadd.xlane.f32.xlu0 %v3532_v47  ;;  %7911 = vmatprep.subr.mxu1 %v7327_v4 }
 0xeac   :  { %7912 = vmatpush3.msra.mxu1 %v7327_v4 }
 0xead   :  { %7913 = vmatprep.subr.mxu1 %v7326_v31 }
 0xeae   :  { %7914 = vmatpush3.msra.mxu1 %v7326_v31  ;;  %v7323_v31 = vld [vmem:[%s9589_s6 + $0x10] sm:$0xff] }
 0xeaf   :  { %7915 = vmatprep.subr.mxu1 %v7325_v42  ;;  %v9080_v34 = vrot.slane %v7323_v31, %v8534_v40 }
 0xeb0   :  { %7916 = vmatpush3.msra.mxu1 %v7325_v42 }
 0xeb1   :  { %7923 = vmatprep.subr.mxu1 %v7336_v23 }
 0xef6   :  { %v3531_v26 = vpop.xlane.xlu1 %3530 }
 0xef7   :  { %v3539_v7 = vmul.f32 0.03125, %v3531_v26 }
 0xef8   :  { %v3528_v61 = vpop.xlane.xlu0 %3527 }
 0xef9   :  { %v3543_v25 = vsub.f32 %v3523_v49, %v3539_v7  ;;  %v3538_v41 = vmul.f32 0.03125, %v3528_v61  ;;  %v3581_v49 = vrot.slane %v8885_v60, %v3580_v46  ;;  %v7335_v60 = vld [vmem:[%s9587_s2 + $0x90] sm:$0xff] }
 0xefb   :  { %v3542_v52 = vsub.f32 %v3522_v51, %v3538_v41  ;;  %v3547_v1 = vmul.f32 %v3543_v25, %v3543_v25 }
 0xefd   :  { %v3553_v5 = vsel %vm88_vm0, %v3547_v1, 0.0  ;;  %v3546_v6 = vmul.f32 %v3542_v52, %v3542_v52 }
 0xefe   :  { %3554 = vadd.xlane.f32.xlu1 %v3553_v5 }
 0xeff   :  { %v3550_v15 = vsel %vm88_vm0, %v3546_v6, 0.0 }
 0xf00   :  { %3551 = vadd.xlane.f32.xlu0 %v3550_v15 }
 0xf32   :  { %v3537_v9 = vpop.xlane.xlu1 %3536 }
 0xf33   :  { %v3541_v11 = vmul.f32 0.03125, %v3537_v9 }
 0xf34   :  { %v3534_v62 = vpop.xlane.xlu0 %3533 }
 0xf35   :  { %v3545_v12 = vsub.f32 %v3525_v39, %v3541_v11  ;;  %v3540_v32 = vmul.f32 0.03125, %v3534_v62 }
 0xf37   :  { %v3544_v35 = vsub.f32 %v3524_v45, %v3540_v32  ;;  %v3549_v38 = vmul.f32 %v3545_v12, %v3545_v12 }
 0xf39   :  { %v3559_v17 = vsel %vm88_vm0, %v3549_v38, 0.0  ;;  %v3548_v18 = vmul.f32 %v3544_v35, %v3544_v35 }
 0xf3a   :  { %3560 = vadd.xlane.f32.xlu1 %v3559_v17 }
 0xf3b   :  { %v3556_v19 = vsel %vm88_vm0, %v3548_v18, 0.0  ;;  %v3605_v18 = vrot.slane %v7323_v31, %v8482_v24 }
 0xf3c   :  { %3557 = vadd.xlane.f32.xlu0 %v3556_v19 }
 0xf87   :  { %v3555_v27 = vpop.xlane.xlu1 %3554 }
 0xf88   :  { %v3563_v21 = vmul.f32 0.03125, %v3555_v27 }
 0xf89   :  { %v3552_v28 = vpop.xlane.xlu0 %3551 }
 0xf8a   :  { %v3567_v37 = vadd.f32 1e-12, %v3563_v21  ;;  %v3562_v36 = vmul.f32 0.03125, %v3552_v28 }
 0xf8c   :  { %8250 = vrsqrt.f32 %v3567_v37  ;;  %v3566_v44 = vadd.f32 1e-12, %v3562_v36 }
 0xf8e   :  { %8252 = vrsqrt.f32 %v3566_v44 }
 0xf99   :  { %v8251_v48 = vpop.eup %8250 }
 0xf9a   :  { %v3575_v50 = vmul.f32 %v8251_v48, %v3543_v25 }
 0xf9b   :  { %v8253_v51 = vpop.eup %8252 }
 0xf9c   :  { %v3574_v53 = vmul.f32 %v8253_v51, %v3542_v52  ;;  %v3583_v55 = vmul.f32 %v3581_v49, %v3575_v50 }
 0xf9e   :  { %v3582_v56 = vmul.f32 %v3581_v49, %v3574_v53  ;;  %v9032_v39 = vadd.f32 %v3589_v54, %v3583_v55 }
 0xfa0   :  { %v9030_v57 = vadd.f32 %v3589_v54, %v3582_v56 }
 0xfa2   :  { %7917 = vmatprep.mubr.msk.f32.mxu1 %vm88_vm0, %v9030_v57  ;;  %7945 = vmatprep.mubr.msk.f32.mxu0 %vm88_vm0, %v9030_v57 }
 0xfa3   :  { %7918 = vmatmul.mubr.msk.f32.vlgmr.msra.gmra.mxu1 %vm88_vm0, %v9032_v39  ;;  %7946 = vmatmul.mubr.msk.f32.vlgmr.msra.gmra.mxu0 %vm88_vm0, %v9032_v39 }
 0xfa4   :  { %7924 = vmatpush3.msra.mxu1 %v7336_v23 }
 0xfa5   :  { %7925 = vmatprep.subr.mxu1 %v7335_v60 }
 0xfa6   :  { %7926 = vmatpush3.msra.mxu1 %v7335_v60 }
 0xfa7   :  { %7927 = vmatprep.subr.mxu1 %v7334_v33 }
 0xfa8   :  { %7928 = vmatpush3.msra.mxu1 %v7334_v33 }
 0xfa9   :  { %7929 = vmatprep.subr.mxu1 %v7333_v59 }
 0xfaa   :  { %7930 = vmatpush3.msra.mxu1 %v7333_v59 }
 0xfab   :  { %7951 = vmatprep.subr.mxu1 %v8361_v16 }
 0xfc3   :  { %v3561_v45 = vpop.xlane.xlu1 %3560 }
 0xfc4   :  { %v3565_v47 = vmul.f32 0.03125, %v3561_v45 }
 0xfc5   :  { %v3558_v26 = vpop.xlane.xlu0 %3557 }
 0xfc6   :  { %v3569_v7 = vadd.f32 1e-12, %v3565_v47  ;;  %v3564_v61 = vmul.f32 0.03125, %v3558_v26 }
 0xfc8   :  { %8254 = vrsqrt.f32 %v3569_v7  ;;  %v3568_v25 = vadd.f32 1e-12, %v3564_v61 }
 0xfca   :  { %8256 = vrsqrt.f32 %v3568_v25 }
 0xfd5   :  { %v8255_v41 = vpop.eup %8254 }
 0xfd6   :  { %v3577_v52 = vmul.f32 %v8255_v41, %v3545_v12 }
 0xfd7   :  { %v8257_v1 = vpop.eup %8256 }
 0xfd8   :  { %v3576_v5 = vmul.f32 %v8257_v1, %v3544_v35  ;;  %v3585_v6 = vmul.f32 %v3581_v49, %v3577_v52  ;;  %v3711_v35 = vrot.slane %v7323_v31, %v8479_v22 }
 0xfda   :  { %v3584_v15 = vmul.f32 %v3581_v49, %v3576_v5  ;;  %v9054_v43 = vadd.f32 %v3589_v54, %v3585_v6 }
 0xfdc   :  { %v9052_v13 = vadd.f32 %v3589_v54, %v3584_v15 }
 0xfde   :  { %7920 = vmatprep.mubr.msk.f32.mxu1 %vm88_vm0, %v9052_v13  ;;  %7948 = vmatprep.mubr.msk.f32.mxu0 %vm88_vm0, %v9052_v13 }
 0xfdf   :  { %7921 = vmatmul.mubr.msk.f32.gmra.mxu1 %vm88_vm0, %v9054_v43  ;;  %7949 = vmatmul.mubr.msk.f32.gmra.mxu0 %vm88_vm0, %v9054_v43 }
 0xfe0   :  { %7931 = vmatprep.mubr.msk.f32.mxu1 %vm88_vm0, %v9030_v57  ;;  %7963 = vmatprep.mubr.msk.f32.mxu0 %vm8362_vm1, %v8361_v16 }
 0xfe3   :  { %7932 = vmatmul.mubr.msk.f32.vlgmr.msra.gmra.mxu1 %vm88_vm0, %v9032_v39 }
 0xfe4   :  { %7934 = vmatprep.mubr.msk.f32.mxu1 %vm88_vm0, %v9052_v13 }
 0xfe7   :  { %7935 = vmatmul.mubr.msk.f32.gmra.mxu1 %vm88_vm0, %v9054_v43 }
 0xfe8   :  { %7953 = vmatprep.mubr.msk.f32.mxu1 %vm8362_vm1, %v8361_v16 }
0x1063   :  { %v7919_v4 = vpop.f32.mrf.mxu1  ;;  %v7947_v8 = vpop.f32.mrf.mxu0 }
0x1064   :  { %v9104_v37 = vadd.f32 %v7919_v4, %v3605_v18  ;;  %v9130_v50 = vadd.f32 %v7947_v8, %v9080_v34 }
0x1065   :  { %v3684_v29 = vpop.f32.mrf.mxu1  ;;  %v3872_v42 = vpop.f32.mrf.mxu0 }
0x1066   :  { %v9091_v23 = vadd.f32 %v3684_v29, %v3605_v18  ;;  %v9112_v44 = vadd.f32 %v3872_v42, %v9080_v34 }
0x109f   :  { %v7922_v9 = vpop.f32.mrf.mxu1  ;;  %v7950_v11 = vpop.f32.mrf.mxu0 }
0x10a0   :  { %v9083_v62 = vadd.f32 %v7950_v11, %v9080_v34  ;;  %v9124_v49 = vadd.f32 %v7922_v9, %v3605_v18 }
0x10a1   :  { %v3694_v12 = vpop.f32.mrf.mxu1  ;;  %v9141_v54 = vpop.f32.mrf.mxu0 }
0x10a2   :  { %v9106_v36 = vadd.f32 %v3694_v12, %v3605_v18 }
0x10a3   :  { %v7933_v32 = vpop.f32.mrf.mxu1 }
0x10a4   :  { %v9094_v21 = vadd.f32 %v7933_v32, %v3711_v35 }
0x10a5   :  { %v3778_v38 = vpop.f32.mrf.mxu1 }
0x10a6   :  { %v9086_v17 = vadd.f32 %v3778_v38, %v3711_v35 }
0x10a7   :  { %v7936_v19 = vpop.f32.mrf.mxu1 }
0x10a8   :  { %7952 = vmatpush3.xpose.msk.msra.mxu1 %vm374_vm2, %v9086_v17  ;;  %v9114_v48 = vadd.f32 %v7936_v19, %v3711_v35 }
0x10a9   :  { %v3788_v27 = vpop.f32.mrf.mxu1  ;;  %7956 = vmatprep.subr.mxu1 %v8361_v16 }
0x10aa   :  { %v9096_v28 = vadd.f32 %v3788_v27, %v3711_v35 }
0x10ab   :  { %7954 = vmatmul.mubr.msk.f32.vlgmr.msra.gmra.mxu1 %vm374_vm2, %v9091_v23 }
0x10ac   :  { %7957 = vmatpush3.xpose.msk.msra.mxu1 %vm374_vm2, %v9094_v21  ;;  %7962 = vmatpush3.xpose.msk.msra.mxu0 %vm374_vm2, %v9096_v28 }
0x10ad   :  { %7958 = vmatprep.mubr.msk.f32.mxu1 %vm8362_vm1, %v8361_v16  ;;  %7966 = vmatprep.subr.mxu1 %v8361_v16 }
0x10ae   :  { %7971 = vmatprep.subr.mxu0 %v8361_v16 }
0x10af   :  { %7959 = vmatmul.mubr.msk.f32.vlgmr.msra.gmra.mxu1 %vm374_vm2, %v9104_v37  ;;  %7964 = vmatmul.mubr.msk.f32.vlgmr.msra.gmra.mxu0 %vm374_vm2, %v9106_v36 }
0x10b0   :  { %7967 = vmatpush3.xpose.msk.msra.mxu1 %vm374_vm2, %v9114_v48  ;;  %7972 = vmatpush3.msra.mxu0 %v9112_v44 }
0x10b1   :  { %7968 = vmatprep.mubr.msk.f32.mxu1 %vm8362_vm1, %v8361_v16  ;;  %7976 = vmatprep.subr.mxu1 %v8361_v16 }
0x10b2   :  { %7973 = vmatprep.mubr.msk.f32.mxu0 %vm8362_vm1, %v8361_v16  ;;  %7981 = vmatprep.subr.mxu0 %v8361_v16 }
0x10b3   :  { %7969 = vmatmul.mubr.msk.f32.vlgmr.msra.gmra.mxu1 %vm374_vm2, %v9124_v49 }
0x10b4   :  { %7977 = vmatpush3.msra.mxu1 %v9130_v50  ;;  %7978 = vmatprep.mubr.msk.f32.mxu1 %vm8362_vm1, %v8361_v16 }
0x10b5   :  { %7986 = vmatprep.subr.mxu1 %v8361_v16 }
0x116b   :  { %v3963_v51 = vpop.f32.mrf.mxu1 }
0x116c   :  { %v4195_v53 = vmul.f32 0.35355338, %v3963_v51 }
0x116d   :  { %v7955_v55 = vpop.f32.mrf.mxu1 }
0x116e   :  { %v4199_v56 = vadd.f32 %v4195_v53, %v8557_v58 }
0x116f   :  { %v4039_v60 = vpop.f32.mrf.mxu1  ;;  %v4115_v33 = vpop.f32.mrf.mxu0 }
0x1170   :  { %v4196_v59 = vmul.f32 0.35355338, %v4039_v60  ;;  %v4197_v45 = vmul.f32 0.35355338, %v4115_v33  ;;  %v4203_v47 = vsel %vm374_vm2, %v4199_v56, -inf }
0x1171   :  { %4204 = vmax.xlane.f32.xlu0 %v4203_v47  ;;  %v7960_v26 = vpop.f32.mrf.mxu1  ;;  %v7965_v7 = vpop.f32.mrf.mxu0 }
0x1172   :  { %v4201_v61 = vadd.f32 %v4197_v45, %v8563_v2  ;;  %v4200_v25 = vadd.f32 %v4196_v59, %v8566_v3 }
0x1173   :  { %v4191_v41 = vpop.f32.mrf.mxu1 }
0x1174   :  { %v4198_v52 = vmul.f32 0.35355338, %v4191_v41  ;;  %v4206_v1 = vsel %vm374_vm2, %v4200_v25, -inf  ;;  %v4209_v5 = vsel %vm374_vm2, %v4201_v61, -inf }
0x1175   :  { %4207 = vmax.xlane.f32.xlu1 %v4206_v1  ;;  %v7970_v6 = vpop.f32.mrf.mxu1  ;;  %4210 = vmax.xlane.f32.xlu0 %v4209_v5 }
0x1176   :  { %v4202_v15 = vadd.f32 %v4198_v52, %v8572_v14 }
0x1178   :  { %v4212_v4 = vsel %vm374_vm2, %v4202_v15, -inf }
0x1179   :  { %4213 = vmax.xlane.f32.xlu1 %v4212_v4 }
0x11fa   :  { %v4205_v8 = vpop.xlane.xlu0 %4204 }
0x11fb   :  { %v4215_v31 = vsub.f32 %v4199_v56, %v4205_v8 }
0x11fd   :  { %v4219_v29 = vmul.f32 1.442695, %v4215_v31 }
0x11fe   :  { %v4208_v42 = vpop.xlane.xlu1 %4207  ;;  %v4211_v9 = vpop.xlane.xlu0 %4210 }
0x11ff   :  { %8258 = vpow2.f32 %v4219_v29  ;;  %v4216_v11 = vsub.f32 %v4200_v25, %v4208_v42  ;;  %v4217_v12 = vsub.f32 %v4201_v61, %v4211_v9  ;;  %v9173_v25 = vadd.f32 %v9141_v54, %v9080_v34 }
0x1201   :  { %v4221_v32 = vmul.f32 1.442695, %v4216_v11  ;;  %v4223_v35 = vmul.f32 1.442695, %v4217_v12 }
0x1202   :  { %v4214_v55 = vpop.xlane.xlu1 %4213 }
0x1203   :  { %8260 = vpow2.f32 %v4221_v32  ;;  %v4218_v56 = vsub.f32 %v4202_v15, %v4214_v55 }
0x1204   :  { %8262 = vpow2.f32 %v4223_v35 }
0x1205   :  { %v4225_v60 = vmul.f32 1.442695, %v4218_v56 }
0x1207   :  { %8264 = vpow2.f32 %v4225_v60 }
0x120c   :  { %v8259_v38 = vpop.eup %8258 }
0x120d   :  { %v4227_v18 = vsel %vm374_vm2, %v8259_v38, 0.0 }
0x120e   :  { %4228 = vadd.xlane.f32.xlu0 %v4227_v18 }
0x1210   :  { %v8261_v19 = vpop.eup %8260 }
0x1211   :  { %v8263_v27 = vpop.eup %8262  ;;  %v4230_v51 = vsel %vm374_vm2, %v8261_v19, 0.0 }
0x1212   :  { %4231 = vadd.xlane.f32.xlu1 %v4230_v51  ;;  %v4233_v53 = vsel %vm374_vm2, %v8263_v27, 0.0 }
0x1213   :  { %4234 = vadd.xlane.f32.xlu0 %v4233_v53 }
0x1214   :  { %v8265_v33 = vpop.eup %8264 }
0x1215   :  { %v4236_v59 = vsel %vm374_vm2, %v8265_v33, 0.0 }
0x1223   :  { %4619 = vrot.lane.b32.xlu1 %v9094_v21, %s8364_s14 }
0x1227   :  { %4539 = vrot.lane.b32.xlu1 %v9091_v23, %s8364_s14 }
0x1229   :  { %4541 = vrot.lane.b32.xlu0 %v9086_v17, %s8364_s14 }
0x122b   :  { %4617 = vrot.lane.b32.xlu1 %v9104_v37, %s8364_s14 }
0x122d   :  { %4697 = vrot.lane.b32.xlu0 %v9096_v28, %s8364_s14 }
0x122f   :  { %4775 = vrot.lane.b32.xlu1 %v9114_v48, %s8364_s14 }
0x1231   :  { %4695 = vrot.lane.b32.xlu0 %v9106_v36, %s8364_s14 }
0x1253   :  { %4237 = vadd.xlane.f32.xlu1 %v4236_v59 }
0x1264   :  { %4773 = vrot.lane.b32.xlu1 %v9124_v49, %s8364_s14 }
0x1297   :  { %v4229_v45 = vpop.xlane.xlu0 %4228 }
0x1298   :  { %8266 = vrcp.f32 %v4229_v45 }
0x129b   :  { %v4232_v47 = vpop.xlane.xlu1 %4231 }
0x129c   :  { %8268 = vrcp.f32 %v4232_v47  ;;  %v4235_v26 = vpop.xlane.xlu0 %4234 }
0x129d   :  { %8270 = vrcp.f32 %v4235_v26 }
0x129f   :  { %v4620_v5 = vpop.permute.xlu1 %4619 }
0x12a0   :  { %v4542_v41 = vpop.permute.xlu0 %4541 }
0x12a3   :  { %v4540_v54 = vpop.permute.xlu1 %4539 }
0x12a4   :  { %v4698_v34 = vpop.permute.xlu0 %4697 }
0x12a5   :  { %v8267_v7 = vpop.eup %8266 }
0x12a6   :  { %v4240_v61 = vmul.f32 %v8267_v7, %v8259_v38 }
0x12a7   :  { %v4618_v8 = vpop.permute.xlu1 %4617 }
0x12a8   :  { %7974 = vmatmul.mubr.msk.f32.vlgmr.msra.gmra.mxu0 %vm374_vm2, %v4240_v61  ;;  %v4696_v4 = vpop.permute.xlu0 %4695 }
0x12a9   :  { %v8269_v52 = vpop.eup %8268  ;;  %7982 = vmatpush3.msra.mxu0 %v9173_v25  ;;  %7983 = vmatprep.mubr.msk.f32.mxu0 %vm8362_vm1, %v8361_v16 }
0x12aa   :  { %v8271_v1 = vpop.eup %8270  ;;  %7991 = vmatprep.subr.mxu0 %v8361_v16  ;;  %v4242_v6 = vmul.f32 %v8269_v52, %v8261_v19 }
0x12ab   :  { %v4244_v15 = vmul.f32 %v8271_v1, %v8263_v27  ;;  %v4776_v31 = vpop.permute.xlu1 %4775 }
0x12ac   :  { %7979 = vmatmul.mubr.msk.f32.vlgmr.msra.gmra.mxu1 %vm374_vm2, %v4242_v6 }
0x12ad   :  { %7984 = vmatmul.mubr.msk.f32.vlgmr.msra.gmra.mxu0 %vm374_vm2, %v4244_v15  ;;  %7987 = vmatpush3.msra.mxu1 %v9083_v62 }
0x12ae   :  { %7992 = vmatpush3.xpose.msk.msra.mxu0 %vm374_vm2, %v4542_v41  ;;  %7993 = vmatprep.mubr.msk.f32.mxu0 %vm8362_vm1, %v8361_v16 }
0x12af   :  { %8001 = vmatprep.subr.mxu0 %v8361_v16  ;;  %7988 = vmatprep.mubr.msk.f32.mxu1 %vm8362_vm1, %v8361_v16 }
0x12b0   :  { %7996 = vmatprep.subr.mxu1 %v8361_v16 }
0x12b1   :  { %7994 = vmatmul.mubr.msk.f32.vlgmr.msra.gmra.mxu0 %vm374_vm2, %v4540_v54 }
0x12b2   :  { %8002 = vmatpush3.xpose.msk.msra.mxu0 %vm374_vm2, %v4698_v34  ;;  %8003 = vmatprep.mubr.msk.f32.mxu0 %vm8362_vm1, %v8361_v16 }
0x12b3   :  { %8011 = vmatprep.subr.mxu0 %v8361_v16 }
0x12b5   :  { %8004 = vmatmul.mubr.msk.f32.vlgmr.msra.gmra.mxu0 %vm374_vm2, %v4696_v4 }
0x12b6   :  { %8013 = vmatprep.mubr.msk.f32.mxu0 %vm8362_vm1, %v8361_v16 }
0x12dc   :  { %v4238_v29 = vpop.xlane.xlu1 %4237 }
0x12dd   :  { %8272 = vrcp.f32 %v4238_v29 }
0x12e0   :  { %v4774_v11 = vpop.permute.xlu1 %4773 }
0x12ea   :  { %v8273_v42 = vpop.eup %8272 }
0x12eb   :  { %v4246_v9 = vmul.f32 %v8273_v42, %v8265_v33 }
0x12ed   :  { %7989 = vmatmul.mubr.msk.f32.vlgmr.msra.gmra.mxu1 %vm374_vm2, %v4246_v9 }
0x12ee   :  { %7997 = vmatpush3.xpose.msk.msra.mxu1 %vm374_vm2, %v4620_v5  ;;  %7998 = vmatprep.mubr.msk.f32.mxu1 %vm8362_vm1, %v8361_v16 }
0x12ef   :  { %8006 = vmatprep.subr.mxu1 %v8361_v16 }
0x12f1   :  { %7999 = vmatmul.mubr.msk.f32.vlgmr.msra.gmra.mxu1 %vm374_vm2, %v4618_v8 }
0x12f2   :  { %8007 = vmatpush3.xpose.msk.msra.mxu1 %vm374_vm2, %v4776_v31  ;;  %8008 = vmatprep.mubr.msk.f32.mxu1 %vm8362_vm1, %v8361_v16 }
0x12f3   :  { %8016 = vmatprep.subr.mxu1 %v8361_v16 }
0x12f5   :  { %8009 = vmatmul.mubr.msk.f32.vlgmr.msra.gmra.mxu1 %vm374_vm2, %v4774_v11 }
0x12f6   :  { %8018 = vmatprep.mubr.msk.f32.mxu1 %vm8362_vm1, %v8361_v16 }
0x1368   :  { %v9211_v12 = vpop.f32.mrf.mxu0 }
0x136a   :  { %v7975_v32 = vpop.f32.mrf.mxu0 }
0x136c   :  { %v9213_v35 = vpop.f32.mrf.mxu1 }
0x136d   :  { %v9215_v38 = vpop.f32.mrf.mxu0 }
0x136e   :  { %v7980_v18 = vpop.f32.mrf.mxu1 }
0x136f   :  { %v7985_v19 = vpop.f32.mrf.mxu0 }
0x1371   :  { %v4613_v27 = vpop.f32.mrf.mxu0 }
0x1372   :  { %v4851_v51 = vmul.f32 0.35355338, %v4613_v27 }
0x1373   :  { %v7995_v53 = vpop.f32.mrf.mxu0 }
0x1374   :  { %v4855_v55 = vadd.f32 %v4851_v51, %v8557_v58 }
0x1375   :  { %v4769_v56 = vpop.f32.mrf.mxu0 }
0x1376   :  { %v4853_v60 = vmul.f32 0.35355338, %v4769_v56  ;;  %v4859_v33 = vsel %vm374_vm2, %v4855_v55, -inf }
0x1377   :  { %4860 = vmax.xlane.f32.xlu0 %v4859_v33  ;;  %v8005_v59 = vpop.f32.mrf.mxu0 }
0x1378   :  { %v4857_v45 = vadd.f32 %v4853_v60, %v8563_v2 }
0x137a   :  { %v4865_v47 = vsel %vm374_vm2, %v4857_v45, -inf }
0x137b   :  { %4866 = vmax.xlane.f32.xlu0 %v4865_v47 }
0x13ad   :  { %v9221_v26 = vpop.f32.mrf.mxu1 }
0x13af   :  { %v7990_v7 = vpop.f32.mrf.mxu1 }
0x13b1   :  { %v4691_v61 = vpop.f32.mrf.mxu1 }
0x13b2   :  { %v4852_v41 = vmul.f32 0.35355338, %v4691_v61 }
0x13b3   :  { %v8000_v52 = vpop.f32.mrf.mxu1 }
0x13b4   :  { %v4856_v1 = vadd.f32 %v4852_v41, %v8566_v3 }
0x13b5   :  { %v4847_v5 = vpop.f32.mrf.mxu1 }
0x13b6   :  { %v4854_v6 = vmul.f32 0.35355338, %v4847_v5  ;;  %v4862_v15 = vsel %vm374_vm2, %v4856_v1, -inf }
0x13b7   :  { %4863 = vmax.xlane.f32.xlu1 %v4862_v15  ;;  %v8010_v34 = vpop.f32.mrf.mxu1 }
0x13b8   :  { %v4858_v54 = vadd.f32 %v4854_v6, %v8572_v14 }
0x13ba   :  { %v4868_v4 = vsel %vm374_vm2, %v4858_v54, -inf }
0x13bb   :  { %4869 = vmax.xlane.f32.xlu0 %v4868_v4 }
0x13c8   :  { %4981 = vrot.lane.b32.xlu1 %v9130_v50, %s8364_s14 }
0x13cc   :  { %5058 = vrot.lane.b32.xlu1 %v9173_v25, %s8364_s14 }
0x13d0   :  { %5135 = vrot.lane.b32.xlu1 %v9083_v62, %s8364_s14 }
0x13d1   :  { %4904 = vrot.lane.b32.xlu0 %v9112_v44, %s8364_s14 }
0x13d4   :  { %5291 = vrot.lane.b32.xlu1 %v9094_v21, %s8365_s15 }
0x13d5   :  { %5213 = vrot.lane.b32.xlu0 %v9086_v17, %s8365_s15 }
0x1400   :  { %v4861_v8 = vpop.xlane.xlu0 %4860 }
0x1401   :  { %v4871_v31 = vsub.f32 %v4855_v55, %v4861_v8 }
0x1403   :  { %v4875_v29 = vmul.f32 1.442695, %v4871_v31 }
0x1404   :  { %v4867_v42 = vpop.xlane.xlu0 %4866 }
0x1405   :  { %8274 = vpow2.f32 %v4875_v29  ;;  %v4873_v9 = vsub.f32 %v4857_v45, %v4867_v42 }
0x1407   :  { %v4879_v11 = vmul.f32 1.442695, %v4873_v9 }
0x1409   :  { %8276 = vpow2.f32 %v4879_v11 }
0x1412   :  { %v8275_v32 = vpop.eup %8274 }
0x1413   :  { %v4883_v18 = vsel %vm374_vm2, %v8275_v32, 0.0 }
0x1414   :  { %4884 = vadd.xlane.f32.xlu0 %v4883_v18 }
0x1416   :  { %v8277_v19 = vpop.eup %8276 }
0x1417   :  { %v4889_v27 = vsel %vm374_vm2, %v8277_v19, 0.0 }
0x1418   :  { %4890 = vadd.xlane.f32.xlu0 %v4889_v27 }
0x142e   :  { %5211 = vrot.lane.b32.xlu0 %v9091_v23, %s8365_s15 }
0x1432   :  { %5369 = vrot.lane.b32.xlu0 %v9096_v28, %s8365_s15 }
0x1436   :  { %5367 = vrot.lane.b32.xlu0 %v9106_v36, %s8365_s15 }
0x1440   :  { %v4864_v51 = vpop.xlane.xlu1 %4863 }
0x1441   :  { %v4872_v53 = vsub.f32 %v4856_v1, %v4864_v51 }
0x1443   :  { %v4877_v55 = vmul.f32 1.442695, %v4872_v53 }
0x1444   :  { %v4982_v56 = vpop.permute.xlu1 %4981  ;;  %v4870_v60 = vpop.xlane.xlu0 %4869 }
0x1445   :  { %8278 = vpow2.f32 %v4877_v55  ;;  %8017 = vmatpush3.msra.mxu1 %v4982_v56  ;;  %v4874_v47 = vsub.f32 %v4858_v54, %v4870_v60 }
0x1446   :  { %8026 = vmatprep.subr.mxu1 %v8361_v16 }
0x1447   :  { %v4881_v7 = vmul.f32 1.442695, %v4874_v47 }
0x1448   :  { %v4905_v33 = vpop.permute.xlu0 %4904  ;;  %v5059_v4 = vpop.permute.xlu1 %5058 }
0x1449   :  { %8012 = vmatpush3.msra.mxu0 %v4905_v33  ;;  %8280 = vpow2.f32 %v4881_v7 }
0x144a   :  { %8021 = vmatprep.subr.mxu0 %v8361_v16 }
0x144c   :  { %v5214_v52 = vpop.permute.xlu0 %5213  ;;  %v5136_v42 = vpop.permute.xlu1 %5135 }
0x1450   :  { %v5292_v9 = vpop.permute.xlu1 %5291 }
0x1452   :  { %v8279_v59 = vpop.eup %8278 }
0x1453   :  { %v4886_v45 = vsel %vm374_vm2, %v8279_v59, 0.0 }
0x1454   :  { %4887 = vadd.xlane.f32.xlu1 %v4886_v45 }
0x1456   :  { %v8281_v61 = vpop.eup %8280 }
0x1457   :  { %v4892_v41 = vsel %vm374_vm2, %v8281_v61, 0.0 }
0x1465   :  { %5289 = vrot.lane.b32.xlu1 %v9104_v37, %s8365_s15 }
0x1469   :  { %5447 = vrot.lane.b32.xlu1 %v9114_v48, %s8365_s15 }
0x148d   :  { %4893 = vadd.xlane.f32.xlu1 %v4892_v41 }
0x149d   :  { %v4885_v1 = vpop.xlane.xlu0 %4884 }
0x149e   :  { %8282 = vrcp.f32 %v4885_v1  ;;  %5445 = vrot.lane.b32.xlu1 %v9124_v49, %s8365_s15 }
0x14a1   :  { %v4891_v5 = vpop.xlane.xlu0 %4890 }
0x14a2   :  { %8284 = vrcp.f32 %v4891_v5 }
0x14a5   :  { %v5212_v34 = vpop.permute.xlu0 %5211 }
0x14a9   :  { %v5370_v31 = vpop.permute.xlu0 %5369 }
0x14ab   :  { %v8283_v6 = vpop.eup %8282 }
0x14ac   :  { %v4896_v15 = vmul.f32 %v8283_v6, %v8275_v32 }
0x14ad   :  { %v5368_v29 = vpop.permute.xlu0 %5367 }
0x14ae   :  { %8014 = vmatmul.mubr.msk.f32.vlgmr.msra.gmra.mxu0 %vm374_vm2, %v4896_v15 }
0x14af   :  { %v8285_v54 = vpop.eup %8284  ;;  %8022 = vmatpush3.msra.mxu0 %v5059_v4  ;;  %8023 = vmatprep.mubr.msk.f32.mxu0 %vm8362_vm1, %v8361_v16 }
0x14b0   :  { %8031 = vmatprep.subr.mxu0 %v8361_v16  ;;  %v4900_v8 = vmul.f32 %v8285_v54, %v8277_v19 }
0x14b2   :  { %8024 = vmatmul.mubr.msk.f32.vlgmr.msra.gmra.mxu0 %vm374_vm2, %v4900_v8 }
0x14b3   :  { %8032 = vmatpush3.xpose.msk.msra.mxu0 %vm374_vm2, %v5214_v52  ;;  %8033 = vmatprep.mubr.msk.f32.mxu0 %vm8362_vm1, %v8361_v16 }
0x14b4   :  { %8041 = vmatprep.subr.mxu0 %v8361_v16 }
0x14b6   :  { %8034 = vmatmul.mubr.msk.f32.vlgmr.msra.gmra.mxu0 %vm374_vm2, %v5212_v34 }
0x14b7   :  { %8042 = vmatpush3.xpose.msk.msra.mxu0 %vm374_vm2, %v5370_v31  ;;  %8043 = vmatprep.mubr.msk.f32.mxu0 %vm8362_vm1, %v8361_v16 }
0x14b8   :  { %8051 = vmatprep.subr.mxu0 %v8361_v16 }
0x14ba   :  { %8044 = vmatmul.mubr.msk.f32.vlgmr.msra.gmra.mxu0 %vm374_vm2, %v5368_v29 }
0x14bb   :  { %8053 = vmatprep.mubr.msk.f32.mxu0 %vm8362_vm1, %v8361_v16 }
0x14dd   :  { %v4888_v11 = vpop.xlane.xlu1 %4887 }
0x14de   :  { %8286 = vrcp.f32 %v4888_v11 }
0x14e1   :  { %v5290_v19 = vpop.permute.xlu1 %5289 }
0x14e5   :  { %v5448_v27 = vpop.permute.xlu1 %5447 }
0x14eb   :  { %v8287_v32 = vpop.eup %8286 }
0x14ec   :  { %v4898_v18 = vmul.f32 %v8287_v32, %v8279_v59 }
0x14ee   :  { %8019 = vmatmul.mubr.msk.f32.vlgmr.msra.gmra.mxu1 %vm374_vm2, %v4898_v18 }
0x14ef   :  { %8027 = vmatpush3.msra.mxu1 %v5136_v42  ;;  %8028 = vmatprep.mubr.msk.f32.mxu1 %vm8362_vm1, %v8361_v16 }
0x14f0   :  { %8036 = vmatprep.subr.mxu1 %v8361_v16 }
0x1516   :  { %v4894_v51 = vpop.xlane.xlu1 %4893 }
0x1517   :  { %8288 = vrcp.f32 %v4894_v51 }
0x151a   :  { %v5446_v56 = vpop.permute.xlu1 %5445 }
0x1524   :  { %v8289_v53 = vpop.eup %8288 }
0x1525   :  { %v4902_v55 = vmul.f32 %v8289_v53, %v8281_v61 }
0x1527   :  { %8029 = vmatmul.mubr.msk.f32.vlgmr.msra.gmra.mxu1 %vm374_vm2, %v4902_v55 }
0x1528   :  { %8037 = vmatpush3.xpose.msk.msra.mxu1 %vm374_vm2, %v5292_v9  ;;  %8038 = vmatprep.mubr.msk.f32.mxu1 %vm8362_vm1, %v8361_v16 }
0x1529   :  { %8046 = vmatprep.subr.mxu1 %v8361_v16 }
0x152b   :  { %8039 = vmatmul.mubr.msk.f32.vlgmr.msra.gmra.mxu1 %vm374_vm2, %v5290_v19 }
0x152c   :  { %8047 = vmatpush3.xpose.msk.msra.mxu1 %vm374_vm2, %v5448_v27  ;;  %8048 = vmatprep.mubr.msk.f32.mxu1 %vm8362_vm1, %v8361_v16 }
0x152d   :  { %8056 = vmatprep.subr.mxu1 %v8361_v16 }
0x152f   :  { %8049 = vmatmul.mubr.msk.f32.vlgmr.msra.gmra.mxu1 %vm374_vm2, %v5446_v56 }
0x1530   :  { %8058 = vmatprep.mubr.msk.f32.mxu1 %vm8362_vm1, %v8361_v16 }
0x156e   :  { %v9291_v60 = vpop.f32.mrf.mxu0 }
0x1570   :  { %v8015_v33 = vpop.f32.mrf.mxu0 }
0x1572   :  { %v9293_v59 = vpop.f32.mrf.mxu0 }
0x1574   :  { %v8025_v45 = vpop.f32.mrf.mxu0 }
0x1576   :  { %v5285_v47 = vpop.f32.mrf.mxu0 }
0x1577   :  { %v5523_v7 = vmul.f32 0.35355338, %v5285_v47 }
0x1578   :  { %v8035_v61 = vpop.f32.mrf.mxu0 }
0x1579   :  { %v5527_v41 = vadd.f32 %v5523_v7, %v8557_v58 }
0x157a   :  { %v5441_v52 = vpop.f32.mrf.mxu0 }
0x157b   :  { %v5525_v1 = vmul.f32 0.35355338, %v5441_v52  ;;  %v5531_v5 = vsel %vm374_vm2, %v5527_v41, -inf }
0x157c   :  { %5532 = vmax.xlane.f32.xlu0 %v5531_v5  ;;  %v8045_v6 = vpop.f32.mrf.mxu0 }
0x157d   :  { %v5529_v15 = vadd.f32 %v5525_v1, %v8563_v2 }
0x157f   :  { %v5537_v34 = vsel %vm374_vm2, %v5529_v15, -inf }
0x1580   :  { %5538 = vmax.xlane.f32.xlu0 %v5537_v34 }
0x15ae   :  { %v9299_v4 = vpop.f32.mrf.mxu1 }
0x15b0   :  { %v8020_v54 = vpop.f32.mrf.mxu1 }
0x15e7   :  { %v9301_v8 = vpop.f32.mrf.mxu1 }
0x15e9   :  { %v8030_v31 = vpop.f32.mrf.mxu1 }
0x15eb   :  { %v5363_v29 = vpop.f32.mrf.mxu1 }
0x15ec   :  { %v5524_v42 = vmul.f32 0.35355338, %v5363_v29 }
0x15ed   :  { %v8040_v9 = vpop.f32.mrf.mxu1 }
0x15ee   :  { %v5528_v11 = vadd.f32 %v5524_v42, %v8566_v3 }
0x15ef   :  { %v5519_v32 = vpop.f32.mrf.mxu1 }
0x15f0   :  { %v5526_v18 = vmul.f32 0.35355338, %v5519_v32  ;;  %v5534_v19 = vsel %vm374_vm2, %v5528_v11, -inf }
0x15f1   :  { %5535 = vmax.xlane.f32.xlu1 %v5534_v19  ;;  %v8050_v27 = vpop.f32.mrf.mxu1 }
0x15f2   :  { %v5530_v51 = vadd.f32 %v5526_v18, %v8572_v14 }
0x15f4   :  { %v5540_v53 = vsel %vm374_vm2, %v5530_v51, -inf }
0x15f5   :  { %5541 = vmax.xlane.f32.xlu0 %v5540_v53 }
0x1602   :  { %5651 = vrot.lane.b32.xlu1 %v9130_v50, %s8365_s15 }
0x1605   :  { %v5533_v55 = vpop.xlane.xlu0 %5532 }
0x1606   :  { %5727 = vrot.lane.b32.xlu1 %v9173_v25, %s8365_s15  ;;  %v5543_v56 = vsub.f32 %v5527_v41, %v5533_v55 }
0x1608   :  { %v5547_v45 = vmul.f32 1.442695, %v5543_v56 }
0x1609   :  { %v5539_v33 = vpop.xlane.xlu0 %5538 }
0x160a   :  { %5803 = vrot.lane.b32.xlu1 %v9083_v62, %s8365_s15  ;;  %v5545_v47 = vsub.f32 %v5529_v15, %v5539_v33  ;;  %8290 = vpow2.f32 %v5547_v45 }
0x160b   :  { %5575 = vrot.lane.b32.xlu0 %v9112_v44, %s8365_s15 }
0x160c   :  { %v5551_v7 = vmul.f32 1.442695, %v5545_v47 }
0x160e   :  { %5959 = vrot.lane.b32.xlu1 %v9094_v21, %s8366_s16  ;;  %8292 = vpow2.f32 %v5551_v7 }
0x160f   :  { %5881 = vrot.lane.b32.xlu0 %v9086_v17, %s8366_s16 }
0x1617   :  { %v8291_v61 = vpop.eup %8290 }
0x1618   :  { %v5555_v52 = vsel %vm374_vm2, %v8291_v61, 0.0 }
0x161b   :  { %v8293_v1 = vpop.eup %8292 }
0x161c   :  { %v5561_v5 = vsel %vm374_vm2, %v8293_v1, 0.0 }
0x162e   :  { %5556 = vadd.xlane.f32.xlu0 %v5555_v52 }
0x1632   :  { %5562 = vadd.xlane.f32.xlu0 %v5561_v5 }
0x1648   :  { %5879 = vrot.lane.b32.xlu0 %v9091_v23, %s8366_s16 }
0x164c   :  { %6037 = vrot.lane.b32.xlu0 %v9096_v28, %s8366_s16 }
0x1650   :  { %6035 = vrot.lane.b32.xlu0 %v9106_v36, %s8366_s16 }
0x167a   :  { %v5536_v17 = vpop.xlane.xlu1 %5535 }
0x167b   :  { %v5544_v21 = vsub.f32 %v5528_v11, %v5536_v17 }
0x167d   :  { %v5549_v41 = vmul.f32 1.442695, %v5544_v21 }
0x167e   :  { %v5652_v6 = vpop.permute.xlu1 %5651  ;;  %v5542_v15 = vpop.xlane.xlu0 %5541 }
0x167f   :  { %8294 = vpow2.f32 %v5549_v41  ;;  %8057 = vmatpush3.msra.mxu1 %v5652_v6  ;;  %v5546_v28 = vsub.f32 %v5530_v51, %v5542_v15 }
0x1680   :  { %8066 = vmatprep.subr.mxu1 %v8361_v16 }
0x1681   :  { %v5553_v36 = vmul.f32 1.442695, %v5546_v28 }
0x1682   :  { %v5576_v34 = vpop.permute.xlu0 %5575  ;;  %v5728_v27 = vpop.permute.xlu1 %5727 }
0x1683   :  { %8052 = vmatpush3.msra.mxu0 %v5576_v34  ;;  %8296 = vpow2.f32 %v5553_v36 }
0x1684   :  { %8061 = vmatprep.subr.mxu0 %v8361_v16 }
0x1686   :  { %v5882_v31 = vpop.permute.xlu0 %5881  ;;  %v5804_v55 = vpop.permute.xlu1 %5803 }
0x168a   :  { %v5960_v56 = vpop.permute.xlu1 %5959 }
0x168c   :  { %v8295_v23 = vpop.eup %8294 }
0x168d   :  { %v5558_v54 = vsel %vm374_vm2, %v8295_v23, 0.0 }
0x168e   :  { %5559 = vadd.xlane.f32.xlu1 %v5558_v54 }
0x1690   :  { %v8297_v9 = vpop.eup %8296 }
0x1691   :  { %v5564_v32 = vsel %vm374_vm2, %v8297_v9, 0.0 }
0x169f   :  { %5957 = vrot.lane.b32.xlu1 %v9104_v37, %s8366_s16 }
0x16a3   :  { %6115 = vrot.lane.b32.xlu1 %v9114_v48, %s8366_s16 }
0x16b7   :  { %v5557_v29 = vpop.xlane.xlu0 %5556 }
0x16b8   :  { %8298 = vrcp.f32 %v5557_v29 }
0x16bb   :  { %v5563_v42 = vpop.xlane.xlu0 %5562 }
0x16bc   :  { %8300 = vrcp.f32 %v5563_v42 }
0x16bf   :  { %v5880_v19 = vpop.permute.xlu0 %5879 }
0x16c3   :  { %v6038_v51 = vpop.permute.xlu0 %6037 }
0x16c5   :  { %v8299_v11 = vpop.eup %8298 }
0x16c6   :  { %v5568_v18 = vmul.f32 %v8299_v11, %v8291_v61 }
0x16c7   :  { %5565 = vadd.xlane.f32.xlu1 %v5564_v32  ;;  %v6036_v53 = vpop.permute.xlu0 %6035 }
0x16c8   :  { %8054 = vmatmul.mubr.msk.f32.vlgmr.msra.gmra.mxu0 %vm374_vm2, %v5568_v18 }
0x16c9   :  { %v8301_v37 = vpop.eup %8300  ;;  %8062 = vmatpush3.msra.mxu0 %v5728_v27  ;;  %8063 = vmatprep.mubr.msk.f32.mxu0 %vm8362_vm1, %v8361_v16 }
0x16ca   :  { %8071 = vmatprep.subr.mxu0 %v8361_v16  ;;  %v5572_v48 = vmul.f32 %v8301_v37, %v8293_v1 }
0x16cc   :  { %8064 = vmatmul.mubr.msk.f32.vlgmr.msra.gmra.mxu0 %vm374_vm2, %v5572_v48 }
0x16cd   :  { %8072 = vmatpush3.xpose.msk.msra.mxu0 %vm374_vm2, %v5882_v31  ;;  %8073 = vmatprep.mubr.msk.f32.mxu0 %vm8362_vm1, %v8361_v16 }
0x16ce   :  { %8081 = vmatprep.subr.mxu0 %v8361_v16 }
0x16d0   :  { %8074 = vmatmul.mubr.msk.f32.vlgmr.msra.gmra.mxu0 %vm374_vm2, %v5880_v19 }
0x16d1   :  { %8082 = vmatpush3.xpose.msk.msra.mxu0 %vm374_vm2, %v6038_v51  ;;  %8083 = vmatprep.mubr.msk.f32.mxu0 %vm8362_vm1, %v8361_v16 }
0x16d2   :  { %8091 = vmatprep.subr.mxu0 %v8361_v16 }
0x16d4   :  { %8084 = vmatmul.mubr.msk.f32.vlgmr.msra.gmra.mxu0 %vm374_vm2, %v6036_v53 }
0x16d5   :  { %8093 = vmatprep.mubr.msk.f32.mxu0 %vm8362_vm1, %v8361_v16 }
0x16d8   :  { %6113 = vrot.lane.b32.xlu1 %v9124_v49, %s8366_s16 }
0x1717   :  { %v5560_v33 = vpop.xlane.xlu1 %5559 }
0x1718   :  { %8302 = vrcp.f32 %v5560_v33 }
0x171b   :  { %v5958_v7 = vpop.permute.xlu1 %5957 }
0x171f   :  { %v6116_v61 = vpop.permute.xlu1 %6115 }
0x1725   :  { %v8303_v45 = vpop.eup %8302 }
0x1726   :  { %v5570_v47 = vmul.f32 %v8303_v45, %v8295_v23 }
0x1728   :  { %8059 = vmatmul.mubr.msk.f32.vlgmr.msra.gmra.mxu1 %vm374_vm2, %v5570_v47 }
0x1729   :  { %8067 = vmatpush3.msra.mxu1 %v5804_v55  ;;  %8068 = vmatprep.mubr.msk.f32.mxu1 %vm8362_vm1, %v8361_v16 }
0x172a   :  { %8076 = vmatprep.subr.mxu1 %v8361_v16 }
0x1750   :  { %v5566_v52 = vpop.xlane.xlu1 %5565 }
0x1751   :  { %8304 = vrcp.f32 %v5566_v52 }
0x1754   :  { %v6114_v5 = vpop.permute.xlu1 %6113 }
0x175e   :  { %v8305_v1 = vpop.eup %8304 }
0x175f   :  { %v5574_v49 = vmul.f32 %v8305_v1, %v8297_v9 }
0x1761   :  { %8069 = vmatmul.mubr.msk.f32.vlgmr.msra.gmra.mxu1 %vm374_vm2, %v5574_v49 }
0x1762   :  { %8077 = vmatpush3.xpose.msk.msra.mxu1 %vm374_vm2, %v5960_v56  ;;  %8078 = vmatprep.mubr.msk.f32.mxu1 %vm8362_vm1, %v8361_v16 }
0x1763   :  { %8086 = vmatprep.subr.mxu1 %v8361_v16 }
0x1765   :  { %8079 = vmatmul.mubr.msk.f32.vlgmr.msra.gmra.mxu1 %vm374_vm2, %v5958_v7 }
0x1766   :  { %8087 = vmatpush3.xpose.msk.msra.mxu1 %vm374_vm2, %v6116_v61  ;;  %8088 = vmatprep.mubr.msk.f32.mxu1 %vm8362_vm1, %v8361_v16 }
0x1767   :  { %8096 = vmatprep.subr.mxu1 %v8361_v16 }
0x1769   :  { %8089 = vmatmul.mubr.msk.f32.vlgmr.msra.gmra.mxu1 %vm374_vm2, %v6114_v5 }
0x176a   :  { %8098 = vmatprep.mubr.msk.f32.mxu1 %vm8362_vm1, %v8361_v16 }
0x1788   :  { %v5647_v17 = vpop.f32.mrf.mxu0 }
0x178a   :  { %v8055_v21 = vpop.f32.mrf.mxu0 }
0x178c   :  { %v5799_v41 = vpop.f32.mrf.mxu0 }
0x178e   :  { %v8065_v6 = vpop.f32.mrf.mxu0 }
0x1790   :  { %v5953_v15 = vpop.f32.mrf.mxu0 }
0x1791   :  { %v6191_v34 = vmul.f32 0.35355338, %v5953_v15 }
0x1792   :  { %v8075_v23 = vpop.f32.mrf.mxu0 }
0x1793   :  { %v6195_v54 = vadd.f32 %v6191_v34, %v8557_v58 }
0x1794   :  { %v6109_v28 = vpop.f32.mrf.mxu0 }
0x1795   :  { %v6193_v36 = vmul.f32 0.35355338, %v6109_v28  ;;  %v6199_v31 = vsel %vm374_vm2, %v6195_v54, -inf }
0x1796   :  { %6200 = vmax.xlane.f32.xlu0 %v6199_v31  ;;  %v8085_v29 = vpop.f32.mrf.mxu0 }
0x1797   :  { %v6197_v42 = vadd.f32 %v6193_v36, %v8563_v2 }
0x1799   :  { %v6205_v9 = vsel %vm374_vm2, %v6197_v42, -inf }
0x179a   :  { %6206 = vmax.xlane.f32.xlu0 %v6205_v9 }
0x17e8   :  { %v5723_v11 = vpop.f32.mrf.mxu1 }
0x17ea   :  { %v8060_v32 = vpop.f32.mrf.mxu1 }
0x181f   :  { %v6201_v18 = vpop.xlane.xlu0 %6200 }
0x1820   :  { %v6211_v19 = vsub.f32 %v6195_v54, %v6201_v18 }
0x1821   :  { %v5875_v27 = vpop.f32.mrf.mxu1 }
0x1822   :  { %v6215_v37 = vmul.f32 1.442695, %v6211_v19 }
0x1823   :  { %v8070_v48 = vpop.f32.mrf.mxu1  ;;  %v6207_v51 = vpop.xlane.xlu0 %6206 }
0x1824   :  { %8306 = vpow2.f32 %v6215_v37  ;;  %v6213_v58 = vsub.f32 %v6197_v42, %v6207_v51 }
0x1825   :  { %v6031_v53 = vpop.f32.mrf.mxu1 }
0x1826   :  { %v6219_v55 = vmul.f32 1.442695, %v6213_v58  ;;  %v6192_v56 = vmul.f32 0.35355338, %v6031_v53 }
0x1827   :  { %v8080_v33 = vpop.f32.mrf.mxu1 }
0x1828   :  { %8308 = vpow2.f32 %v6219_v55  ;;  %v6196_v2 = vadd.f32 %v6192_v56, %v8566_v3 }
0x1829   :  { %v6187_v45 = vpop.f32.mrf.mxu1 }
0x182a   :  { %v6194_v47 = vmul.f32 0.35355338, %v6187_v45  ;;  %v6202_v7 = vsel %vm374_vm2, %v6196_v2, -inf  ;;  %v7399_v45 = vld [vmem:[%s9591_s3 + $0x30] sm:$0xff] }
0x182b   :  { %6203 = vmax.xlane.f32.xlu1 %v6202_v7  ;;  %v8090_v61 = vpop.f32.mrf.mxu1 }
0x182c   :  { %v6198_v52 = vadd.f32 %v6194_v47, %v8572_v14  ;;  %v7397_v47 = vld [vmem:[%s9591_s3 + $0x20] sm:$0xff] }
0x182e   :  { %v6208_v1 = vsel %vm374_vm2, %v6198_v52, -inf }
0x182f   :  { %6209 = vmax.xlane.f32.xlu0 %v6208_v1 }
0x1831   :  { %v8307_v49 = vpop.eup %8306 }
0x1832   :  { %v6223_v5 = vsel %vm374_vm2, %v8307_v49, 0.0 }
0x1833   :  { %6224 = vadd.xlane.f32.xlu0 %v6223_v5 }
0x1835   :  { %v8309_v21 = vpop.eup %8308 }
0x1836   :  { %v6229_v6 = vsel %vm374_vm2, %v8309_v21, 0.0 }
0x1837   :  { %6230 = vadd.xlane.f32.xlu0 %v6229_v6 }
0x184d   :  { %6243 = vrot.lane.b32.xlu0 %v9112_v44, %s8366_s16 }
0x1851   :  { %6551 = vrot.lane.b32.xlu0 %v9291_v60, %s8367_s17 }
0x1855   :  { %6567 = vrot.lane.b32.xlu0 %v5647_v17, %s8368_s18 }
0x1859   :  { %6555 = vrot.lane.b32.xlu0 %v9293_v59, %s8367_s17 }
0x185d   :  { %6571 = vrot.lane.b32.xlu0 %v5799_v41, %s8368_s18 }
0x18b4   :  { %v6204_v3 = vpop.xlane.xlu1 %6203 }
0x18b5   :  { %v6212_v14 = vsub.f32 %v6196_v2, %v6204_v3  ;;  %v7400_v2 = vld [vmem:[%s9591_s3 + $0x38] sm:$0xff] }
0x18b7   :  { %v6217_v15 = vmul.f32 1.442695, %v6212_v14 }
0x18b8   :  { %v6210_v34 = vpop.xlane.xlu0 %6209 }
0x18b9   :  { %8310 = vpow2.f32 %v6217_v15  ;;  %v6214_v41 = vsub.f32 %v6198_v52, %v6210_v34 }
0x18bb   :  { %v6221_v36 = vmul.f32 1.442695, %v6214_v41 }
0x18bc   :  { %v6225_v23 = vpop.xlane.xlu0 %6224 }
0x18bd   :  { %8312 = vrcp.f32 %v6225_v23 }
0x18be   :  { %8314 = vpow2.f32 %v6221_v36  ;;  %v9452_v36 = vld [vmem:[%s9589_s6 + $0x10] sm:$0xff] }
0x18c0   :  { %v6231_v54 = vpop.xlane.xlu0 %6230 }
0x18c1   :  { %8316 = vrcp.f32 %v6231_v54 }
0x18c4   :  { %v6244_v28 = vpop.permute.xlu0 %6243 }
0x18c5   :  { %8092 = vmatpush3.msra.mxu0 %v6244_v28 }
0x18c6   :  { %v8311_v44 = vpop.eup %8310  ;;  %8101 = vmatprep.subr.mxu0 %v8361_v16 }
0x18c7   :  { %v6226_v60 = vsel %vm374_vm2, %v8311_v44, 0.0 }
0x18c8   :  { %6227 = vadd.xlane.f32.xlu1 %v6226_v60  ;;  %v6552_v48 = vpop.permute.xlu0 %6551 }
0x18c9   :  { %v6595_v55 = vsel %vm374_vm2, %v9211_v12, %v6552_v48  ;;  %v7398_v12 = vld [vmem:[%s9591_s3 + $0x28] sm:$0xff] }
0x18ca   :  { %v8313_v17 = vpop.eup %8312 }
0x18cb   :  { %v6236_v59 = vmul.f32 %v8313_v17, %v8307_v49  ;;  %v8315_v31 = vpop.eup %8314 }
0x18cc   :  { %v6232_v29 = vsel %vm374_vm2, %v8315_v31, 0.0  ;;  %v6568_v51 = vpop.permute.xlu0 %6567 }
0x18cd   :  { %8094 = vmatmul.mubr.msk.f32.vlgmr.msra.gmra.mxu0 %vm374_vm2, %v6236_v59 }
0x18ce   :  { %8103 = vmatprep.mubr.msk.f32.mxu0 %vm8362_vm1, %v8361_v16  ;;  %v8317_v42 = vpop.eup %8316 }
0x18d0   :  { %v6556_v58 = vpop.permute.xlu0 %6555 }
0x18d1   :  { %v6597_v23 = vsel %vm374_vm2, %v9215_v38, %v6556_v58 }
0x18d4   :  { %v6572_v53 = vpop.permute.xlu0 %6571 }
0x18d9   :  { %6319 = vrot.lane.b32.xlu1 %v9130_v50, %s8366_s16 }
0x18dd   :  { %6395 = vrot.lane.b32.xlu1 %v9173_v25, %s8366_s16 }
0x1901   :  { %6233 = vadd.xlane.f32.xlu1 %v6232_v29 }
0x1912   :  { %6471 = vrot.lane.b32.xlu1 %v9083_v62, %s8366_s16  ;;  %v6240_v62 = vmul.f32 %v8317_v42, %v8309_v21 }
0x1916   :  { %6553 = vrot.lane.b32.xlu1 %v9299_v4, %s8367_s17 }
0x191a   :  { %6569 = vrot.lane.b32.xlu1 %v5723_v11, %s8368_s18 }
0x191e   :  { %6557 = vrot.lane.b32.xlu1 %v9301_v8, %s8367_s17 }
0x1922   :  { %6573 = vrot.lane.b32.xlu1 %v5875_v27, %s8368_s18 }
0x1951   :  { %v6228_v50 = vpop.xlane.xlu1 %6227 }
0x1952   :  { %8318 = vrcp.f32 %v6228_v50 }
0x1955   :  { %v6320_v25 = vpop.permute.xlu1 %6319 }
0x1956   :  { %8097 = vmatpush3.msra.mxu1 %v6320_v25 }
0x1957   :  { %8106 = vmatprep.subr.mxu1 %v8361_v16 }
0x1959   :  { %v6396_v9 = vpop.permute.xlu1 %6395 }
0x195a   :  { %8102 = vmatpush3.msra.mxu0 %v6396_v9 }
0x195b   :  { %8104 = vmatmul.mubr.msk.f32.vlgmr.msra.gmra.mxu0 %vm374_vm2, %v6240_v62  ;;  %8111 = vmatprep.subr.mxu0 %v7400_v2 }
0x195c   :  { %8112 = vmatpush3.msra.mxu0 %v7400_v2  ;;  %v7407_v2 = vld [vmem:[%s9592_s4 + $0x30] sm:$0xff] }
0x195d   :  { %8113 = vmatprep.subr.mxu0 %v7399_v45 }
0x195e   :  { %8114 = vmatpush3.msra.mxu0 %v7399_v45  ;;  %v7406_v45 = vld [vmem:[%s9592_s4 + $0x28] sm:$0xff] }
0x195f   :  { %v8319_v4 = vpop.eup %8318  ;;  %8115 = vmatprep.subr.mxu0 %v7398_v12 }
0x1960   :  { %v6238_v11 = vmul.f32 %v8319_v4, %v8311_v44  ;;  %8116 = vmatpush3.msra.mxu0 %v7398_v12  ;;  %v6601_v44 = vsel %vm3083_vm3, %v6597_v23, %v6572_v53  ;;  %v7405_v12 = vld [vmem:[%s9592_s4 + $0x20] sm:$0xff] }
0x1961   :  { %8117 = vmatprep.subr.mxu0 %v7397_v47 }
0x1962   :  { %8099 = vmatmul.mubr.msk.f32.vlgmr.msra.gmra.mxu1 %vm374_vm2, %v6238_v11  ;;  %8118 = vmatpush3.msra.mxu0 %v7397_v47 }
0x1963   :  { %8108 = vmatprep.mubr.msk.f32.mxu1 %vm8362_vm1, %v8361_v16  ;;  %v6599_v16 = vsel %vm3083_vm3, %v6595_v55, %v6568_v51 }
0x198a   :  { %v6234_v8 = vpop.xlane.xlu1 %6233 }
0x198b   :  { %8320 = vrcp.f32 %v6234_v8 }
0x198d   :  { %v6315_v32 = vpop.f32.mrf.mxu0 }
0x198e   :  { %v6472_v18 = vpop.permute.xlu1 %6471  ;;  %6583 = vrot.lane.b32.xlu0 %v6315_v32, %s8369_s19 }
0x198f   :  { %8107 = vmatpush3.msra.mxu1 %v6472_v18  ;;  %v8095_v19 = vpop.f32.mrf.mxu0 }
0x1992   :  { %v6554_v21 = vpop.permute.xlu1 %6553 }
0x1993   :  { %v6596_v15 = vsel %vm374_vm2, %v9213_v35, %v6554_v21 }
0x1996   :  { %v6570_v6 = vpop.permute.xlu1 %6569 }
0x1997   :  { %v6600_v54 = vsel %vm3083_vm3, %v6596_v15, %v6570_v6 }
0x1998   :  { %v8321_v27 = vpop.eup %8320 }
0x1999   :  { %v6242_v37 = vmul.f32 %v8321_v27, %v8315_v31  ;;  %v6615_v31 = vrot.slane %v9452_v36, %v8880_v10 }
0x199a   :  { %v6558_v3 = vpop.permute.xlu1 %6557 }
0x199b   :  { %8109 = vmatmul.mubr.msk.f32.vlgmr.msra.gmra.mxu1 %vm374_vm2, %v6242_v37  ;;  %v6598_v35 = vsel %vm374_vm2, %v9221_v26, %v6558_v3 }
0x199e   :  { %v6574_v14 = vpop.permute.xlu1 %6573 }
0x199f   :  { %v6602_v59 = vsel %vm3083_vm3, %v6598_v35, %v6574_v14 }
0x1a00   :  { %v6584_v56 = vpop.permute.xlu0 %6583 }
0x1a01   :  { %v6603_v33 = vsel %vm3088_vm4, %v6599_v16, %v6584_v56 }
0x1a02   :  { %8119 = vmatprep.mubr.msk.f32.mxu0 %vm88_vm0, %v6603_v33 }
0x1a1b   :  { %v6467_v7 = vpop.f32.mrf.mxu0 }
0x1a1c   :  { %6587 = vrot.lane.b32.xlu0 %v6467_v7, %s8369_s19 }
0x1a1d   :  { %v8105_v61 = vpop.f32.mrf.mxu0 }
0x1a22   :  { %v6391_v52 = vpop.f32.mrf.mxu1 }
0x1a23   :  { %6585 = vrot.lane.b32.xlu1 %v6391_v52, %s8369_s19 }
0x1a24   :  { %v8100_v1 = vpop.f32.mrf.mxu1 }
0x1a5b   :  { %v6543_v49 = vpop.f32.mrf.mxu1 }
0x1a5c   :  { %6589 = vrot.lane.b32.xlu1 %v6543_v49, %s8369_s19 }
0x1a5d   :  { %v8110_v5 = vpop.f32.mrf.mxu1 }
0x1a8e   :  { %v6588_v34 = vpop.permute.xlu0 %6587 }
0x1a8f   :  { %v6605_v17 = vsel %vm3088_vm4, %v6601_v44, %v6588_v34 }
0x1a95   :  { %v6586_v28 = vpop.permute.xlu1 %6585 }
0x1a96   :  { %v6604_v60 = vsel %vm3088_vm4, %v6600_v54, %v6586_v28 }
0x1a97   :  { %8120 = vmatmul.mubr.msk.f32.vlgmr.msra.gmra.mxu0 %vm88_vm0, %v6604_v60  ;;  %v6772_v60 = vrot.slane %v9452_v36, %v3257_v0 }
0x1a98   :  { %8122 = vmatprep.mubr.msk.f32.mxu0 %vm88_vm0, %v6605_v17 }
0x1ace   :  { %v6590_v41 = vpop.permute.xlu1 %6589 }
0x1acf   :  { %v6606_v38 = vsel %vm3088_vm4, %v6602_v59, %v6590_v41  ;;  %v6780_v41 = vrot.slane %v9452_v36, %v3265_v63 }
0x1ad0   :  { %8123 = vmatmul.mubr.msk.f32.gmra.mxu0 %vm88_vm0, %v6606_v38 }
0x1b57   :  { %v8121_v29 = vpop.f32.mrf.mxu0 }
0x1b58   :  { %v6700_v50 = vadd.f32 %v8121_v29, %v6615_v31 }
0x1b59   :  { %v6694_v25 = vpop.f32.mrf.mxu0 }
0x1b5a   :  { %v6714_v26 = vadd.f32 %v6700_v50, %v9032_v39  ;;  %v6695_v42 = vadd.f32 %v6694_v25, %v6615_v31 }
0x1b5c   :  { %v6713_v9 = vadd.f32 %v6695_v42, %v9030_v57  ;;  %v6720_v62 = vsel %vm88_vm0, %v6714_v26, 0.0 }
0x1b5d   :  { %6721 = vadd.xlane.f32.xlu1 %v6720_v62 }
0x1b5e   :  { %v6717_v4 = vsel %vm88_vm0, %v6713_v9, 0.0 }
0x1b5f   :  { %6718 = vadd.xlane.f32.xlu0 %v6717_v4 }
0x1b90   :  { %v8124_v11 = vpop.f32.mrf.mxu0 }
0x1b91   :  { %v6710_v32 = vadd.f32 %v8124_v11, %v6615_v31 }
0x1b92   :  { %v6704_v8 = vpop.f32.mrf.mxu0 }
0x1b93   :  { %v6705_v18 = vadd.f32 %v6704_v8, %v6615_v31  ;;  %v6716_v27 = vadd.f32 %v6710_v32, %v9054_v43  ;;  %v7408_v43 = vld [vmem:[%s9592_s4 + $0x38] sm:$0xff] }
0x1b94   :  { %8125 = vmatprep.subr.mxu1 %v7408_v43 }
0x1b95   :  { %v6715_v19 = vadd.f32 %v6705_v18, %v9052_v13  ;;  %v6726_v39 = vsel %vm88_vm0, %v6716_v27, 0.0  ;;  %8126 = vmatpush3.msra.mxu1 %v7408_v43 }
0x1b96   :  { %8127 = vmatprep.subr.mxu1 %v7407_v2 }
0x1b97   :  { %v6723_v37 = vsel %vm88_vm0, %v6715_v19, 0.0  ;;  %8128 = vmatpush3.msra.mxu1 %v7407_v2 }
0x1b98   :  { %6724 = vadd.xlane.f32.xlu0 %v6723_v37  ;;  %8129 = vmatprep.subr.mxu1 %v7406_v45  ;;  %v7420_v37 = vld [vmem:[%s9593_s5 + $0x78] sm:$0xff] }
0x1b99   :  { %8130 = vmatpush3.msra.mxu1 %v7406_v45  ;;  %8139 = vmatprep.subr.mxu0 %v7420_v37 }
0x1b9a   :  { %8131 = vmatprep.subr.mxu1 %v7405_v12  ;;  %8140 = vmatpush3.msra.mxu0 %v7420_v37 }
0x1b9b   :  { %8132 = vmatpush3.msra.mxu1 %v7405_v12 }
0x1b9c   :  { %6727 = vadd.xlane.f32.xlu0 %v6726_v39  ;;  %v7419_v39 = vld [vmem:[%s9593_s5 + $0x70] sm:$0xff] }
0x1b9d   :  { %8141 = vmatprep.subr.mxu0 %v7419_v39 }
0x1b9e   :  { %8142 = vmatpush3.msra.mxu0 %v7419_v39 }
0x1be6   :  { %v6722_v57 = vpop.xlane.xlu1 %6721 }
0x1be7   :  { %v6730_v48 = vmul.f32 0.03125, %v6722_v57  ;;  %v7418_v57 = vld [vmem:[%s9593_s5 + $0x68] sm:$0xff] }
0x1be8   :  { %v6719_v51 = vpop.xlane.xlu0 %6718  ;;  %8143 = vmatprep.subr.mxu0 %v7418_v57 }
0x1be9   :  { %v6734_v58 = vsub.f32 %v6714_v26, %v6730_v48  ;;  %v6729_v53 = vmul.f32 0.03125, %v6719_v51  ;;  %8144 = vmatpush3.msra.mxu0 %v7418_v57  ;;  %v7417_v48 = vld [vmem:[%s9593_s5 + $0x60] sm:$0xff]  ;;  %v7416_v51 = vld [vmem:[%s9593_s5 + $0x58] sm:$0xff]  ;;  %v6939_v57 = vrot.slane %v9452_v36, %v3422_v30 }
0x1bea   :  { %8145 = vmatprep.subr.mxu0 %v7417_v48 }
0x1beb   :  { %v6733_v55 = vsub.f32 %v6713_v9, %v6729_v53  ;;  %v6738_v16 = vmul.f32 %v6734_v58, %v6734_v58  ;;  %8146 = vmatpush3.msra.mxu0 %v7417_v48  ;;  %v7414_v53 = vld [vmem:[%s9593_s5 + $0x48] sm:$0xff] }
0x1bec   :  { %8147 = vmatprep.subr.mxu0 %v7416_v51 }
0x1bed   :  { %v6744_v56 = vsel %vm88_vm0, %v6738_v16, 0.0  ;;  %v6737_v33 = vmul.f32 %v6733_v55, %v6733_v55  ;;  %8148 = vmatpush3.msra.mxu0 %v7416_v51  ;;  %v9529_v16 = vld [vmem:[%s9589_s6 + $0x18] sm:$0x3] }
0x1bee   :  { %6745 = vadd.xlane.f32.xlu1 %v6744_v56  ;;  %v6793_v56 = vrot.slane %v9529_v16, %v8479_v22 }
0x1bef   :  { %v6741_v13 = vsel %vm88_vm0, %v6737_v33, 0.0 }
0x1bf0   :  { %6742 = vadd.xlane.f32.xlu0 %v6741_v13 }
0x1c21   :  { %v6725_v47 = vpop.xlane.xlu0 %6724 }
0x1c22   :  { %v6731_v7 = vmul.f32 0.03125, %v6725_v47 }
0x1c24   :  { %v6735_v61 = vsub.f32 %v6715_v19, %v6731_v7 }
0x1c25   :  { %v6728_v52 = vpop.xlane.xlu0 %6727 }
0x1c26   :  { %v6732_v1 = vmul.f32 0.03125, %v6728_v52  ;;  %v6739_v49 = vmul.f32 %v6735_v61, %v6735_v61 }
0x1c28   :  { %v6736_v5 = vsub.f32 %v6716_v27, %v6732_v1  ;;  %v6747_v21 = vsel %vm88_vm0, %v6739_v49, 0.0 }
0x1c29   :  { %6748 = vadd.xlane.f32.xlu0 %v6747_v21 }
0x1c2a   :  { %v6740_v6 = vmul.f32 %v6736_v5, %v6736_v5 }
0x1c2c   :  { %v6750_v3 = vsel %vm88_vm0, %v6740_v6, 0.0 }
0x1c2d   :  { %6751 = vadd.xlane.f32.xlu1 %v6750_v3 }
0x1c77   :  { %v6746_v14 = vpop.xlane.xlu1 %6745 }
0x1c78   :  { %v6754_v15 = vmul.f32 0.03125, %v6746_v14 }
0x1c79   :  { %v6743_v34 = vpop.xlane.xlu0 %6742 }
0x1c7a   :  { %v6758_v23 = vadd.f32 1e-12, %v6754_v15  ;;  %v6753_v54 = vmul.f32 0.03125, %v6743_v34 }
0x1c7c   :  { %8322 = vrsqrt.f32 %v6758_v23  ;;  %v6757_v28 = vadd.f32 1e-12, %v6753_v54 }
0x1c7e   :  { %8324 = vrsqrt.f32 %v6757_v28 }
0x1c89   :  { %v8323_v44 = vpop.eup %8322 }
0x1c8a   :  { %v6766_v17 = vmul.f32 %v8323_v44, %v6734_v58  ;;  %v7415_v58 = vld [vmem:[%s9593_s5 + $0x50] sm:$0xff] }
0x1c8b   :  { %v8325_v35 = vpop.eup %8324  ;;  %8149 = vmatprep.subr.mxu0 %v7415_v58 }
0x1c8c   :  { %v6765_v59 = vmul.f32 %v8325_v35, %v6733_v55  ;;  %v6774_v38 = vmul.f32 %v6772_v60, %v6766_v17  ;;  %8150 = vmatpush3.msra.mxu0 %v7415_v58  ;;  %v7413_v55 = vld [vmem:[%s9593_s5 + $0x40] sm:$0xff] }
0x1c8d   :  { %8151 = vmatprep.subr.mxu0 %v7414_v53 }
0x1c8e   :  { %v6773_v31 = vmul.f32 %v6772_v60, %v6765_v59  ;;  %v9488_v50 = vadd.f32 %v6780_v41, %v6774_v38  ;;  %8152 = vmatpush3.msra.mxu0 %v7414_v53 }
0x1c8f   :  { %8153 = vmatprep.subr.mxu0 %v7413_v55 }
0x1c90   :  { %v9486_v29 = vadd.f32 %v6780_v41, %v6773_v31  ;;  %8154 = vmatpush3.msra.mxu0 %v7413_v55 }
0x1c92   :  { %8133 = vmatprep.mubr.msk.f32.mxu1 %vm88_vm0, %v9486_v29 }
0x1c93   :  { %8134 = vmatmul.mubr.msk.f32.vlgmr.msra.gmra.mxu1 %vm88_vm0, %v9488_v50 }
0x1cb2   :  { %v6749_v0 = vpop.xlane.xlu0 %6748 }
0x1cb3   :  { %v6755_v25 = vmul.f32 0.03125, %v6749_v0 }
0x1cb5   :  { %v6759_v26 = vadd.f32 1e-12, %v6755_v25 }
0x1cb6   :  { %v6752_v42 = vpop.xlane.xlu1 %6751 }
0x1cb7   :  { %8326 = vrsqrt.f32 %v6759_v26  ;;  %v6756_v9 = vmul.f32 0.03125, %v6752_v42 }
0x1cb9   :  { %v6760_v62 = vadd.f32 1e-12, %v6756_v9 }
0x1cbb   :  { %8328 = vrsqrt.f32 %v6760_v62 }
0x1cc4   :  { %v8327_v63 = vpop.eup %8326 }
0x1cc5   :  { %v6767_v4 = vmul.f32 %v8327_v63, %v6735_v61 }
0x1cc7   :  { %v6775_v11 = vmul.f32 %v6772_v60, %v6767_v4 }
0x1cc8   :  { %v8329_v8 = vpop.eup %8328 }
0x1cc9   :  { %v9494_v32 = vadd.f32 %v6780_v41, %v6775_v11  ;;  %v6768_v18 = vmul.f32 %v8329_v8, %v6736_v5 }
0x1ccb   :  { %8136 = vmatprep.mubr.msk.f32.mxu1 %vm88_vm0, %v9494_v32  ;;  %v6776_v19 = vmul.f32 %v6772_v60, %v6768_v18 }
0x1ccd   :  { %v9498_v27 = vadd.f32 %v6780_v41, %v6776_v19 }
0x1ccf   :  { %8137 = vmatmul.mubr.msk.f32.gmra.mxu1 %vm88_vm0, %v9498_v27 }
0x1d53   :  { %v8135_v33 = vpop.f32.mrf.mxu1 }
0x1d54   :  { %v6878_v13 = vadd.f32 %v8135_v33, %v6793_v56 }
0x1d55   :  { %v6872_v43 = vpop.f32.mrf.mxu1 }
0x1d56   :  { %v6892_v2 = vmul.f32 %v6878_v13, %v6878_v13  ;;  %v6873_v45 = vadd.f32 %v6872_v43, %v6793_v56 }
0x1d58   :  { %v6896_v12 = vmul.f32 %v6892_v2, %v6878_v13  ;;  %v6891_v47 = vmul.f32 %v6873_v45, %v6873_v45 }
0x1d5a   :  { %v6900_v7 = vmul.f32 0.044715, %v6896_v12  ;;  %v6895_v61 = vmul.f32 %v6891_v47, %v6873_v45 }
0x1d5c   :  { %v6904_v52 = vadd.f32 %v6900_v7, %v6878_v13  ;;  %v6899_v1 = vmul.f32 0.044715, %v6895_v61 }
0x1d5e   :  { %v6908_v49 = vmul.f32 0.7978846, %v6904_v52  ;;  %v6903_v5 = vadd.f32 %v6899_v1, %v6873_v45 }
0x1d60   :  { %8330 = vtanh.f32 %v6908_v49  ;;  %v6907_v21 = vmul.f32 0.7978846, %v6903_v5 }
0x1d62   :  { %8332 = vtanh.f32 %v6907_v21 }
0x1d6d   :  { %v8331_v6 = vpop.eup %8330 }
0x1d6e   :  { %v6916_v3 = vadd.f32 1.0, %v8331_v6 }
0x1d6f   :  { %v8333_v14 = vpop.eup %8332 }
0x1d70   :  { %v6915_v15 = vadd.f32 1.0, %v8333_v14  ;;  %v6920_v34 = vmul.f32 0.5, %v6916_v3 }
0x1d72   :  { %v6919_v23 = vmul.f32 0.5, %v6915_v15  ;;  %v6924_v28 = vmul.f32 %v6920_v34, %v6878_v13 }
0x1d74   :  { %v6923_v54 = vmul.f32 %v6919_v23, %v6873_v45 }
0x1d76   :  { %8155 = vmatprep.mubr.msk.f32.mxu0 %vm3424_vm5, %v6923_v54 }
0x1d77   :  { %8156 = vmatmul.mubr.msk.f32.vlgmr.msra.gmra.mxu0 %vm3424_vm5, %v6924_v28 }
0x1d8f   :  { %v8138_v44 = vpop.f32.mrf.mxu1 }
0x1d90   :  { %v6888_v60 = vadd.f32 %v8138_v44, %v6793_v56 }
0x1d91   :  { %v6882_v17 = vpop.f32.mrf.mxu1 }
0x1d92   :  { %v6894_v35 = vmul.f32 %v6888_v60, %v6888_v60  ;;  %v6883_v59 = vadd.f32 %v6882_v17, %v6793_v56 }
0x1d94   :  { %v6898_v41 = vmul.f32 %v6894_v35, %v6888_v60  ;;  %v6893_v38 = vmul.f32 %v6883_v59, %v6883_v59 }
0x1d96   :  { %v6902_v31 = vmul.f32 0.044715, %v6898_v41  ;;  %v6897_v0 = vmul.f32 %v6893_v38, %v6883_v59 }
0x1d98   :  { %v6906_v25 = vadd.f32 %v6902_v31, %v6888_v60  ;;  %v6901_v26 = vmul.f32 0.044715, %v6897_v0 }
0x1d9a   :  { %v6910_v42 = vmul.f32 0.7978846, %v6906_v25  ;;  %v6905_v9 = vadd.f32 %v6901_v26, %v6883_v59 }
0x1d9c   :  { %8334 = vtanh.f32 %v6910_v42  ;;  %v6909_v62 = vmul.f32 0.7978846, %v6905_v9 }
0x1d9e   :  { %8336 = vtanh.f32 %v6909_v62 }
0x1da9   :  { %v8335_v63 = vpop.eup %8334 }
0x1daa   :  { %v6918_v4 = vadd.f32 1.0, %v8335_v63 }
0x1dab   :  { %v8337_v11 = vpop.eup %8336 }
0x1dac   :  { %v6917_v8 = vadd.f32 1.0, %v8337_v11  ;;  %v6922_v18 = vmul.f32 0.5, %v6918_v4  ;;  %v7096_v4 = vrot.slane %v9452_v36, %v3580_v46 }
0x1dae   :  { %v6921_v19 = vmul.f32 0.5, %v6917_v8  ;;  %v6926_v39 = vmul.f32 %v6922_v18, %v6888_v60  ;;  %v7104_v8 = vrot.slane %v9529_v16, %v8482_v24 }
0x1db0   :  { %v6925_v37 = vmul.f32 %v6921_v19, %v6883_v59 }
0x1db2   :  { %8158 = vmatprep.mubr.msk.f32.mxu0 %vm3424_vm5, %v6925_v37 }
0x1db3   :  { %8159 = vmatmul.mubr.msk.f32.gmra.mxu0 %vm3424_vm5, %v6926_v39 }
0x1e37   :  { %v8157_v48 = vpop.f32.mrf.mxu0 }
0x1e38   :  { %v7024_v51 = vadd.f32 %v8157_v48, %v6939_v57 }
0x1e39   :  { %v7018_v58 = vpop.f32.mrf.mxu0 }
0x1e3a   :  { %v7038_v53 = vadd.f32 %v7024_v51, %v9488_v50  ;;  %v7019_v55 = vadd.f32 %v7018_v58, %v6939_v57 }
0x1e3c   :  { %v7037_v56 = vadd.f32 %v7019_v55, %v9486_v29  ;;  %v7044_v33 = vsel %vm88_vm0, %v7038_v53, 0.0  ;;  %v8360_v29 = vld [vmem:[%s9590_s1] sm:$0xf] }
0x1e3d   :  { %7045 = vadd.xlane.f32.xlu0 %v7044_v33  ;;  %v7119_v61 = vrot.slane %v8360_v29, %v8479_v22  ;;  %v7112_v52 = vrot.slane %v8360_v29, %v8482_v24  ;;  %v7170_v22 = vsel %vm7169_vm6, %v8360_v29, 0.0  ;;  %v7133_v34 = vrot.slane %v8360_v29, %v8880_v10 }
0x1e3e   :  { %v7041_v13 = vsel %vm88_vm0, %v7037_v56, 0.0  ;;  %v7126_v38 = vrot.slane %v8360_v29, %v8534_v40 }
0x1e41   :  { %7042 = vadd.xlane.f32.xlu0 %v7041_v13 }
0x1e73   :  { %v8160_v43 = vpop.f32.mrf.mxu0 }
0x1e74   :  { %v7034_v2 = vadd.f32 %v8160_v43, %v6939_v57 }
0x1e75   :  { %v7028_v45 = vpop.f32.mrf.mxu0 }
0x1e76   :  { %v7040_v12 = vadd.f32 %v7034_v2, %v9498_v27  ;;  %v7029_v30 = vadd.f32 %v7028_v45, %v6939_v57 }
0x1e78   :  { %v7039_v47 = vadd.f32 %v7029_v30, %v9494_v32  ;;  %v7050_v7 = vsel %vm88_vm0, %v7040_v12, 0.0 }
0x1e79   :  { %7051 = vadd.xlane.f32.xlu1 %v7050_v7 }
0x1e7a   :  { %v7047_v50 = vsel %vm88_vm0, %v7039_v47, 0.0 }
0x1e7d   :  { %7048 = vadd.xlane.f32.xlu1 %v7047_v50 }
0x1e8e   :  { %7121 = vbcast.lane.b32.xlu1 %v7119_v61, 256 }
0x1e92   :  { %7114 = vbcast.lane.b32.xlu1 %v7112_v52, 256 }
0x1ec6   :  { %v7046_v27 = vpop.xlane.xlu0 %7045 }
0x1ec7   :  { %v7054_v1 = vmul.f32 0.03125, %v7046_v27 }
0x1ec9   :  { %v7058_v49 = vsub.f32 %v7038_v53, %v7054_v1 }
0x1eca   :  { %v7043_v32 = vpop.xlane.xlu0 %7042 }
0x1ecb   :  { %v7053_v5 = vmul.f32 0.03125, %v7043_v32  ;;  %v7062_v21 = vmul.f32 %v7058_v49, %v7058_v49 }
0x1ecd   :  { %v7057_v6 = vsub.f32 %v7037_v56, %v7053_v5  ;;  %v7068_v3 = vsel %vm88_vm0, %v7062_v21, 0.0 }
0x1ece   :  { %7069 = vadd.xlane.f32.xlu0 %v7068_v3 }
0x1ecf   :  { %v7061_v14 = vmul.f32 %v7057_v6, %v7057_v6 }
0x1ed1   :  { %v7065_v15 = vsel %vm88_vm0, %v7061_v14, 0.0 }
0x1ed2   :  { %7066 = vadd.xlane.f32.xlu0 %v7065_v15 }
0x1ed6   :  { %7171 = vadd.xlane.f32.xlu0 %v7170_v22 }
0x1eec   :  { %7135 = vbcast.lane.b32.xlu0 %v7133_v34, 256 }
0x1f02   :  { %v7052_v23 = vpop.xlane.xlu1 %7051 }
0x1f03   :  { %v7056_v54 = vmul.f32 0.03125, %v7052_v23 }
0x1f05   :  { %v9556_v28 = vsub.f32 %v7040_v12, %v7056_v54 }
0x1f06   :  { %v7049_v44 = vpop.xlane.xlu1 %7048 }
0x1f07   :  { %v7055_v60 = vmul.f32 0.03125, %v7049_v44  ;;  %v7064_v17 = vmul.f32 %v9556_v28, %v9556_v28 }
0x1f09   :  { %v9560_v35 = vsub.f32 %v7039_v47, %v7055_v60  ;;  %v7074_v59 = vsel %vm88_vm0, %v7064_v17, 0.0 }
0x1f0a   :  { %7075 = vadd.xlane.f32.xlu1 %v7074_v59  ;;  %v7122_v37 = vpop.permute.xlu1 %7121 }
0x1f0b   :  { %v7063_v41 = vmul.f32 %v9560_v35, %v9560_v35 }
0x1f0d   :  { %v7071_v10 = vsel %vm88_vm0, %v7063_v41, 0.0 }
0x1f0e   :  { %7072 = vadd.xlane.f32.xlu1 %v7071_v10  ;;  %v7115_v20 = vpop.permute.xlu1 %7114 }
0x1f1f   :  { %7128 = vbcast.lane.b32.xlu1 %v7126_v38, 256 }
0x1f57   :  { %v7070_v31 = vpop.xlane.xlu0 %7069 }
0x1f58   :  { %v7078_v0 = vmul.f32 0.03125, %v7070_v31 }
0x1f5a   :  { %v7082_v25 = vadd.f32 1e-12, %v7078_v0 }
0x1f5b   :  { %v7067_v26 = vpop.xlane.xlu0 %7066 }
0x1f5c   :  { %8338 = vrsqrt.f32 %v7082_v25  ;;  %v7077_v42 = vmul.f32 0.03125, %v7067_v26 }
0x1f5e   :  { %v7081_v9 = vadd.f32 1e-12, %v7077_v42 }
0x1f5f   :  { %v7172_v62 = vpop.xlane.xlu0 %7171 }
0x1f60   :  { %8340 = vrsqrt.f32 %v7081_v9  ;;  %v7173_v63 = vmax.f32 %v7172_v62, 1e-09 }
0x1f62   :  { %8342 = vrcp.f32 %v7173_v63 }
0x1f63   :  { %v7136_v44 = vpop.permute.xlu0 %7135 }
0x1f69   :  { %v8339_v11 = vpop.eup %8338 }
0x1f6a   :  { %v7090_v40 = vmul.f32 %v8339_v11, %v7058_v49 }
0x1f6c   :  { %v7098_v18 = vmul.f32 %v7096_v4, %v7090_v40 }
0x1f6d   :  { %v8341_v19 = vpop.eup %8340 }
0x1f6e   :  { %v7106_v39 = vadd.f32 %v7104_v8, %v7098_v18  ;;  %v7089_v57 = vmul.f32 %v8341_v19, %v7057_v6 }
0x1f6f   :  { %v8343_v16 = vpop.eup %8342 }
0x1f70   :  { %v7138_v48 = vmul.f32 %v7122_v37, %v7106_v39  ;;  %v7097_v51 = vmul.f32 %v7096_v4, %v7089_v57  ;;  %v7176_v12 = vrot.slane %v8343_v16, 1  ;;  %v7178_v11 = vrot.slane %v8343_v16, 3 }
0x1f71   :  { %v7177_v57 = vrot.slane %v8343_v16, 2 }
0x1f72   :  { %v7148_v58 = vsel %vm88_vm0, %v7138_v48, 0.0  ;;  %v7105_v53 = vadd.f32 %v7104_v8, %v7097_v51 }
0x1f73   :  { %v7149_v55 = vrot.slane %v7148_v58, 4 }
0x1f74   :  { %v7137_v56 = vmul.f32 %v7115_v20, %v7105_v53 }
0x1f75   :  { %v7150_v46 = vadd.f32 %v7149_v55, %v7148_v58 }
0x1f76   :  { %v7141_v36 = vsel %vm88_vm0, %v7137_v56, 0.0 }
0x1f77   :  { %v7151_v33 = vrot.slane %v7150_v46, 2  ;;  %v7142_v24 = vrot.slane %v7141_v36, 4 }
0x1f79   :  { %v7152_v13 = vadd.f32 %v7151_v33, %v7150_v46  ;;  %v7143_v43 = vadd.f32 %v7142_v24, %v7141_v36 }
0x1f7b   :  { %v7153_v2 = vrot.slane %v7152_v13, 1  ;;  %v7144_v45 = vrot.slane %v7143_v43, 2 }
0x1f7d   :  { %v7154_v30 = vadd.f32 %v7153_v2, %v7152_v13  ;;  %v7145_v47 = vadd.f32 %v7144_v45, %v7143_v43 }
0x1f7f   :  { %v7146_v7 = vrot.slane %v7145_v47, 1  ;;  %v7184_v50 = vmul.f32 %v7176_v12, %v7154_v30 }
0x1f81   :  { %v7147_v29 = vadd.f32 %v7146_v7, %v7145_v47  ;;  %v7200_v61 = vmul.f32 %v7184_v50, %v7184_v50 }
0x1f83   :  { %v7183_v52 = vmul.f32 %v8343_v16, %v7147_v29  ;;  %v7203_v1 = vrot.slane %v7200_v61, 7 }
0x1f85   :  { %v7199_v27 = vmul.f32 %v7183_v52, %v7183_v52 }
0x1f87   :  { %v7204_v49 = vsel %vm7192_vm7, %v7203_v1, %v7199_v27 }
0x1f88   :  { %v7206_v32 = vsel %vm7195_vm8, %v7204_v49, 0.0 }
0x1f89   :  { %7207 = vadd.xlane.f32.xlu1 %v7206_v32 }
0x1f93   :  { %v7076_v5 = vpop.xlane.xlu1 %7075 }
0x1f94   :  { %v7080_v21 = vmul.f32 0.03125, %v7076_v5 }
0x1f96   :  { %v7084_v6 = vadd.f32 1e-12, %v7080_v21 }
0x1f97   :  { %v7073_v3 = vpop.xlane.xlu1 %7072 }
0x1f98   :  { %8344 = vrsqrt.f32 %v7084_v6  ;;  %v7079_v14 = vmul.f32 0.03125, %v7073_v3 }
0x1f9a   :  { %v7083_v15 = vadd.f32 1e-12, %v7079_v14 }
0x1f9b   :  { %v7129_v10 = vpop.permute.xlu1 %7128 }
0x1f9c   :  { %8346 = vrsqrt.f32 %v7083_v15 }
0x1fa5   :  { %v8345_v22 = vpop.eup %8344 }
0x1fa6   :  { %v7092_v34 = vmul.f32 %v8345_v22, %v9556_v28 }
0x1fa8   :  { %v7100_v23 = vmul.f32 %v7096_v4, %v7092_v34 }
0x1fa9   :  { %v8347_v54 = vpop.eup %8346 }
0x1faa   :  { %v7108_v60 = vadd.f32 %v7104_v8, %v7100_v23  ;;  %v7091_v17 = vmul.f32 %v8347_v54, %v9560_v35 }
0x1fac   :  { %v7140_v59 = vmul.f32 %v7136_v44, %v7108_v60  ;;  %v7099_v41 = vmul.f32 %v7096_v4, %v7091_v17 }
0x1fae   :  { %v7162_v38 = vsel %vm88_vm0, %v7140_v59, 0.0  ;;  %v7107_v31 = vadd.f32 %v7104_v8, %v7099_v41 }
0x1faf   :  { %v7163_v0 = vrot.slane %v7162_v38, 4 }
0x1fb0   :  { %v7139_v25 = vmul.f32 %v7129_v10, %v7107_v31 }
0x1fb1   :  { %v7164_v26 = vadd.f32 %v7163_v0, %v7162_v38 }
0x1fb2   :  { %v7155_v42 = vsel %vm88_vm0, %v7139_v25, 0.0 }
0x1fb3   :  { %v7165_v9 = vrot.slane %v7164_v26, 2  ;;  %v7156_v62 = vrot.slane %v7155_v42, 4 }
0x1fb5   :  { %v7166_v28 = vadd.f32 %v7165_v9, %v7164_v26  ;;  %v7157_v63 = vadd.f32 %v7156_v62, %v7155_v42 }
0x1fb7   :  { %v7167_v40 = vrot.slane %v7166_v28, 1  ;;  %v7158_v18 = vrot.slane %v7157_v63, 2 }
0x1fb9   :  { %v7168_v19 = vadd.f32 %v7167_v40, %v7166_v28  ;;  %v7159_v35 = vadd.f32 %v7158_v18, %v7157_v63 }
0x1fbb   :  { %v7186_v37 = vmul.f32 %v7178_v11, %v7168_v19  ;;  %v7160_v4 = vrot.slane %v7159_v35, 1 }
0x1fbd   :  { %v7161_v39 = vadd.f32 %v7160_v4, %v7159_v35  ;;  %v7217_v48 = vmul.f32 %v7186_v37, %v7186_v37  ;;  %v7188_v8 = vmul.f32 %v7186_v37, %v7184_v50 }
0x1fbf   :  { %v7185_v51 = vmul.f32 %v7177_v57, %v7161_v39  ;;  %v7220_v53 = vrot.slane %v7217_v48, 7  ;;  %v7191_v20 = vrot.slane %v7188_v8, 7 }
0x1fc1   :  { %v7216_v58 = vmul.f32 %v7185_v51, %v7185_v51  ;;  %v7187_v55 = vmul.f32 %v7185_v51, %v7183_v52 }
0x1fc3   :  { %v7221_v56 = vsel %vm7192_vm7, %v7220_v53, %v7216_v58  ;;  %v7193_v46 = vsel %vm7192_vm7, %v7191_v20, %v7187_v55 }
0x1fc4   :  { %v7223_v36 = vsel %vm7195_vm8, %v7221_v56, 0.0  ;;  %v7196_v33 = vsel %vm7195_vm8, %v7193_v46, 0.0 }
0x1fc5   :  { %7224 = vadd.xlane.f32.xlu0 %v7223_v36 }
0x1fc9   :  { %7197 = vadd.xlane.f32.xlu0 %v7196_v33 }
0x2012   :  { %v7208_v24 = vpop.xlane.xlu1 %7207 }
0x2013   :  { %8348 = vrsqrt.f32 %v7208_v24  ;;  %vm7211_vm9 = vcmp.eq.f32.partialorder %v7208_v24, inf  ;;  %v7214_v30 = vand.u32 2147483648, %v7208_v24  ;;  %vm7213_vm11 = vcmp.eq.f32.partialorder %v7208_v24, 0.0 }
0x2020   :  { %v8349_v13 = vpop.eup %8348 }
0x2021   :  { %v7210_v43 = vmul.f32 %v8349_v13, %v7208_v24 }
0x2023   :  { %v7212_v45 = vsel %vm7211_vm9, %v7208_v24, %v7210_v43 }
0x2024   :  { %v7215_v50 = vsel %vm7213_vm11, %v7214_v30, %v7212_v45 }
0x204e   :  { %v7225_v16 = vpop.xlane.xlu0 %7224 }
0x204f   :  { %8350 = vrsqrt.f32 %v7225_v16  ;;  %vm7228_vm10 = vcmp.eq.f32.partialorder %v7225_v16, inf  ;;  %v7231_v47 = vand.u32 2147483648, %v7225_v16  ;;  %vm7230_vm12 = vcmp.eq.f32.partialorder %v7225_v16, 0.0 }
0x2052   :  { %v7198_v1 = vpop.xlane.xlu0 %7197 }
0x205c   :  { %v8351_v2 = vpop.eup %8350 }
0x205d   :  { %v7227_v12 = vmul.f32 %v8351_v2, %v7225_v16 }
0x205f   :  { %v7229_v7 = vsel %vm7228_vm10, %v7225_v16, %v7227_v12 }
0x2060   :  { %v7232_v29 = vsel %vm7230_vm12, %v7231_v47, %v7229_v7 }
0x2061   :  { %v7233_v61 = vmul.f32 %v7232_v29, %v7215_v50 }
0x2063   :  { %v7234_v52 = vmax.f32 %v7233_v61, 1e-06 }
0x2065   :  { %8352 = vrcp.f32 %v7234_v52 }
0x2072   :  { %v8353_v27 = vpop.eup %8352 }
0x2073   :  { %v7236_v49 = vmul.f32 %v8353_v27, %v7198_v1 }
0x2075   :  { %7238 = vst.msk [vmem:[%s9594_s7] sm:$0x3] %vm7237_vm13, %v7236_v49 }

</bundles_post_ra>
